<compile_context>
chip_gen: v7x
topology: tpu7x:2x2x1
jax: 0.10.0
libtpu: 0.0.40
codegen_flags: <defaults>
</compile_context>

<pallas_src>
import numpy as np
import jax
import jax.numpy as jnp
from jax.experimental import pallas as pl
from jax.experimental.pallas import tpu as pltpu

# Model hyper-parameters (GRU branch of MultiRNNCell)
N_LAYER = 2
D_INPUT = 4
D_HIDDEN = 32
BZ = 2
N_STEPS = 8
SUBLANES = 8  # f32 sublane count -> pad batch to a multiple of this


# ----------------------------------------------------------------------------
# Kernel
# ----------------------------------------------------------------------------
def make_kernel(n_layer, n_steps, bz_pad, d_hidden):
    def kernel(x_ref, m_ref, *refs):
        # refs = n_layer * (wih_g, whh_g, b_g, b_hn), w_out, b_out, hcol_ref
        layer_refs = [refs[4 * i:4 * i + 4] for i in range(n_layer)]
        w_out_ref = refs[4 * n_layer]
        b_out_ref = refs[4 * n_layer + 1]
        hcol_ref = refs[4 * n_layer + 2]

        # Load every weight exactly once; they are reused by all unrolled steps.
        layers = []
        for wih_ref, whh_ref, b_ref, bhn_ref in layer_refs:
            wih = (wih_ref[0], wih_ref[1], wih_ref[2])   # each (d_in, H)
            whh = (whh_ref[0], whh_ref[1], whh_ref[2])   # each (H, H)
            b = (b_ref[0], b_ref[1], b_ref[2])           # each (1, H)
            bhn = bhn_ref[...]                           # (1, H)
            layers.append((wih, whh, b, bhn))
        w_out = w_out_ref[...]                           # (H, d_input)
        b_out = b_out_ref[...]                           # (1, d_input)

        def gru(x, h, wih, whh, b, bhn):
            # PyTorch nn.GRUCell semantics, gate order (r, z, n); r/z biases
            # pre-combined on host, n-gate hidden bias kept separate.
            r = jax.nn.sigmoid(
                jnp.dot(x, wih[0], preferred_element_type=jnp.float32)
                + jnp.dot(h, whh[0], preferred_element_type=jnp.float32) + b[0])
            z = jax.nn.sigmoid(
                jnp.dot(x, wih[1], preferred_element_type=jnp.float32)
                + jnp.dot(h, whh[1], preferred_element_type=jnp.float32) + b[1])
            n = jnp.tanh(
                jnp.dot(x, wih[2], preferred_element_type=jnp.float32) + b[2]
                + r * (jnp.dot(h, whh[2], preferred_element_type=jnp.float32) + bhn))
            return (1.0 - z) * n + z * h

        h = jnp.zeros((bz_pad, d_hidden), jnp.float32)
        for t in range(n_steps):                         # static unroll
            est = jnp.dot(h, w_out, preferred_element_type=jnp.float32) + b_out
            m = m_ref[t]                                 # (bz_pad, d_input)
            x = x_ref[t]
            imputed = m * x + (1.0 - m) * est
            for li, (wih, whh, b, bhn) in enumerate(layers):
                inp = imputed if li == 0 else h          # PyTorch layer-i>0 feeds h as input AND hidden
                h = gru(inp, h, wih, whh, b, bhn)
            hcol_ref[t] = h

    return kernel


# ----------------------------------------------------------------------------
# Parameters (PyTorch-style init) and host-side packing
# ----------------------------------------------------------------------------
def init_params(key, n_layer, d_input, d_hidden):
    """PyTorch layout: w_ih (3H, d_in), w_hh (3H, H), biases (3H,); uniform(-1/sqrt(H), 1/sqrt(H))."""
    bound = 1.0 / np.sqrt(d_hidden)
    in_sizes = [d_input] + [d_hidden] * (n_layer - 1)
    cells = []
    for din in in_sizes:
        key, k0, k1, k2, k3 = jax.random.split(key, 5)
        w_ih = jax.random.uniform(k0, (3 * d_hidden, din), jnp.float32, -bound, bound)
        w_hh = jax.random.uniform(k1, (3 * d_hidden, d_hidden), jnp.float32, -bound, bound)
        b_ih = jax.random.uniform(k2, (3 * d_hidden,), jnp.float32, -bound, bound)
        b_hh = jax.random.uniform(k3, (3 * d_hidden,), jnp.float32, -bound, bound)
        cells.append((w_ih, w_hh, b_ih, b_hh))
    key, k0, k1 = jax.random.split(key, 3)
    w_out = jax.random.uniform(k0, (d_input, d_hidden), jnp.float32, -bound, bound)
    b_out = jax.random.uniform(k1, (d_input,), jnp.float32, -bound, bound)
    return cells, w_out, b_out


def pack_params(cells_pt, w_out, b_out, d_hidden):
    """Pre-transpose + gate-split on host so the kernel never transposes or lane-slices."""
    h = d_hidden
    flat = []
    for (w_ih, w_hh, b_ih, b_hh) in cells_pt:
        wih_g = jnp.stack([w_ih[g * h:(g + 1) * h, :].T for g in range(3)])   # (3, d_in, H)
        whh_g = jnp.stack([w_hh[g * h:(g + 1) * h, :].T for g in range(3)])   # (3, H, H)
        b_g = jnp.stack([
            (b_ih[0:h] + b_hh[0:h])[None, :],          # r: combined bias
            (b_ih[h:2 * h] + b_hh[h:2 * h])[None, :],  # z: combined bias
            b_ih[2 * h:3 * h][None, :],                # n: input-side bias only
        ])                                             # (3, 1, H)
        b_hn = b_hh[2 * h:3 * h][None, :]              # (1, H)
        flat += [wih_g, whh_g, b_g, b_hn]
    flat += [w_out.T, b_out[None, :]]                  # (H, d_input), (1, d_input)
    return flat


# ----------------------------------------------------------------------------
# Forward wrapper
# ----------------------------------------------------------------------------
def multirnn_forward(X, missing_mask, cells_pt, w_out, b_out):
    bz, n_steps, d_input = X.shape
    bz_pad = max(SUBLANES, ((bz + SUBLANES - 1) // SUBLANES) * SUBLANES)

    # Time-major, batch padded to the sublane count.
    pad = ((0, bz_pad - bz), (0, 0), (0, 0))
    x_tm = jnp.transpose(jnp.pad(X, pad), (1, 0, 2))             # (T, bz_pad, d_input)
    m_tm = jnp.transpose(jnp.pad(missing_mask, pad), (1, 0, 2))  # (T, bz_pad, d_input)
    flat = pack_params(cells_pt, w_out, b_out, D_HIDDEN)

    def full_spec(a):
        nd = a.ndim
        return pl.BlockSpec(a.shape, lambda i, _nd=nd: (0,) * _nd)

    kernel = make_kernel(len(cells_pt), n_steps, bz_pad, D_HIDDEN)
    hcol_tm = pl.pallas_call(
        kernel,
        out_shape=jax.ShapeDtypeStruct((n_steps, bz_pad, D_HIDDEN), jnp.float32),
        grid=(1,),  # whole recurrence runs inside one kernel invocation
        in_specs=[full_spec(x_tm), full_spec(m_tm)] + [full_spec(p) for p in flat],
        out_specs=pl.BlockSpec((n_steps, bz_pad, D_HIDDEN), lambda i: (0, 0, 0)),
        compiler_params=pltpu.CompilerParams(dimension_semantics=("arbitrary",)),
    )(x_tm, m_tm, *flat)

    hcol = jnp.transpose(hcol_tm, (1, 0, 2))[:bz]                # (bz, T, H)

    # Lane-dense epilogue in XLA: one batched output_layer projection for all steps.
    est_all = jnp.einsum('bth,oh->bto', hcol, w_out) + b_out     # output_layer(h_t)
    pre_collector = jnp.concatenate(
        [jnp.broadcast_to(b_out, (bz, 1, d_input)), est_all[:, :-1]], axis=1)
    imputed = missing_mask * X + (1.0 - missing_mask) * pre_collector
    output_collector = jnp.concatenate([imputed[:, 1:], est_all[:, -1:]], axis=1)
    hidden_state = hcol[:, -1]
    return pre_collector, output_collector, hidden_state, hcol


# ----------------------------------------------------------------------------
# Pure-JAX reference (replicates the PyTorch GRU branch exactly)
# ----------------------------------------------------------------------------
def _ref_gru_cell(x, h, w_ih, w_hh, b_ih, b_hh, hdim):
    gi = x @ w_ih.T + b_ih
    gh = h @ w_hh.T + b_hh
    i_r, i_z, i_n = gi[:, :hdim], gi[:, hdim:2 * hdim], gi[:, 2 * hdim:]
    h_r, h_z, h_n = gh[:, :hdim], gh[:, hdim:2 * hdim], gh[:, 2 * hdim:]
    r = jax.nn.sigmoid(i_r + h_r)
    z = jax.nn.sigmoid(i_z + h_z)
    n = jnp.tanh(i_n + r * h_n)
    return (1.0 - z) * n + z * h


def reference_forward(X, missing_mask, cells_pt, w_out, b_out):
    bz, n_steps, _ = X.shape
    h = jnp.zeros((bz, D_HIDDEN), jnp.float32)
    pre, outc, hcol = [], [], []
    for t in range(n_steps):
        x_t = X[:, t]
        m_t = missing_mask[:, t]
        est = h @ w_out.T + b_out
        pre.append(est)
        imputed = m_t * x_t + (1.0 - m_t) * est
        outc.append(imputed)
        for i, (w_ih, w_hh, b_ih, b_hh) in enumerate(cells_pt):
            inp = imputed if i == 0 else h
            h = _ref_gru_cell(inp, h, w_ih, w_hh, b_ih, b_hh, D_HIDDEN)
        hcol.append(h)
    pre = jnp.stack(pre, axis=1)
    outc = jnp.stack(outc, axis=1)
    hcol_arr = jnp.stack(hcol, axis=1)
    final_est = h @ w_out.T + b_out
    outc = jnp.concatenate([outc[:, 1:], final_est[:, None, :]], axis=1)
    return pre, outc, h, hcol_arr


if __name__ == "__main__":
    key = jax.random.PRNGKey(0)
    key, kx, km, kp = jax.random.split(key, 4)
    X = jax.random.normal(kx, (BZ, N_STEPS, D_INPUT), jnp.float32)
    missing_mask = (jax.random.uniform(km, (BZ, N_STEPS, D_INPUT)) > 0.3).astype(jnp.float32)
    cells_pt, w_out, b_out = init_params(kp, N_LAYER, D_INPUT, D_HIDDEN)

    outs = multirnn_forward(X, missing_mask, cells_pt, w_out, b_out)
    outs = jax.block_until_ready(outs)

    refs = jax.block_until_ready(reference_forward(X, missing_mask, cells_pt, w_out, b_out))
    for o, r in zip(outs, refs):
        np.testing.assert_allclose(np.asarray(o), np.asarray(r), atol=2e-3, rtol=2e-3)

    print("KERNEL_OK")
</pallas_src>

<mosaic_0001>
module attributes {stable_mosaic.version = 11 : i64} {
  func.func @kernel(%arg0: i32, %arg1: memref<8x8x4xf32, #tpu.memory_space<vmem>>, %arg2: memref<8x8x4xf32, #tpu.memory_space<vmem>>, %arg3: memref<3x4x32xf32, #tpu.memory_space<vmem>>, %arg4: memref<3x32x32xf32, #tpu.memory_space<vmem>>, %arg5: memref<3x1x32xf32, #tpu.memory_space<vmem>>, %arg6: memref<1x32xf32, #tpu.memory_space<vmem>>, %arg7: memref<3x32x32xf32, #tpu.memory_space<vmem>>, %arg8: memref<3x32x32xf32, #tpu.memory_space<vmem>>, %arg9: memref<3x1x32xf32, #tpu.memory_space<vmem>>, %arg10: memref<1x32xf32, #tpu.memory_space<vmem>>, %arg11: memref<32x4xf32, #tpu.memory_space<vmem>>, %arg12: memref<1x4xf32, #tpu.memory_space<vmem>>, %arg13: memref<8x8x32xf32, #tpu.memory_space<vmem>>) attributes {dimension_semantics = [#tpu.dimension_semantics<arbitrary>], iteration_bounds = array<i64: 1>, scalar_prefetch = 0 : i64, scratch_operands = 0 : i64, tpu.core_type = #tpu.core_type<tc>, window_params = [{pipeline_mode = #tpu.pipeline_mode<synchronous>, transform_indices = @transform_0, window_bounds = array<i64: 8, 8, 4>}, {pipeline_mode = #tpu.pipeline_mode<synchronous>, transform_indices = @transform_1, window_bounds = array<i64: 8, 8, 4>}, {pipeline_mode = #tpu.pipeline_mode<synchronous>, transform_indices = @transform_2, window_bounds = array<i64: 3, 4, 32>}, {pipeline_mode = #tpu.pipeline_mode<synchronous>, transform_indices = @transform_3, window_bounds = array<i64: 3, 32, 32>}, {pipeline_mode = #tpu.pipeline_mode<synchronous>, transform_indices = @transform_4, window_bounds = array<i64: 3, 1, 32>}, {pipeline_mode = #tpu.pipeline_mode<synchronous>, transform_indices = @transform_5, window_bounds = array<i64: 1, 32>}, {pipeline_mode = #tpu.pipeline_mode<synchronous>, transform_indices = @transform_6, window_bounds = array<i64: 3, 32, 32>}, {pipeline_mode = #tpu.pipeline_mode<synchronous>, transform_indices = @transform_7, window_bounds = array<i64: 3, 32, 32>}, {pipeline_mode = #tpu.pipeline_mode<synchronous>, transform_indices = @transform_8, window_bounds = array<i64: 3, 1, 32>}, {pipeline_mode = #tpu.pipeline_mode<synchronous>, transform_indices = @transform_9, window_bounds = array<i64: 1, 32>}, {pipeline_mode = #tpu.pipeline_mode<synchronous>, transform_indices = @transform_10, window_bounds = array<i64: 32, 4>}, {pipeline_mode = #tpu.pipeline_mode<synchronous>, transform_indices = @transform_11, window_bounds = array<i64: 1, 4>}, {pipeline_mode = #tpu.pipeline_mode<synchronous>, transform_indices = @transform_12, window_bounds = array<i64: 8, 8, 32>}]} {
    %c0 = arith.constant 0 : index
    %c0_0 = arith.constant 0 : index
    %c0_1 = arith.constant 0 : index
    %0 = vector.load %arg3[%c0, %c0_0, %c0_1] : memref<3x4x32xf32, #tpu.memory_space<vmem>>, vector<1x4x32xf32>
    %1 = vector.shape_cast %0 : vector<1x4x32xf32> to vector<4x32xf32>
    %c1 = arith.constant 1 : index
    %c0_2 = arith.constant 0 : index
    %c0_3 = arith.constant 0 : index
    %2 = vector.load %arg3[%c1, %c0_2, %c0_3] : memref<3x4x32xf32, #tpu.memory_space<vmem>>, vector<1x4x32xf32>
    %3 = vector.shape_cast %2 : vector<1x4x32xf32> to vector<4x32xf32>
    %c2 = arith.constant 2 : index
    %c0_4 = arith.constant 0 : index
    %c0_5 = arith.constant 0 : index
    %4 = vector.load %arg3[%c2, %c0_4, %c0_5] : memref<3x4x32xf32, #tpu.memory_space<vmem>>, vector<1x4x32xf32>
    %5 = vector.shape_cast %4 : vector<1x4x32xf32> to vector<4x32xf32>
    %c0_6 = arith.constant 0 : index
    %c0_7 = arith.constant 0 : index
    %c0_8 = arith.constant 0 : index
    %6 = vector.load %arg4[%c0_6, %c0_7, %c0_8] : memref<3x32x32xf32, #tpu.memory_space<vmem>>, vector<1x32x32xf32>
    %7 = vector.shape_cast %6 : vector<1x32x32xf32> to vector<32x32xf32>
    %c1_9 = arith.constant 1 : index
    %c0_10 = arith.constant 0 : index
    %c0_11 = arith.constant 0 : index
    %8 = vector.load %arg4[%c1_9, %c0_10, %c0_11] : memref<3x32x32xf32, #tpu.memory_space<vmem>>, vector<1x32x32xf32>
    %9 = vector.shape_cast %8 : vector<1x32x32xf32> to vector<32x32xf32>
    %c2_12 = arith.constant 2 : index
    %c0_13 = arith.constant 0 : index
    %c0_14 = arith.constant 0 : index
    %10 = vector.load %arg4[%c2_12, %c0_13, %c0_14] : memref<3x32x32xf32, #tpu.memory_space<vmem>>, vector<1x32x32xf32>
    %11 = vector.shape_cast %10 : vector<1x32x32xf32> to vector<32x32xf32>
    %c0_15 = arith.constant 0 : index
    %c0_16 = arith.constant 0 : index
    %c0_17 = arith.constant 0 : index
    %12 = vector.load %arg5[%c0_15, %c0_16, %c0_17] : memref<3x1x32xf32, #tpu.memory_space<vmem>>, vector<1x1x32xf32>
    %13 = vector.shape_cast %12 : vector<1x1x32xf32> to vector<1x32xf32>
    %c1_18 = arith.constant 1 : index
    %c0_19 = arith.constant 0 : index
    %c0_20 = arith.constant 0 : index
    %14 = vector.load %arg5[%c1_18, %c0_19, %c0_20] : memref<3x1x32xf32, #tpu.memory_space<vmem>>, vector<1x1x32xf32>
    %15 = vector.shape_cast %14 : vector<1x1x32xf32> to vector<1x32xf32>
    %c2_21 = arith.constant 2 : index
    %c0_22 = arith.constant 0 : index
    %c0_23 = arith.constant 0 : index
    %16 = vector.load %arg5[%c2_21, %c0_22, %c0_23] : memref<3x1x32xf32, #tpu.memory_space<vmem>>, vector<1x1x32xf32>
    %17 = vector.shape_cast %16 : vector<1x1x32xf32> to vector<1x32xf32>
    %c0_24 = arith.constant 0 : index
    %c0_25 = arith.constant 0 : index
    %18 = vector.load %arg6[%c0_24, %c0_25] : memref<1x32xf32, #tpu.memory_space<vmem>>, vector<1x32xf32>
    %c0_26 = arith.constant 0 : index
    %c0_27 = arith.constant 0 : index
    %c0_28 = arith.constant 0 : index
    %19 = vector.load %arg7[%c0_26, %c0_27, %c0_28] : memref<3x32x32xf32, #tpu.memory_space<vmem>>, vector<1x32x32xf32>
    %20 = vector.shape_cast %19 : vector<1x32x32xf32> to vector<32x32xf32>
    %c1_29 = arith.constant 1 : index
    %c0_30 = arith.constant 0 : index
    %c0_31 = arith.constant 0 : index
    %21 = vector.load %arg7[%c1_29, %c0_30, %c0_31] : memref<3x32x32xf32, #tpu.memory_space<vmem>>, vector<1x32x32xf32>
    %22 = vector.shape_cast %21 : vector<1x32x32xf32> to vector<32x32xf32>
    %c2_32 = arith.constant 2 : index
    %c0_33 = arith.constant 0 : index
    %c0_34 = arith.constant 0 : index
    %23 = vector.load %arg7[%c2_32, %c0_33, %c0_34] : memref<3x32x32xf32, #tpu.memory_space<vmem>>, vector<1x32x32xf32>
    %24 = vector.shape_cast %23 : vector<1x32x32xf32> to vector<32x32xf32>
    %c0_35 = arith.constant 0 : index
    %c0_36 = arith.constant 0 : index
    %c0_37 = arith.constant 0 : index
    %25 = vector.load %arg8[%c0_35, %c0_36, %c0_37] : memref<3x32x32xf32, #tpu.memory_space<vmem>>, vector<1x32x32xf32>
    %26 = vector.shape_cast %25 : vector<1x32x32xf32> to vector<32x32xf32>
    %c1_38 = arith.constant 1 : index
    %c0_39 = arith.constant 0 : index
    %c0_40 = arith.constant 0 : index
    %27 = vector.load %arg8[%c1_38, %c0_39, %c0_40] : memref<3x32x32xf32, #tpu.memory_space<vmem>>, vector<1x32x32xf32>
    %28 = vector.shape_cast %27 : vector<1x32x32xf32> to vector<32x32xf32>
    %c2_41 = arith.constant 2 : index
    %c0_42 = arith.constant 0 : index
    %c0_43 = arith.constant 0 : index
    %29 = vector.load %arg8[%c2_41, %c0_42, %c0_43] : memref<3x32x32xf32, #tpu.memory_space<vmem>>, vector<1x32x32xf32>
    %30 = vector.shape_cast %29 : vector<1x32x32xf32> to vector<32x32xf32>
    %c0_44 = arith.constant 0 : index
    %c0_45 = arith.constant 0 : index
    %c0_46 = arith.constant 0 : index
    %31 = vector.load %arg9[%c0_44, %c0_45, %c0_46] : memref<3x1x32xf32, #tpu.memory_space<vmem>>, vector<1x1x32xf32>
    %32 = vector.shape_cast %31 : vector<1x1x32xf32> to vector<1x32xf32>
    %c1_47 = arith.constant 1 : index
    %c0_48 = arith.constant 0 : index
    %c0_49 = arith.constant 0 : index
    %33 = vector.load %arg9[%c1_47, %c0_48, %c0_49] : memref<3x1x32xf32, #tpu.memory_space<vmem>>, vector<1x1x32xf32>
    %34 = vector.shape_cast %33 : vector<1x1x32xf32> to vector<1x32xf32>
    %c2_50 = arith.constant 2 : index
    %c0_51 = arith.constant 0 : index
    %c0_52 = arith.constant 0 : index
    %35 = vector.load %arg9[%c2_50, %c0_51, %c0_52] : memref<3x1x32xf32, #tpu.memory_space<vmem>>, vector<1x1x32xf32>
    %36 = vector.shape_cast %35 : vector<1x1x32xf32> to vector<1x32xf32>
    %c0_53 = arith.constant 0 : index
    %c0_54 = arith.constant 0 : index
    %37 = vector.load %arg10[%c0_53, %c0_54] : memref<1x32xf32, #tpu.memory_space<vmem>>, vector<1x32xf32>
    %c0_55 = arith.constant 0 : index
    %c0_56 = arith.constant 0 : index
    %38 = vector.load %arg11[%c0_55, %c0_56] : memref<32x4xf32, #tpu.memory_space<vmem>>, vector<32x4xf32>
    %c0_57 = arith.constant 0 : index
    %c0_58 = arith.constant 0 : index
    %39 = vector.load %arg12[%c0_57, %c0_58] : memref<1x4xf32, #tpu.memory_space<vmem>>, vector<1x4xf32>
    %cst = arith.constant 0.000000e+00 : f32
    %40 = vector.broadcast %cst : f32 to vector<8x32xf32>
    %cst_59 = arith.constant dense<0.000000e+00> : vector<8x4xf32>
    %41 = tpu.matmul %40, %38, %cst_59 {dimension_numbers = #tpu.dot_dimension_numbers<[1], [0], [0], [1], [0, 0, 1, 1], [], []>} : vector<8x32xf32>, vector<32x4xf32>, vector<8x4xf32> -> vector<8x4xf32>
    %42 = vector.broadcast %39 : vector<1x4xf32> to vector<8x4xf32>
    %43 = arith.addf %41, %42 : vector<8x4xf32>
    %c0_60 = arith.constant 0 : index
    %c0_61 = arith.constant 0 : index
    %c0_62 = arith.constant 0 : index
    %44 = vector.load %arg2[%c0_60, %c0_61, %c0_62] : memref<8x8x4xf32, #tpu.memory_space<vmem>>, vector<1x8x4xf32>
    %45 = vector.shape_cast %44 : vector<1x8x4xf32> to vector<8x4xf32>
    %c0_63 = arith.constant 0 : index
    %c0_64 = arith.constant 0 : index
    %c0_65 = arith.constant 0 : index
    %46 = vector.load %arg1[%c0_63, %c0_64, %c0_65] : memref<8x8x4xf32, #tpu.memory_space<vmem>>, vector<1x8x4xf32>
    %47 = vector.shape_cast %46 : vector<1x8x4xf32> to vector<8x4xf32>
    %48 = arith.mulf %45, %47 : vector<8x4xf32>
    %cst_66 = arith.constant 1.000000e+00 : f32
    %49 = vector.broadcast %cst_66 : f32 to vector<8x4xf32>
    %50 = arith.subf %49, %45 : vector<8x4xf32>
    %51 = arith.mulf %50, %43 : vector<8x4xf32>
    %52 = arith.addf %48, %51 : vector<8x4xf32>
    %cst_67 = arith.constant dense<0.000000e+00> : vector<8x32xf32>
    %53 = tpu.matmul %52, %1, %cst_67 {dimension_numbers = #tpu.dot_dimension_numbers<[1], [0], [0], [1], [0, 0, 1, 1], [], []>} : vector<8x4xf32>, vector<4x32xf32>, vector<8x32xf32> -> vector<8x32xf32>
    %cst_68 = arith.constant dense<0.000000e+00> : vector<8x32xf32>
    %54 = tpu.matmul %40, %7, %cst_68 {dimension_numbers = #tpu.dot_dimension_numbers<[1], [0], [0], [1], [0, 0, 1, 1], [], []>} : vector<8x32xf32>, vector<32x32xf32>, vector<8x32xf32> -> vector<8x32xf32>
    %55 = arith.addf %53, %54 : vector<8x32xf32>
    %56 = vector.broadcast %13 : vector<1x32xf32> to vector<8x32xf32>
    %57 = arith.addf %55, %56 : vector<8x32xf32>
    %58 = arith.negf %57 : vector<8x32xf32>
    %59 = math.exp %58 : vector<8x32xf32>
    %cst_69 = arith.constant 1.000000e+00 : f32
    %60 = vector.broadcast %cst_69 : f32 to vector<8x32xf32>
    %61 = arith.addf %60, %59 : vector<8x32xf32>
    %62 = arith.divf %60, %61 : vector<8x32xf32>
    %cst_70 = arith.constant dense<0.000000e+00> : vector<8x32xf32>
    %63 = tpu.matmul %52, %3, %cst_70 {dimension_numbers = #tpu.dot_dimension_numbers<[1], [0], [0], [1], [0, 0, 1, 1], [], []>} : vector<8x4xf32>, vector<4x32xf32>, vector<8x32xf32> -> vector<8x32xf32>
    %cst_71 = arith.constant dense<0.000000e+00> : vector<8x32xf32>
    %64 = tpu.matmul %40, %9, %cst_71 {dimension_numbers = #tpu.dot_dimension_numbers<[1], [0], [0], [1], [0, 0, 1, 1], [], []>} : vector<8x32xf32>, vector<32x32xf32>, vector<8x32xf32> -> vector<8x32xf32>
    %65 = arith.addf %63, %64 : vector<8x32xf32>
    %66 = vector.broadcast %15 : vector<1x32xf32> to vector<8x32xf32>
    %67 = arith.addf %65, %66 : vector<8x32xf32>
    %68 = arith.negf %67 : vector<8x32xf32>
    %69 = math.exp %68 : vector<8x32xf32>
    %cst_72 = arith.constant 1.000000e+00 : f32
    %70 = vector.broadcast %cst_72 : f32 to vector<8x32xf32>
    %71 = arith.addf %70, %69 : vector<8x32xf32>
    %72 = arith.divf %70, %71 : vector<8x32xf32>
    %cst_73 = arith.constant dense<0.000000e+00> : vector<8x32xf32>
    %73 = tpu.matmul %52, %5, %cst_73 {dimension_numbers = #tpu.dot_dimension_numbers<[1], [0], [0], [1], [0, 0, 1, 1], [], []>} : vector<8x4xf32>, vector<4x32xf32>, vector<8x32xf32> -> vector<8x32xf32>
    %74 = vector.broadcast %17 : vector<1x32xf32> to vector<8x32xf32>
    %75 = arith.addf %73, %74 : vector<8x32xf32>
    %cst_74 = arith.constant dense<0.000000e+00> : vector<8x32xf32>
    %76 = tpu.matmul %40, %11, %cst_74 {dimension_numbers = #tpu.dot_dimension_numbers<[1], [0], [0], [1], [0, 0, 1, 1], [], []>} : vector<8x32xf32>, vector<32x32xf32>, vector<8x32xf32> -> vector<8x32xf32>
    %77 = vector.broadcast %18 : vector<1x32xf32> to vector<8x32xf32>
    %78 = arith.addf %76, %77 : vector<8x32xf32>
    %79 = arith.mulf %62, %78 : vector<8x32xf32>
    %80 = arith.addf %75, %79 : vector<8x32xf32>
    %81 = math.tanh %80 : vector<8x32xf32>
    %cst_75 = arith.constant 1.000000e+00 : f32
    %82 = vector.broadcast %cst_75 : f32 to vector<8x32xf32>
    %83 = arith.subf %82, %72 : vector<8x32xf32>
    %84 = arith.mulf %83, %81 : vector<8x32xf32>
    %85 = arith.mulf %72, %40 : vector<8x32xf32>
    %86 = arith.addf %84, %85 : vector<8x32xf32>
    %cst_76 = arith.constant dense<0.000000e+00> : vector<8x32xf32>
    %87 = tpu.matmul %86, %20, %cst_76 {dimension_numbers = #tpu.dot_dimension_numbers<[1], [0], [0], [1], [0, 0, 1, 1], [], []>} : vector<8x32xf32>, vector<32x32xf32>, vector<8x32xf32> -> vector<8x32xf32>
    %cst_77 = arith.constant dense<0.000000e+00> : vector<8x32xf32>
    %88 = tpu.matmul %86, %26, %cst_77 {dimension_numbers = #tpu.dot_dimension_numbers<[1], [0], [0], [1], [0, 0, 1, 1], [], []>} : vector<8x32xf32>, vector<32x32xf32>, vector<8x32xf32> -> vector<8x32xf32>
    %89 = arith.addf %87, %88 : vector<8x32xf32>
    %90 = vector.broadcast %32 : vector<1x32xf32> to vector<8x32xf32>
    %91 = arith.addf %89, %90 : vector<8x32xf32>
    %92 = arith.negf %91 : vector<8x32xf32>
    %93 = math.exp %92 : vector<8x32xf32>
    %cst_78 = arith.constant 1.000000e+00 : f32
    %94 = vector.broadcast %cst_78 : f32 to vector<8x32xf32>
    %95 = arith.addf %94, %93 : vector<8x32xf32>
    %96 = arith.divf %94, %95 : vector<8x32xf32>
    %cst_79 = arith.constant dense<0.000000e+00> : vector<8x32xf32>
    %97 = tpu.matmul %86, %22, %cst_79 {dimension_numbers = #tpu.dot_dimension_numbers<[1], [0], [0], [1], [0, 0, 1, 1], [], []>} : vector<8x32xf32>, vector<32x32xf32>, vector<8x32xf32> -> vector<8x32xf32>
    %cst_80 = arith.constant dense<0.000000e+00> : vector<8x32xf32>
    %98 = tpu.matmul %86, %28, %cst_80 {dimension_numbers = #tpu.dot_dimension_numbers<[1], [0], [0], [1], [0, 0, 1, 1], [], []>} : vector<8x32xf32>, vector<32x32xf32>, vector<8x32xf32> -> vector<8x32xf32>
    %99 = arith.addf %97, %98 : vector<8x32xf32>
    %100 = vector.broadcast %34 : vector<1x32xf32> to vector<8x32xf32>
    %101 = arith.addf %99, %100 : vector<8x32xf32>
    %102 = arith.negf %101 : vector<8x32xf32>
    %103 = math.exp %102 : vector<8x32xf32>
    %cst_81 = arith.constant 1.000000e+00 : f32
    %104 = vector.broadcast %cst_81 : f32 to vector<8x32xf32>
    %105 = arith.addf %104, %103 : vector<8x32xf32>
    %106 = arith.divf %104, %105 : vector<8x32xf32>
    %cst_82 = arith.constant dense<0.000000e+00> : vector<8x32xf32>
    %107 = tpu.matmul %86, %24, %cst_82 {dimension_numbers = #tpu.dot_dimension_numbers<[1], [0], [0], [1], [0, 0, 1, 1], [], []>} : vector<8x32xf32>, vector<32x32xf32>, vector<8x32xf32> -> vector<8x32xf32>
    %108 = vector.broadcast %36 : vector<1x32xf32> to vector<8x32xf32>
    %109 = arith.addf %107, %108 : vector<8x32xf32>
    %cst_83 = arith.constant dense<0.000000e+00> : vector<8x32xf32>
    %110 = tpu.matmul %86, %30, %cst_83 {dimension_numbers = #tpu.dot_dimension_numbers<[1], [0], [0], [1], [0, 0, 1, 1], [], []>} : vector<8x32xf32>, vector<32x32xf32>, vector<8x32xf32> -> vector<8x32xf32>
    %111 = vector.broadcast %37 : vector<1x32xf32> to vector<8x32xf32>
    %112 = arith.addf %110, %111 : vector<8x32xf32>
    %113 = arith.mulf %96, %112 : vector<8x32xf32>
    %114 = arith.addf %109, %113 : vector<8x32xf32>
    %115 = math.tanh %114 : vector<8x32xf32>
    %cst_84 = arith.constant 1.000000e+00 : f32
    %116 = vector.broadcast %cst_84 : f32 to vector<8x32xf32>
    %117 = arith.subf %116, %106 : vector<8x32xf32>
    %118 = arith.mulf %117, %115 : vector<8x32xf32>
    %119 = arith.mulf %106, %86 : vector<8x32xf32>
    %120 = arith.addf %118, %119 : vector<8x32xf32>
    %c0_85 = arith.constant 0 : index
    %c0_86 = arith.constant 0 : index
    %c0_87 = arith.constant 0 : index
    %121 = vector.load %arg13[%c0_85, %c0_86, %c0_87] : memref<8x8x32xf32, #tpu.memory_space<vmem>>, vector<1x8x32xf32>
    %122 = vector.shape_cast %121 : vector<1x8x32xf32> to vector<8x32xf32>
    %123 = vector.shape_cast %120 : vector<8x32xf32> to vector<1x8x32xf32>
    tpu.vector_store %arg13[%c0_85, %c0_86, %c0_87], %123 {strides = array<i32>} : memref<8x8x32xf32, #tpu.memory_space<vmem>>, vector<1x8x32xf32>,
    %cst_88 = arith.constant dense<0.000000e+00> : vector<8x4xf32>
    %124 = tpu.matmul %120, %38, %cst_88 {dimension_numbers = #tpu.dot_dimension_numbers<[1], [0], [0], [1], [0, 0, 1, 1], [], []>} : vector<8x32xf32>, vector<32x4xf32>, vector<8x4xf32> -> vector<8x4xf32>
    %125 = vector.broadcast %39 : vector<1x4xf32> to vector<8x4xf32>
    %126 = arith.addf %124, %125 : vector<8x4xf32>
    %c1_89 = arith.constant 1 : index
    %c0_90 = arith.constant 0 : index
    %c0_91 = arith.constant 0 : index
    %127 = vector.load %arg2[%c1_89, %c0_90, %c0_91] : memref<8x8x4xf32, #tpu.memory_space<vmem>>, vector<1x8x4xf32>
    %128 = vector.shape_cast %127 : vector<1x8x4xf32> to vector<8x4xf32>
    %c1_92 = arith.constant 1 : index
    %c0_93 = arith.constant 0 : index
    %c0_94 = arith.constant 0 : index
    %129 = vector.load %arg1[%c1_92, %c0_93, %c0_94] : memref<8x8x4xf32, #tpu.memory_space<vmem>>, vector<1x8x4xf32>
    %130 = vector.shape_cast %129 : vector<1x8x4xf32> to vector<8x4xf32>
    %131 = arith.mulf %128, %130 : vector<8x4xf32>
    %cst_95 = arith.constant 1.000000e+00 : f32
    %132 = vector.broadcast %cst_95 : f32 to vector<8x4xf32>
    %133 = arith.subf %132, %128 : vector<8x4xf32>
    %134 = arith.mulf %133, %126 : vector<8x4xf32>
    %135 = arith.addf %131, %134 : vector<8x4xf32>
    %cst_96 = arith.constant dense<0.000000e+00> : vector<8x32xf32>
    %136 = tpu.matmul %135, %1, %cst_96 {dimension_numbers = #tpu.dot_dimension_numbers<[1], [0], [0], [1], [0, 0, 1, 1], [], []>} : vector<8x4xf32>, vector<4x32xf32>, vector<8x32xf32> -> vector<8x32xf32>
    %cst_97 = arith.constant dense<0.000000e+00> : vector<8x32xf32>
    %137 = tpu.matmul %120, %7, %cst_97 {dimension_numbers = #tpu.dot_dimension_numbers<[1], [0], [0], [1], [0, 0, 1, 1], [], []>} : vector<8x32xf32>, vector<32x32xf32>, vector<8x32xf32> -> vector<8x32xf32>
    %138 = arith.addf %136, %137 : vector<8x32xf32>
    %139 = vector.broadcast %13 : vector<1x32xf32> to vector<8x32xf32>
    %140 = arith.addf %138, %139 : vector<8x32xf32>
    %141 = arith.negf %140 : vector<8x32xf32>
    %142 = math.exp %141 : vector<8x32xf32>
    %cst_98 = arith.constant 1.000000e+00 : f32
    %143 = vector.broadcast %cst_98 : f32 to vector<8x32xf32>
    %144 = arith.addf %143, %142 : vector<8x32xf32>
    %145 = arith.divf %143, %144 : vector<8x32xf32>
    %cst_99 = arith.constant dense<0.000000e+00> : vector<8x32xf32>
    %146 = tpu.matmul %135, %3, %cst_99 {dimension_numbers = #tpu.dot_dimension_numbers<[1], [0], [0], [1], [0, 0, 1, 1], [], []>} : vector<8x4xf32>, vector<4x32xf32>, vector<8x32xf32> -> vector<8x32xf32>
    %cst_100 = arith.constant dense<0.000000e+00> : vector<8x32xf32>
    %147 = tpu.matmul %120, %9, %cst_100 {dimension_numbers = #tpu.dot_dimension_numbers<[1], [0], [0], [1], [0, 0, 1, 1], [], []>} : vector<8x32xf32>, vector<32x32xf32>, vector<8x32xf32> -> vector<8x32xf32>
    %148 = arith.addf %146, %147 : vector<8x32xf32>
    %149 = vector.broadcast %15 : vector<1x32xf32> to vector<8x32xf32>
    %150 = arith.addf %148, %149 : vector<8x32xf32>
    %151 = arith.negf %150 : vector<8x32xf32>
    %152 = math.exp %151 : vector<8x32xf32>
    %cst_101 = arith.constant 1.000000e+00 : f32
    %153 = vector.broadcast %cst_101 : f32 to vector<8x32xf32>
    %154 = arith.addf %153, %152 : vector<8x32xf32>
    %155 = arith.divf %153, %154 : vector<8x32xf32>
    %cst_102 = arith.constant dense<0.000000e+00> : vector<8x32xf32>
    %156 = tpu.matmul %135, %5, %cst_102 {dimension_numbers = #tpu.dot_dimension_numbers<[1], [0], [0], [1], [0, 0, 1, 1], [], []>} : vector<8x4xf32>, vector<4x32xf32>, vector<8x32xf32> -> vector<8x32xf32>
    %157 = vector.broadcast %17 : vector<1x32xf32> to vector<8x32xf32>
    %158 = arith.addf %156, %157 : vector<8x32xf32>
    %cst_103 = arith.constant dense<0.000000e+00> : vector<8x32xf32>
    %159 = tpu.matmul %120, %11, %cst_103 {dimension_numbers = #tpu.dot_dimension_numbers<[1], [0], [0], [1], [0, 0, 1, 1], [], []>} : vector<8x32xf32>, vector<32x32xf32>, vector<8x32xf32> -> vector<8x32xf32>
    %160 = vector.broadcast %18 : vector<1x32xf32> to vector<8x32xf32>
    %161 = arith.addf %159, %160 : vector<8x32xf32>
    %162 = arith.mulf %145, %161 : vector<8x32xf32>
    %163 = arith.addf %158, %162 : vector<8x32xf32>
    %164 = math.tanh %163 : vector<8x32xf32>
    %cst_104 = arith.constant 1.000000e+00 : f32
    %165 = vector.broadcast %cst_104 : f32 to vector<8x32xf32>
    %166 = arith.subf %165, %155 : vector<8x32xf32>
    %167 = arith.mulf %166, %164 : vector<8x32xf32>
    %168 = arith.mulf %155, %120 : vector<8x32xf32>
    %169 = arith.addf %167, %168 : vector<8x32xf32>
    %cst_105 = arith.constant dense<0.000000e+00> : vector<8x32xf32>
    %170 = tpu.matmul %169, %20, %cst_105 {dimension_numbers = #tpu.dot_dimension_numbers<[1], [0], [0], [1], [0, 0, 1, 1], [], []>} : vector<8x32xf32>, vector<32x32xf32>, vector<8x32xf32> -> vector<8x32xf32>
    %cst_106 = arith.constant dense<0.000000e+00> : vector<8x32xf32>
    %171 = tpu.matmul %169, %26, %cst_106 {dimension_numbers = #tpu.dot_dimension_numbers<[1], [0], [0], [1], [0, 0, 1, 1], [], []>} : vector<8x32xf32>, vector<32x32xf32>, vector<8x32xf32> -> vector<8x32xf32>
    %172 = arith.addf %170, %171 : vector<8x32xf32>
    %173 = vector.broadcast %32 : vector<1x32xf32> to vector<8x32xf32>
    %174 = arith.addf %172, %173 : vector<8x32xf32>
    %175 = arith.negf %174 : vector<8x32xf32>
    %176 = math.exp %175 : vector<8x32xf32>
    %cst_107 = arith.constant 1.000000e+00 : f32
    %177 = vector.broadcast %cst_107 : f32 to vector<8x32xf32>
    %178 = arith.addf %177, %176 : vector<8x32xf32>
    %179 = arith.divf %177, %178 : vector<8x32xf32>
    %cst_108 = arith.constant dense<0.000000e+00> : vector<8x32xf32>
    %180 = tpu.matmul %169, %22, %cst_108 {dimension_numbers = #tpu.dot_dimension_numbers<[1], [0], [0], [1], [0, 0, 1, 1], [], []>} : vector<8x32xf32>, vector<32x32xf32>, vector<8x32xf32> -> vector<8x32xf32>
    %cst_109 = arith.constant dense<0.000000e+00> : vector<8x32xf32>
    %181 = tpu.matmul %169, %28, %cst_109 {dimension_numbers = #tpu.dot_dimension_numbers<[1], [0], [0], [1], [0, 0, 1, 1], [], []>} : vector<8x32xf32>, vector<32x32xf32>, vector<8x32xf32> -> vector<8x32xf32>
    %182 = arith.addf %180, %181 : vector<8x32xf32>
    %183 = vector.broadcast %34 : vector<1x32xf32> to vector<8x32xf32>
    %184 = arith.addf %182, %183 : vector<8x32xf32>
    %185 = arith.negf %184 : vector<8x32xf32>
    %186 = math.exp %185 : vector<8x32xf32>
    %cst_110 = arith.constant 1.000000e+00 : f32
    %187 = vector.broadcast %cst_110 : f32 to vector<8x32xf32>
    %188 = arith.addf %187, %186 : vector<8x32xf32>
    %189 = arith.divf %187, %188 : vector<8x32xf32>
    %cst_111 = arith.constant dense<0.000000e+00> : vector<8x32xf32>
    %190 = tpu.matmul %169, %24, %cst_111 {dimension_numbers = #tpu.dot_dimension_numbers<[1], [0], [0], [1], [0, 0, 1, 1], [], []>} : vector<8x32xf32>, vector<32x32xf32>, vector<8x32xf32> -> vector<8x32xf32>
    %191 = vector.broadcast %36 : vector<1x32xf32> to vector<8x32xf32>
    %192 = arith.addf %190, %191 : vector<8x32xf32>
    %cst_112 = arith.constant dense<0.000000e+00> : vector<8x32xf32>
    %193 = tpu.matmul %169, %30, %cst_112 {dimension_numbers = #tpu.dot_dimension_numbers<[1], [0], [0], [1], [0, 0, 1, 1], [], []>} : vector<8x32xf32>, vector<32x32xf32>, vector<8x32xf32> -> vector<8x32xf32>
    %194 = vector.broadcast %37 : vector<1x32xf32> to vector<8x32xf32>
    %195 = arith.addf %193, %194 : vector<8x32xf32>
    %196 = arith.mulf %179, %195 : vector<8x32xf32>
    %197 = arith.addf %192, %196 : vector<8x32xf32>
    %198 = math.tanh %197 : vector<8x32xf32>
    %cst_113 = arith.constant 1.000000e+00 : f32
    %199 = vector.broadcast %cst_113 : f32 to vector<8x32xf32>
    %200 = arith.subf %199, %189 : vector<8x32xf32>
    %201 = arith.mulf %200, %198 : vector<8x32xf32>
    %202 = arith.mulf %189, %169 : vector<8x32xf32>
    %203 = arith.addf %201, %202 : vector<8x32xf32>
    %c1_114 = arith.constant 1 : index
    %c0_115 = arith.constant 0 : index
    %c0_116 = arith.constant 0 : index
    %204 = vector.load %arg13[%c1_114, %c0_115, %c0_116] : memref<8x8x32xf32, #tpu.memory_space<vmem>>, vector<1x8x32xf32>
    %205 = vector.shape_cast %204 : vector<1x8x32xf32> to vector<8x32xf32>
    %206 = vector.shape_cast %203 : vector<8x32xf32> to vector<1x8x32xf32>
    tpu.vector_store %arg13[%c1_114, %c0_115, %c0_116], %206 {strides = array<i32>} : memref<8x8x32xf32, #tpu.memory_space<vmem>>, vector<1x8x32xf32>,
    %cst_117 = arith.constant dense<0.000000e+00> : vector<8x4xf32>
    %207 = tpu.matmul %203, %38, %cst_117 {dimension_numbers = #tpu.dot_dimension_numbers<[1], [0], [0], [1], [0, 0, 1, 1], [], []>} : vector<8x32xf32>, vector<32x4xf32>, vector<8x4xf32> -> vector<8x4xf32>
    %208 = vector.broadcast %39 : vector<1x4xf32> to vector<8x4xf32>
    %209 = arith.addf %207, %208 : vector<8x4xf32>
    %c2_118 = arith.constant 2 : index
    %c0_119 = arith.constant 0 : index
    %c0_120 = arith.constant 0 : index
    %210 = vector.load %arg2[%c2_118, %c0_119, %c0_120] : memref<8x8x4xf32, #tpu.memory_space<vmem>>, vector<1x8x4xf32>
    %211 = vector.shape_cast %210 : vector<1x8x4xf32> to vector<8x4xf32>
    %c2_121 = arith.constant 2 : index
    %c0_122 = arith.constant 0 : index
    %c0_123 = arith.constant 0 : index
    %212 = vector.load %arg1[%c2_121, %c0_122, %c0_123] : memref<8x8x4xf32, #tpu.memory_space<vmem>>, vector<1x8x4xf32>
    %213 = vector.shape_cast %212 : vector<1x8x4xf32> to vector<8x4xf32>
    %214 = arith.mulf %211, %213 : vector<8x4xf32>
    %cst_124 = arith.constant 1.000000e+00 : f32
    %215 = vector.broadcast %cst_124 : f32 to vector<8x4xf32>
    %216 = arith.subf %215, %211 : vector<8x4xf32>
    %217 = arith.mulf %216, %209 : vector<8x4xf32>
    %218 = arith.addf %214, %217 : vector<8x4xf32>
    %cst_125 = arith.constant dense<0.000000e+00> : vector<8x32xf32>
    %219 = tpu.matmul %218, %1, %cst_125 {dimension_numbers = #tpu.dot_dimension_numbers<[1], [0], [0], [1], [0, 0, 1, 1], [], []>} : vector<8x4xf32>, vector<4x32xf32>, vector<8x32xf32> -> vector<8x32xf32>
    %cst_126 = arith.constant dense<0.000000e+00> : vector<8x32xf32>
    %220 = tpu.matmul %203, %7, %cst_126 {dimension_numbers = #tpu.dot_dimension_numbers<[1], [0], [0], [1], [0, 0, 1, 1], [], []>} : vector<8x32xf32>, vector<32x32xf32>, vector<8x32xf32> -> vector<8x32xf32>
    %221 = arith.addf %219, %220 : vector<8x32xf32>
    %222 = vector.broadcast %13 : vector<1x32xf32> to vector<8x32xf32>
    %223 = arith.addf %221, %222 : vector<8x32xf32>
    %224 = arith.negf %223 : vector<8x32xf32>
    %225 = math.exp %224 : vector<8x32xf32>
    %cst_127 = arith.constant 1.000000e+00 : f32
    %226 = vector.broadcast %cst_127 : f32 to vector<8x32xf32>
    %227 = arith.addf %226, %225 : vector<8x32xf32>
    %228 = arith.divf %226, %227 : vector<8x32xf32>
    %cst_128 = arith.constant dense<0.000000e+00> : vector<8x32xf32>
    %229 = tpu.matmul %218, %3, %cst_128 {dimension_numbers = #tpu.dot_dimension_numbers<[1], [0], [0], [1], [0, 0, 1, 1], [], []>} : vector<8x4xf32>, vector<4x32xf32>, vector<8x32xf32> -> vector<8x32xf32>
    %cst_129 = arith.constant dense<0.000000e+00> : vector<8x32xf32>
    %230 = tpu.matmul %203, %9, %cst_129 {dimension_numbers = #tpu.dot_dimension_numbers<[1], [0], [0], [1], [0, 0, 1, 1], [], []>} : vector<8x32xf32>, vector<32x32xf32>, vector<8x32xf32> -> vector<8x32xf32>
    %231 = arith.addf %229, %230 : vector<8x32xf32>
    %232 = vector.broadcast %15 : vector<1x32xf32> to vector<8x32xf32>
    %233 = arith.addf %231, %232 : vector<8x32xf32>
    %234 = arith.negf %233 : vector<8x32xf32>
    %235 = math.exp %234 : vector<8x32xf32>
    %cst_130 = arith.constant 1.000000e+00 : f32
    %236 = vector.broadcast %cst_130 : f32 to vector<8x32xf32>
    %237 = arith.addf %236, %235 : vector<8x32xf32>
    %238 = arith.divf %236, %237 : vector<8x32xf32>
    %cst_131 = arith.constant dense<0.000000e+00> : vector<8x32xf32>
    %239 = tpu.matmul %218, %5, %cst_131 {dimension_numbers = #tpu.dot_dimension_numbers<[1], [0], [0], [1], [0, 0, 1, 1], [], []>} : vector<8x4xf32>, vector<4x32xf32>, vector<8x32xf32> -> vector<8x32xf32>
    %240 = vector.broadcast %17 : vector<1x32xf32> to vector<8x32xf32>
    %241 = arith.addf %239, %240 : vector<8x32xf32>
    %cst_132 = arith.constant dense<0.000000e+00> : vector<8x32xf32>
    %242 = tpu.matmul %203, %11, %cst_132 {dimension_numbers = #tpu.dot_dimension_numbers<[1], [0], [0], [1], [0, 0, 1, 1], [], []>} : vector<8x32xf32>, vector<32x32xf32>, vector<8x32xf32> -> vector<8x32xf32>
    %243 = vector.broadcast %18 : vector<1x32xf32> to vector<8x32xf32>
    %244 = arith.addf %242, %243 : vector<8x32xf32>
    %245 = arith.mulf %228, %244 : vector<8x32xf32>
    %246 = arith.addf %241, %245 : vector<8x32xf32>
    %247 = math.tanh %246 : vector<8x32xf32>
    %cst_133 = arith.constant 1.000000e+00 : f32
    %248 = vector.broadcast %cst_133 : f32 to vector<8x32xf32>
    %249 = arith.subf %248, %238 : vector<8x32xf32>
    %250 = arith.mulf %249, %247 : vector<8x32xf32>
    %251 = arith.mulf %238, %203 : vector<8x32xf32>
    %252 = arith.addf %250, %251 : vector<8x32xf32>
    %cst_134 = arith.constant dense<0.000000e+00> : vector<8x32xf32>
    %253 = tpu.matmul %252, %20, %cst_134 {dimension_numbers = #tpu.dot_dimension_numbers<[1], [0], [0], [1], [0, 0, 1, 1], [], []>} : vector<8x32xf32>, vector<32x32xf32>, vector<8x32xf32> -> vector<8x32xf32>
    %cst_135 = arith.constant dense<0.000000e+00> : vector<8x32xf32>
    %254 = tpu.matmul %252, %26, %cst_135 {dimension_numbers = #tpu.dot_dimension_numbers<[1], [0], [0], [1], [0, 0, 1, 1], [], []>} : vector<8x32xf32>, vector<32x32xf32>, vector<8x32xf32> -> vector<8x32xf32>
    %255 = arith.addf %253, %254 : vector<8x32xf32>
    %256 = vector.broadcast %32 : vector<1x32xf32> to vector<8x32xf32>
    %257 = arith.addf %255, %256 : vector<8x32xf32>
    %258 = arith.negf %257 : vector<8x32xf32>
    %259 = math.exp %258 : vector<8x32xf32>
    %cst_136 = arith.constant 1.000000e+00 : f32
    %260 = vector.broadcast %cst_136 : f32 to vector<8x32xf32>
    %261 = arith.addf %260, %259 : vector<8x32xf32>
    %262 = arith.divf %260, %261 : vector<8x32xf32>
    %cst_137 = arith.constant dense<0.000000e+00> : vector<8x32xf32>
    %263 = tpu.matmul %252, %22, %cst_137 {dimension_numbers = #tpu.dot_dimension_numbers<[1], [0], [0], [1], [0, 0, 1, 1], [], []>} : vector<8x32xf32>, vector<32x32xf32>, vector<8x32xf32> -> vector<8x32xf32>
    %cst_138 = arith.constant dense<0.000000e+00> : vector<8x32xf32>
    %264 = tpu.matmul %252, %28, %cst_138 {dimension_numbers = #tpu.dot_dimension_numbers<[1], [0], [0], [1], [0, 0, 1, 1], [], []>} : vector<8x32xf32>, vector<32x32xf32>, vector<8x32xf32> -> vector<8x32xf32>
    %265 = arith.addf %263, %264 : vector<8x32xf32>
    %266 = vector.broadcast %34 : vector<1x32xf32> to vector<8x32xf32>
    %267 = arith.addf %265, %266 : vector<8x32xf32>
    %268 = arith.negf %267 : vector<8x32xf32>
    %269 = math.exp %268 : vector<8x32xf32>
    %cst_139 = arith.constant 1.000000e+00 : f32
    %270 = vector.broadcast %cst_139 : f32 to vector<8x32xf32>
    %271 = arith.addf %270, %269 : vector<8x32xf32>
    %272 = arith.divf %270, %271 : vector<8x32xf32>
    %cst_140 = arith.constant dense<0.000000e+00> : vector<8x32xf32>
    %273 = tpu.matmul %252, %24, %cst_140 {dimension_numbers = #tpu.dot_dimension_numbers<[1], [0], [0], [1], [0, 0, 1, 1], [], []>} : vector<8x32xf32>, vector<32x32xf32>, vector<8x32xf32> -> vector<8x32xf32>
    %274 = vector.broadcast %36 : vector<1x32xf32> to vector<8x32xf32>
    %275 = arith.addf %273, %274 : vector<8x32xf32>
    %cst_141 = arith.constant dense<0.000000e+00> : vector<8x32xf32>
    %276 = tpu.matmul %252, %30, %cst_141 {dimension_numbers = #tpu.dot_dimension_numbers<[1], [0], [0], [1], [0, 0, 1, 1], [], []>} : vector<8x32xf32>, vector<32x32xf32>, vector<8x32xf32> -> vector<8x32xf32>
    %277 = vector.broadcast %37 : vector<1x32xf32> to vector<8x32xf32>
    %278 = arith.addf %276, %277 : vector<8x32xf32>
    %279 = arith.mulf %262, %278 : vector<8x32xf32>
    %280 = arith.addf %275, %279 : vector<8x32xf32>
    %281 = math.tanh %280 : vector<8x32xf32>
    %cst_142 = arith.constant 1.000000e+00 : f32
    %282 = vector.broadcast %cst_142 : f32 to vector<8x32xf32>
    %283 = arith.subf %282, %272 : vector<8x32xf32>
    %284 = arith.mulf %283, %281 : vector<8x32xf32>
    %285 = arith.mulf %272, %252 : vector<8x32xf32>
    %286 = arith.addf %284, %285 : vector<8x32xf32>
    %c2_143 = arith.constant 2 : index
    %c0_144 = arith.constant 0 : index
    %c0_145 = arith.constant 0 : index
    %287 = vector.load %arg13[%c2_143, %c0_144, %c0_145] : memref<8x8x32xf32, #tpu.memory_space<vmem>>, vector<1x8x32xf32>
    %288 = vector.shape_cast %287 : vector<1x8x32xf32> to vector<8x32xf32>
    %289 = vector.shape_cast %286 : vector<8x32xf32> to vector<1x8x32xf32>
    tpu.vector_store %arg13[%c2_143, %c0_144, %c0_145], %289 {strides = array<i32>} : memref<8x8x32xf32, #tpu.memory_space<vmem>>, vector<1x8x32xf32>,
    %cst_146 = arith.constant dense<0.000000e+00> : vector<8x4xf32>
    %290 = tpu.matmul %286, %38, %cst_146 {dimension_numbers = #tpu.dot_dimension_numbers<[1], [0], [0], [1], [0, 0, 1, 1], [], []>} : vector<8x32xf32>, vector<32x4xf32>, vector<8x4xf32> -> vector<8x4xf32>
    %291 = vector.broadcast %39 : vector<1x4xf32> to vector<8x4xf32>
    %292 = arith.addf %290, %291 : vector<8x4xf32>
    %c3 = arith.constant 3 : index
    %c0_147 = arith.constant 0 : index
    %c0_148 = arith.constant 0 : index
    %293 = vector.load %arg2[%c3, %c0_147, %c0_148] : memref<8x8x4xf32, #tpu.memory_space<vmem>>, vector<1x8x4xf32>
    %294 = vector.shape_cast %293 : vector<1x8x4xf32> to vector<8x4xf32>
    %c3_149 = arith.constant 3 : index
    %c0_150 = arith.constant 0 : index
    %c0_151 = arith.constant 0 : index
    %295 = vector.load %arg1[%c3_149, %c0_150, %c0_151] : memref<8x8x4xf32, #tpu.memory_space<vmem>>, vector<1x8x4xf32>
    %296 = vector.shape_cast %295 : vector<1x8x4xf32> to vector<8x4xf32>
    %297 = arith.mulf %294, %296 : vector<8x4xf32>
    %cst_152 = arith.constant 1.000000e+00 : f32
    %298 = vector.broadcast %cst_152 : f32 to vector<8x4xf32>
    %299 = arith.subf %298, %294 : vector<8x4xf32>
    %300 = arith.mulf %299, %292 : vector<8x4xf32>
    %301 = arith.addf %297, %300 : vector<8x4xf32>
    %cst_153 = arith.constant dense<0.000000e+00> : vector<8x32xf32>
    %302 = tpu.matmul %301, %1, %cst_153 {dimension_numbers = #tpu.dot_dimension_numbers<[1], [0], [0], [1], [0, 0, 1, 1], [], []>} : vector<8x4xf32>, vector<4x32xf32>, vector<8x32xf32> -> vector<8x32xf32>
    %cst_154 = arith.constant dense<0.000000e+00> : vector<8x32xf32>
    %303 = tpu.matmul %286, %7, %cst_154 {dimension_numbers = #tpu.dot_dimension_numbers<[1], [0], [0], [1], [0, 0, 1, 1], [], []>} : vector<8x32xf32>, vector<32x32xf32>, vector<8x32xf32> -> vector<8x32xf32>
    %304 = arith.addf %302, %303 : vector<8x32xf32>
    %305 = vector.broadcast %13 : vector<1x32xf32> to vector<8x32xf32>
    %306 = arith.addf %304, %305 : vector<8x32xf32>
    %307 = arith.negf %306 : vector<8x32xf32>
    %308 = math.exp %307 : vector<8x32xf32>
    %cst_155 = arith.constant 1.000000e+00 : f32
    %309 = vector.broadcast %cst_155 : f32 to vector<8x32xf32>
    %310 = arith.addf %309, %308 : vector<8x32xf32>
    %311 = arith.divf %309, %310 : vector<8x32xf32>
    %cst_156 = arith.constant dense<0.000000e+00> : vector<8x32xf32>
    %312 = tpu.matmul %301, %3, %cst_156 {dimension_numbers = #tpu.dot_dimension_numbers<[1], [0], [0], [1], [0, 0, 1, 1], [], []>} : vector<8x4xf32>, vector<4x32xf32>, vector<8x32xf32> -> vector<8x32xf32>
    %cst_157 = arith.constant dense<0.000000e+00> : vector<8x32xf32>
    %313 = tpu.matmul %286, %9, %cst_157 {dimension_numbers = #tpu.dot_dimension_numbers<[1], [0], [0], [1], [0, 0, 1, 1], [], []>} : vector<8x32xf32>, vector<32x32xf32>, vector<8x32xf32> -> vector<8x32xf32>
    %314 = arith.addf %312, %313 : vector<8x32xf32>
    %315 = vector.broadcast %15 : vector<1x32xf32> to vector<8x32xf32>
    %316 = arith.addf %314, %315 : vector<8x32xf32>
    %317 = arith.negf %316 : vector<8x32xf32>
    %318 = math.exp %317 : vector<8x32xf32>
    %cst_158 = arith.constant 1.000000e+00 : f32
    %319 = vector.broadcast %cst_158 : f32 to vector<8x32xf32>
    %320 = arith.addf %319, %318 : vector<8x32xf32>
    %321 = arith.divf %319, %320 : vector<8x32xf32>
    %cst_159 = arith.constant dense<0.000000e+00> : vector<8x32xf32>
    %322 = tpu.matmul %301, %5, %cst_159 {dimension_numbers = #tpu.dot_dimension_numbers<[1], [0], [0], [1], [0, 0, 1, 1], [], []>} : vector<8x4xf32>, vector<4x32xf32>, vector<8x32xf32> -> vector<8x32xf32>
    %323 = vector.broadcast %17 : vector<1x32xf32> to vector<8x32xf32>
    %324 = arith.addf %322, %323 : vector<8x32xf32>
    %cst_160 = arith.constant dense<0.000000e+00> : vector<8x32xf32>
    %325 = tpu.matmul %286, %11, %cst_160 {dimension_numbers = #tpu.dot_dimension_numbers<[1], [0], [0], [1], [0, 0, 1, 1], [], []>} : vector<8x32xf32>, vector<32x32xf32>, vector<8x32xf32> -> vector<8x32xf32>
    %326 = vector.broadcast %18 : vector<1x32xf32> to vector<8x32xf32>
    %327 = arith.addf %325, %326 : vector<8x32xf32>
    %328 = arith.mulf %311, %327 : vector<8x32xf32>
    %329 = arith.addf %324, %328 : vector<8x32xf32>
    %330 = math.tanh %329 : vector<8x32xf32>
    %cst_161 = arith.constant 1.000000e+00 : f32
    %331 = vector.broadcast %cst_161 : f32 to vector<8x32xf32>
    %332 = arith.subf %331, %321 : vector<8x32xf32>
    %333 = arith.mulf %332, %330 : vector<8x32xf32>
    %334 = arith.mulf %321, %286 : vector<8x32xf32>
    %335 = arith.addf %333, %334 : vector<8x32xf32>
    %cst_162 = arith.constant dense<0.000000e+00> : vector<8x32xf32>
    %336 = tpu.matmul %335, %20, %cst_162 {dimension_numbers = #tpu.dot_dimension_numbers<[1], [0], [0], [1], [0, 0, 1, 1], [], []>} : vector<8x32xf32>, vector<32x32xf32>, vector<8x32xf32> -> vector<8x32xf32>
    %cst_163 = arith.constant dense<0.000000e+00> : vector<8x32xf32>
    %337 = tpu.matmul %335, %26, %cst_163 {dimension_numbers = #tpu.dot_dimension_numbers<[1], [0], [0], [1], [0, 0, 1, 1], [], []>} : vector<8x32xf32>, vector<32x32xf32>, vector<8x32xf32> -> vector<8x32xf32>
    %338 = arith.addf %336, %337 : vector<8x32xf32>
    %339 = vector.broadcast %32 : vector<1x32xf32> to vector<8x32xf32>
    %340 = arith.addf %338, %339 : vector<8x32xf32>
    %341 = arith.negf %340 : vector<8x32xf32>
    %342 = math.exp %341 : vector<8x32xf32>
    %cst_164 = arith.constant 1.000000e+00 : f32
    %343 = vector.broadcast %cst_164 : f32 to vector<8x32xf32>
    %344 = arith.addf %343, %342 : vector<8x32xf32>
    %345 = arith.divf %343, %344 : vector<8x32xf32>
    %cst_165 = arith.constant dense<0.000000e+00> : vector<8x32xf32>
    %346 = tpu.matmul %335, %22, %cst_165 {dimension_numbers = #tpu.dot_dimension_numbers<[1], [0], [0], [1], [0, 0, 1, 1], [], []>} : vector<8x32xf32>, vector<32x32xf32>, vector<8x32xf32> -> vector<8x32xf32>
    %cst_166 = arith.constant dense<0.000000e+00> : vector<8x32xf32>
    %347 = tpu.matmul %335, %28, %cst_166 {dimension_numbers = #tpu.dot_dimension_numbers<[1], [0], [0], [1], [0, 0, 1, 1], [], []>} : vector<8x32xf32>, vector<32x32xf32>, vector<8x32xf32> -> vector<8x32xf32>
    %348 = arith.addf %346, %347 : vector<8x32xf32>
    %349 = vector.broadcast %34 : vector<1x32xf32> to vector<8x32xf32>
    %350 = arith.addf %348, %349 : vector<8x32xf32>
    %351 = arith.negf %350 : vector<8x32xf32>
    %352 = math.exp %351 : vector<8x32xf32>
    %cst_167 = arith.constant 1.000000e+00 : f32
    %353 = vector.broadcast %cst_167 : f32 to vector<8x32xf32>
    %354 = arith.addf %353, %352 : vector<8x32xf32>
    %355 = arith.divf %353, %354 : vector<8x32xf32>
    %cst_168 = arith.constant dense<0.000000e+00> : vector<8x32xf32>
    %356 = tpu.matmul %335, %24, %cst_168 {dimension_numbers = #tpu.dot_dimension_numbers<[1], [0], [0], [1], [0, 0, 1, 1], [], []>} : vector<8x32xf32>, vector<32x32xf32>, vector<8x32xf32> -> vector<8x32xf32>
    %357 = vector.broadcast %36 : vector<1x32xf32> to vector<8x32xf32>
    %358 = arith.addf %356, %357 : vector<8x32xf32>
    %cst_169 = arith.constant dense<0.000000e+00> : vector<8x32xf32>
    %359 = tpu.matmul %335, %30, %cst_169 {dimension_numbers = #tpu.dot_dimension_numbers<[1], [0], [0], [1], [0, 0, 1, 1], [], []>} : vector<8x32xf32>, vector<32x32xf32>, vector<8x32xf32> -> vector<8x32xf32>
    %360 = vector.broadcast %37 : vector<1x32xf32> to vector<8x32xf32>
    %361 = arith.addf %359, %360 : vector<8x32xf32>
    %362 = arith.mulf %345, %361 : vector<8x32xf32>
    %363 = arith.addf %358, %362 : vector<8x32xf32>
    %364 = math.tanh %363 : vector<8x32xf32>
    %cst_170 = arith.constant 1.000000e+00 : f32
    %365 = vector.broadcast %cst_170 : f32 to vector<8x32xf32>
    %366 = arith.subf %365, %355 : vector<8x32xf32>
    %367 = arith.mulf %366, %364 : vector<8x32xf32>
    %368 = arith.mulf %355, %335 : vector<8x32xf32>
    %369 = arith.addf %367, %368 : vector<8x32xf32>
    %c3_171 = arith.constant 3 : index
    %c0_172 = arith.constant 0 : index
    %c0_173 = arith.constant 0 : index
    %370 = vector.load %arg13[%c3_171, %c0_172, %c0_173] : memref<8x8x32xf32, #tpu.memory_space<vmem>>, vector<1x8x32xf32>
    %371 = vector.shape_cast %370 : vector<1x8x32xf32> to vector<8x32xf32>
    %372 = vector.shape_cast %369 : vector<8x32xf32> to vector<1x8x32xf32>
    tpu.vector_store %arg13[%c3_171, %c0_172, %c0_173], %372 {strides = array<i32>} : memref<8x8x32xf32, #tpu.memory_space<vmem>>, vector<1x8x32xf32>,
    %cst_174 = arith.constant dense<0.000000e+00> : vector<8x4xf32>
    %373 = tpu.matmul %369, %38, %cst_174 {dimension_numbers = #tpu.dot_dimension_numbers<[1], [0], [0], [1], [0, 0, 1, 1], [], []>} : vector<8x32xf32>, vector<32x4xf32>, vector<8x4xf32> -> vector<8x4xf32>
    %374 = vector.broadcast %39 : vector<1x4xf32> to vector<8x4xf32>
    %375 = arith.addf %373, %374 : vector<8x4xf32>
    %c4 = arith.constant 4 : index
    %c0_175 = arith.constant 0 : index
    %c0_176 = arith.constant 0 : index
    %376 = vector.load %arg2[%c4, %c0_175, %c0_176] : memref<8x8x4xf32, #tpu.memory_space<vmem>>, vector<1x8x4xf32>
    %377 = vector.shape_cast %376 : vector<1x8x4xf32> to vector<8x4xf32>
    %c4_177 = arith.constant 4 : index
    %c0_178 = arith.constant 0 : index
    %c0_179 = arith.constant 0 : index
    %378 = vector.load %arg1[%c4_177, %c0_178, %c0_179] : memref<8x8x4xf32, #tpu.memory_space<vmem>>, vector<1x8x4xf32>
    %379 = vector.shape_cast %378 : vector<1x8x4xf32> to vector<8x4xf32>
    %380 = arith.mulf %377, %379 : vector<8x4xf32>
    %cst_180 = arith.constant 1.000000e+00 : f32
    %381 = vector.broadcast %cst_180 : f32 to vector<8x4xf32>
    %382 = arith.subf %381, %377 : vector<8x4xf32>
    %383 = arith.mulf %382, %375 : vector<8x4xf32>
    %384 = arith.addf %380, %383 : vector<8x4xf32>
    %cst_181 = arith.constant dense<0.000000e+00> : vector<8x32xf32>
    %385 = tpu.matmul %384, %1, %cst_181 {dimension_numbers = #tpu.dot_dimension_numbers<[1], [0], [0], [1], [0, 0, 1, 1], [], []>} : vector<8x4xf32>, vector<4x32xf32>, vector<8x32xf32> -> vector<8x32xf32>
    %cst_182 = arith.constant dense<0.000000e+00> : vector<8x32xf32>
    %386 = tpu.matmul %369, %7, %cst_182 {dimension_numbers = #tpu.dot_dimension_numbers<[1], [0], [0], [1], [0, 0, 1, 1], [], []>} : vector<8x32xf32>, vector<32x32xf32>, vector<8x32xf32> -> vector<8x32xf32>
    %387 = arith.addf %385, %386 : vector<8x32xf32>
    %388 = vector.broadcast %13 : vector<1x32xf32> to vector<8x32xf32>
    %389 = arith.addf %387, %388 : vector<8x32xf32>
    %390 = arith.negf %389 : vector<8x32xf32>
    %391 = math.exp %390 : vector<8x32xf32>
    %cst_183 = arith.constant 1.000000e+00 : f32
    %392 = vector.broadcast %cst_183 : f32 to vector<8x32xf32>
    %393 = arith.addf %392, %391 : vector<8x32xf32>
    %394 = arith.divf %392, %393 : vector<8x32xf32>
    %cst_184 = arith.constant dense<0.000000e+00> : vector<8x32xf32>
    %395 = tpu.matmul %384, %3, %cst_184 {dimension_numbers = #tpu.dot_dimension_numbers<[1], [0], [0], [1], [0, 0, 1, 1], [], []>} : vector<8x4xf32>, vector<4x32xf32>, vector<8x32xf32> -> vector<8x32xf32>
    %cst_185 = arith.constant dense<0.000000e+00> : vector<8x32xf32>
    %396 = tpu.matmul %369, %9, %cst_185 {dimension_numbers = #tpu.dot_dimension_numbers<[1], [0], [0], [1], [0, 0, 1, 1], [], []>} : vector<8x32xf32>, vector<32x32xf32>, vector<8x32xf32> -> vector<8x32xf32>
    %397 = arith.addf %395, %396 : vector<8x32xf32>
    %398 = vector.broadcast %15 : vector<1x32xf32> to vector<8x32xf32>
    %399 = arith.addf %397, %398 : vector<8x32xf32>
    %400 = arith.negf %399 : vector<8x32xf32>
    %401 = math.exp %400 : vector<8x32xf32>
    %cst_186 = arith.constant 1.000000e+00 : f32
    %402 = vector.broadcast %cst_186 : f32 to vector<8x32xf32>
    %403 = arith.addf %402, %401 : vector<8x32xf32>
    %404 = arith.divf %402, %403 : vector<8x32xf32>
    %cst_187 = arith.constant dense<0.000000e+00> : vector<8x32xf32>
    %405 = tpu.matmul %384, %5, %cst_187 {dimension_numbers = #tpu.dot_dimension_numbers<[1], [0], [0], [1], [0, 0, 1, 1], [], []>} : vector<8x4xf32>, vector<4x32xf32>, vector<8x32xf32> -> vector<8x32xf32>
    %406 = vector.broadcast %17 : vector<1x32xf32> to vector<8x32xf32>
    %407 = arith.addf %405, %406 : vector<8x32xf32>
    %cst_188 = arith.constant dense<0.000000e+00> : vector<8x32xf32>
    %408 = tpu.matmul %369, %11, %cst_188 {dimension_numbers = #tpu.dot_dimension_numbers<[1], [0], [0], [1], [0, 0, 1, 1], [], []>} : vector<8x32xf32>, vector<32x32xf32>, vector<8x32xf32> -> vector<8x32xf32>
    %409 = vector.broadcast %18 : vector<1x32xf32> to vector<8x32xf32>
    %410 = arith.addf %408, %409 : vector<8x32xf32>
    %411 = arith.mulf %394, %410 : vector<8x32xf32>
    %412 = arith.addf %407, %411 : vector<8x32xf32>
    %413 = math.tanh %412 : vector<8x32xf32>
    %cst_189 = arith.constant 1.000000e+00 : f32
    %414 = vector.broadcast %cst_189 : f32 to vector<8x32xf32>
    %415 = arith.subf %414, %404 : vector<8x32xf32>
    %416 = arith.mulf %415, %413 : vector<8x32xf32>
    %417 = arith.mulf %404, %369 : vector<8x32xf32>
    %418 = arith.addf %416, %417 : vector<8x32xf32>
    %cst_190 = arith.constant dense<0.000000e+00> : vector<8x32xf32>
    %419 = tpu.matmul %418, %20, %cst_190 {dimension_numbers = #tpu.dot_dimension_numbers<[1], [0], [0], [1], [0, 0, 1, 1], [], []>} : vector<8x32xf32>, vector<32x32xf32>, vector<8x32xf32> -> vector<8x32xf32>
    %cst_191 = arith.constant dense<0.000000e+00> : vector<8x32xf32>
    %420 = tpu.matmul %418, %26, %cst_191 {dimension_numbers = #tpu.dot_dimension_numbers<[1], [0], [0], [1], [0, 0, 1, 1], [], []>} : vector<8x32xf32>, vector<32x32xf32>, vector<8x32xf32> -> vector<8x32xf32>
    %421 = arith.addf %419, %420 : vector<8x32xf32>
    %422 = vector.broadcast %32 : vector<1x32xf32> to vector<8x32xf32>
    %423 = arith.addf %421, %422 : vector<8x32xf32>
    %424 = arith.negf %423 : vector<8x32xf32>
    %425 = math.exp %424 : vector<8x32xf32>
    %cst_192 = arith.constant 1.000000e+00 : f32
    %426 = vector.broadcast %cst_192 : f32 to vector<8x32xf32>
    %427 = arith.addf %426, %425 : vector<8x32xf32>
    %428 = arith.divf %426, %427 : vector<8x32xf32>
    %cst_193 = arith.constant dense<0.000000e+00> : vector<8x32xf32>
    %429 = tpu.matmul %418, %22, %cst_193 {dimension_numbers = #tpu.dot_dimension_numbers<[1], [0], [0], [1], [0, 0, 1, 1], [], []>} : vector<8x32xf32>, vector<32x32xf32>, vector<8x32xf32> -> vector<8x32xf32>
    %cst_194 = arith.constant dense<0.000000e+00> : vector<8x32xf32>
    %430 = tpu.matmul %418, %28, %cst_194 {dimension_numbers = #tpu.dot_dimension_numbers<[1], [0], [0], [1], [0, 0, 1, 1], [], []>} : vector<8x32xf32>, vector<32x32xf32>, vector<8x32xf32> -> vector<8x32xf32>
    %431 = arith.addf %429, %430 : vector<8x32xf32>
    %432 = vector.broadcast %34 : vector<1x32xf32> to vector<8x32xf32>
    %433 = arith.addf %431, %432 : vector<8x32xf32>
    %434 = arith.negf %433 : vector<8x32xf32>
    %435 = math.exp %434 : vector<8x32xf32>
    %cst_195 = arith.constant 1.000000e+00 : f32
    %436 = vector.broadcast %cst_195 : f32 to vector<8x32xf32>
    %437 = arith.addf %436, %435 : vector<8x32xf32>
    %438 = arith.divf %436, %437 : vector<8x32xf32>
    %cst_196 = arith.constant dense<0.000000e+00> : vector<8x32xf32>
    %439 = tpu.matmul %418, %24, %cst_196 {dimension_numbers = #tpu.dot_dimension_numbers<[1], [0], [0], [1], [0, 0, 1, 1], [], []>} : vector<8x32xf32>, vector<32x32xf32>, vector<8x32xf32> -> vector<8x32xf32>
    %440 = vector.broadcast %36 : vector<1x32xf32> to vector<8x32xf32>
    %441 = arith.addf %439, %440 : vector<8x32xf32>
    %cst_197 = arith.constant dense<0.000000e+00> : vector<8x32xf32>
    %442 = tpu.matmul %418, %30, %cst_197 {dimension_numbers = #tpu.dot_dimension_numbers<[1], [0], [0], [1], [0, 0, 1, 1], [], []>} : vector<8x32xf32>, vector<32x32xf32>, vector<8x32xf32> -> vector<8x32xf32>
    %443 = vector.broadcast %37 : vector<1x32xf32> to vector<8x32xf32>
    %444 = arith.addf %442, %443 : vector<8x32xf32>
    %445 = arith.mulf %428, %444 : vector<8x32xf32>
    %446 = arith.addf %441, %445 : vector<8x32xf32>
    %447 = math.tanh %446 : vector<8x32xf32>
    %cst_198 = arith.constant 1.000000e+00 : f32
    %448 = vector.broadcast %cst_198 : f32 to vector<8x32xf32>
    %449 = arith.subf %448, %438 : vector<8x32xf32>
    %450 = arith.mulf %449, %447 : vector<8x32xf32>
    %451 = arith.mulf %438, %418 : vector<8x32xf32>
    %452 = arith.addf %450, %451 : vector<8x32xf32>
    %c4_199 = arith.constant 4 : index
    %c0_200 = arith.constant 0 : index
    %c0_201 = arith.constant 0 : index
    %453 = vector.load %arg13[%c4_199, %c0_200, %c0_201] : memref<8x8x32xf32, #tpu.memory_space<vmem>>, vector<1x8x32xf32>
    %454 = vector.shape_cast %453 : vector<1x8x32xf32> to vector<8x32xf32>
    %455 = vector.shape_cast %452 : vector<8x32xf32> to vector<1x8x32xf32>
    tpu.vector_store %arg13[%c4_199, %c0_200, %c0_201], %455 {strides = array<i32>} : memref<8x8x32xf32, #tpu.memory_space<vmem>>, vector<1x8x32xf32>,
    %cst_202 = arith.constant dense<0.000000e+00> : vector<8x4xf32>
    %456 = tpu.matmul %452, %38, %cst_202 {dimension_numbers = #tpu.dot_dimension_numbers<[1], [0], [0], [1], [0, 0, 1, 1], [], []>} : vector<8x32xf32>, vector<32x4xf32>, vector<8x4xf32> -> vector<8x4xf32>
    %457 = vector.broadcast %39 : vector<1x4xf32> to vector<8x4xf32>
    %458 = arith.addf %456, %457 : vector<8x4xf32>
    %c5 = arith.constant 5 : index
    %c0_203 = arith.constant 0 : index
    %c0_204 = arith.constant 0 : index
    %459 = vector.load %arg2[%c5, %c0_203, %c0_204] : memref<8x8x4xf32, #tpu.memory_space<vmem>>, vector<1x8x4xf32>
    %460 = vector.shape_cast %459 : vector<1x8x4xf32> to vector<8x4xf32>
    %c5_205 = arith.constant 5 : index
    %c0_206 = arith.constant 0 : index
    %c0_207 = arith.constant 0 : index
    %461 = vector.load %arg1[%c5_205, %c0_206, %c0_207] : memref<8x8x4xf32, #tpu.memory_space<vmem>>, vector<1x8x4xf32>
    %462 = vector.shape_cast %461 : vector<1x8x4xf32> to vector<8x4xf32>
    %463 = arith.mulf %460, %462 : vector<8x4xf32>
    %cst_208 = arith.constant 1.000000e+00 : f32
    %464 = vector.broadcast %cst_208 : f32 to vector<8x4xf32>
    %465 = arith.subf %464, %460 : vector<8x4xf32>
    %466 = arith.mulf %465, %458 : vector<8x4xf32>
    %467 = arith.addf %463, %466 : vector<8x4xf32>
    %cst_209 = arith.constant dense<0.000000e+00> : vector<8x32xf32>
    %468 = tpu.matmul %467, %1, %cst_209 {dimension_numbers = #tpu.dot_dimension_numbers<[1], [0], [0], [1], [0, 0, 1, 1], [], []>} : vector<8x4xf32>, vector<4x32xf32>, vector<8x32xf32> -> vector<8x32xf32>
    %cst_210 = arith.constant dense<0.000000e+00> : vector<8x32xf32>
    %469 = tpu.matmul %452, %7, %cst_210 {dimension_numbers = #tpu.dot_dimension_numbers<[1], [0], [0], [1], [0, 0, 1, 1], [], []>} : vector<8x32xf32>, vector<32x32xf32>, vector<8x32xf32> -> vector<8x32xf32>
    %470 = arith.addf %468, %469 : vector<8x32xf32>
    %471 = vector.broadcast %13 : vector<1x32xf32> to vector<8x32xf32>
    %472 = arith.addf %470, %471 : vector<8x32xf32>
    %473 = arith.negf %472 : vector<8x32xf32>
    %474 = math.exp %473 : vector<8x32xf32>
    %cst_211 = arith.constant 1.000000e+00 : f32
    %475 = vector.broadcast %cst_211 : f32 to vector<8x32xf32>
    %476 = arith.addf %475, %474 : vector<8x32xf32>
    %477 = arith.divf %475, %476 : vector<8x32xf32>
    %cst_212 = arith.constant dense<0.000000e+00> : vector<8x32xf32>
    %478 = tpu.matmul %467, %3, %cst_212 {dimension_numbers = #tpu.dot_dimension_numbers<[1], [0], [0], [1], [0, 0, 1, 1], [], []>} : vector<8x4xf32>, vector<4x32xf32>, vector<8x32xf32> -> vector<8x32xf32>
    %cst_213 = arith.constant dense<0.000000e+00> : vector<8x32xf32>
    %479 = tpu.matmul %452, %9, %cst_213 {dimension_numbers = #tpu.dot_dimension_numbers<[1], [0], [0], [1], [0, 0, 1, 1], [], []>} : vector<8x32xf32>, vector<32x32xf32>, vector<8x32xf32> -> vector<8x32xf32>
    %480 = arith.addf %478, %479 : vector<8x32xf32>
    %481 = vector.broadcast %15 : vector<1x32xf32> to vector<8x32xf32>
    %482 = arith.addf %480, %481 : vector<8x32xf32>
    %483 = arith.negf %482 : vector<8x32xf32>
    %484 = math.exp %483 : vector<8x32xf32>
    %cst_214 = arith.constant 1.000000e+00 : f32
    %485 = vector.broadcast %cst_214 : f32 to vector<8x32xf32>
    %486 = arith.addf %485, %484 : vector<8x32xf32>
    %487 = arith.divf %485, %486 : vector<8x32xf32>
    %cst_215 = arith.constant dense<0.000000e+00> : vector<8x32xf32>
    %488 = tpu.matmul %467, %5, %cst_215 {dimension_numbers = #tpu.dot_dimension_numbers<[1], [0], [0], [1], [0, 0, 1, 1], [], []>} : vector<8x4xf32>, vector<4x32xf32>, vector<8x32xf32> -> vector<8x32xf32>
    %489 = vector.broadcast %17 : vector<1x32xf32> to vector<8x32xf32>
    %490 = arith.addf %488, %489 : vector<8x32xf32>
    %cst_216 = arith.constant dense<0.000000e+00> : vector<8x32xf32>
    %491 = tpu.matmul %452, %11, %cst_216 {dimension_numbers = #tpu.dot_dimension_numbers<[1], [0], [0], [1], [0, 0, 1, 1], [], []>} : vector<8x32xf32>, vector<32x32xf32>, vector<8x32xf32> -> vector<8x32xf32>
    %492 = vector.broadcast %18 : vector<1x32xf32> to vector<8x32xf32>
    %493 = arith.addf %491, %492 : vector<8x32xf32>
    %494 = arith.mulf %477, %493 : vector<8x32xf32>
    %495 = arith.addf %490, %494 : vector<8x32xf32>
    %496 = math.tanh %495 : vector<8x32xf32>
    %cst_217 = arith.constant 1.000000e+00 : f32
    %497 = vector.broadcast %cst_217 : f32 to vector<8x32xf32>
    %498 = arith.subf %497, %487 : vector<8x32xf32>
    %499 = arith.mulf %498, %496 : vector<8x32xf32>
    %500 = arith.mulf %487, %452 : vector<8x32xf32>
    %501 = arith.addf %499, %500 : vector<8x32xf32>
    %cst_218 = arith.constant dense<0.000000e+00> : vector<8x32xf32>
    %502 = tpu.matmul %501, %20, %cst_218 {dimension_numbers = #tpu.dot_dimension_numbers<[1], [0], [0], [1], [0, 0, 1, 1], [], []>} : vector<8x32xf32>, vector<32x32xf32>, vector<8x32xf32> -> vector<8x32xf32>
    %cst_219 = arith.constant dense<0.000000e+00> : vector<8x32xf32>
    %503 = tpu.matmul %501, %26, %cst_219 {dimension_numbers = #tpu.dot_dimension_numbers<[1], [0], [0], [1], [0, 0, 1, 1], [], []>} : vector<8x32xf32>, vector<32x32xf32>, vector<8x32xf32> -> vector<8x32xf32>
    %504 = arith.addf %502, %503 : vector<8x32xf32>
    %505 = vector.broadcast %32 : vector<1x32xf32> to vector<8x32xf32>
    %506 = arith.addf %504, %505 : vector<8x32xf32>
    %507 = arith.negf %506 : vector<8x32xf32>
    %508 = math.exp %507 : vector<8x32xf32>
    %cst_220 = arith.constant 1.000000e+00 : f32
    %509 = vector.broadcast %cst_220 : f32 to vector<8x32xf32>
    %510 = arith.addf %509, %508 : vector<8x32xf32>
    %511 = arith.divf %509, %510 : vector<8x32xf32>
    %cst_221 = arith.constant dense<0.000000e+00> : vector<8x32xf32>
    %512 = tpu.matmul %501, %22, %cst_221 {dimension_numbers = #tpu.dot_dimension_numbers<[1], [0], [0], [1], [0, 0, 1, 1], [], []>} : vector<8x32xf32>, vector<32x32xf32>, vector<8x32xf32> -> vector<8x32xf32>
    %cst_222 = arith.constant dense<0.000000e+00> : vector<8x32xf32>
    %513 = tpu.matmul %501, %28, %cst_222 {dimension_numbers = #tpu.dot_dimension_numbers<[1], [0], [0], [1], [0, 0, 1, 1], [], []>} : vector<8x32xf32>, vector<32x32xf32>, vector<8x32xf32> -> vector<8x32xf32>
    %514 = arith.addf %512, %513 : vector<8x32xf32>
    %515 = vector.broadcast %34 : vector<1x32xf32> to vector<8x32xf32>
    %516 = arith.addf %514, %515 : vector<8x32xf32>
    %517 = arith.negf %516 : vector<8x32xf32>
    %518 = math.exp %517 : vector<8x32xf32>
    %cst_223 = arith.constant 1.000000e+00 : f32
    %519 = vector.broadcast %cst_223 : f32 to vector<8x32xf32>
    %520 = arith.addf %519, %518 : vector<8x32xf32>
    %521 = arith.divf %519, %520 : vector<8x32xf32>
    %cst_224 = arith.constant dense<0.000000e+00> : vector<8x32xf32>
    %522 = tpu.matmul %501, %24, %cst_224 {dimension_numbers = #tpu.dot_dimension_numbers<[1], [0], [0], [1], [0, 0, 1, 1], [], []>} : vector<8x32xf32>, vector<32x32xf32>, vector<8x32xf32> -> vector<8x32xf32>
    %523 = vector.broadcast %36 : vector<1x32xf32> to vector<8x32xf32>
    %524 = arith.addf %522, %523 : vector<8x32xf32>
    %cst_225 = arith.constant dense<0.000000e+00> : vector<8x32xf32>
    %525 = tpu.matmul %501, %30, %cst_225 {dimension_numbers = #tpu.dot_dimension_numbers<[1], [0], [0], [1], [0, 0, 1, 1], [], []>} : vector<8x32xf32>, vector<32x32xf32>, vector<8x32xf32> -> vector<8x32xf32>
    %526 = vector.broadcast %37 : vector<1x32xf32> to vector<8x32xf32>
    %527 = arith.addf %525, %526 : vector<8x32xf32>
    %528 = arith.mulf %511, %527 : vector<8x32xf32>
    %529 = arith.addf %524, %528 : vector<8x32xf32>
    %530 = math.tanh %529 : vector<8x32xf32>
    %cst_226 = arith.constant 1.000000e+00 : f32
    %531 = vector.broadcast %cst_226 : f32 to vector<8x32xf32>
    %532 = arith.subf %531, %521 : vector<8x32xf32>
    %533 = arith.mulf %532, %530 : vector<8x32xf32>
    %534 = arith.mulf %521, %501 : vector<8x32xf32>
    %535 = arith.addf %533, %534 : vector<8x32xf32>
    %c5_227 = arith.constant 5 : index
    %c0_228 = arith.constant 0 : index
    %c0_229 = arith.constant 0 : index
    %536 = vector.load %arg13[%c5_227, %c0_228, %c0_229] : memref<8x8x32xf32, #tpu.memory_space<vmem>>, vector<1x8x32xf32>
    %537 = vector.shape_cast %536 : vector<1x8x32xf32> to vector<8x32xf32>
    %538 = vector.shape_cast %535 : vector<8x32xf32> to vector<1x8x32xf32>
    tpu.vector_store %arg13[%c5_227, %c0_228, %c0_229], %538 {strides = array<i32>} : memref<8x8x32xf32, #tpu.memory_space<vmem>>, vector<1x8x32xf32>,
    %cst_230 = arith.constant dense<0.000000e+00> : vector<8x4xf32>
    %539 = tpu.matmul %535, %38, %cst_230 {dimension_numbers = #tpu.dot_dimension_numbers<[1], [0], [0], [1], [0, 0, 1, 1], [], []>} : vector<8x32xf32>, vector<32x4xf32>, vector<8x4xf32> -> vector<8x4xf32>
    %540 = vector.broadcast %39 : vector<1x4xf32> to vector<8x4xf32>
    %541 = arith.addf %539, %540 : vector<8x4xf32>
    %c6 = arith.constant 6 : index
    %c0_231 = arith.constant 0 : index
    %c0_232 = arith.constant 0 : index
    %542 = vector.load %arg2[%c6, %c0_231, %c0_232] : memref<8x8x4xf32, #tpu.memory_space<vmem>>, vector<1x8x4xf32>
    %543 = vector.shape_cast %542 : vector<1x8x4xf32> to vector<8x4xf32>
    %c6_233 = arith.constant 6 : index
    %c0_234 = arith.constant 0 : index
    %c0_235 = arith.constant 0 : index
    %544 = vector.load %arg1[%c6_233, %c0_234, %c0_235] : memref<8x8x4xf32, #tpu.memory_space<vmem>>, vector<1x8x4xf32>
    %545 = vector.shape_cast %544 : vector<1x8x4xf32> to vector<8x4xf32>
    %546 = arith.mulf %543, %545 : vector<8x4xf32>
    %cst_236 = arith.constant 1.000000e+00 : f32
    %547 = vector.broadcast %cst_236 : f32 to vector<8x4xf32>
    %548 = arith.subf %547, %543 : vector<8x4xf32>
    %549 = arith.mulf %548, %541 : vector<8x4xf32>
    %550 = arith.addf %546, %549 : vector<8x4xf32>
    %cst_237 = arith.constant dense<0.000000e+00> : vector<8x32xf32>
    %551 = tpu.matmul %550, %1, %cst_237 {dimension_numbers = #tpu.dot_dimension_numbers<[1], [0], [0], [1], [0, 0, 1, 1], [], []>} : vector<8x4xf32>, vector<4x32xf32>, vector<8x32xf32> -> vector<8x32xf32>
    %cst_238 = arith.constant dense<0.000000e+00> : vector<8x32xf32>
    %552 = tpu.matmul %535, %7, %cst_238 {dimension_numbers = #tpu.dot_dimension_numbers<[1], [0], [0], [1], [0, 0, 1, 1], [], []>} : vector<8x32xf32>, vector<32x32xf32>, vector<8x32xf32> -> vector<8x32xf32>
    %553 = arith.addf %551, %552 : vector<8x32xf32>
    %554 = vector.broadcast %13 : vector<1x32xf32> to vector<8x32xf32>
    %555 = arith.addf %553, %554 : vector<8x32xf32>
    %556 = arith.negf %555 : vector<8x32xf32>
    %557 = math.exp %556 : vector<8x32xf32>
    %cst_239 = arith.constant 1.000000e+00 : f32
    %558 = vector.broadcast %cst_239 : f32 to vector<8x32xf32>
    %559 = arith.addf %558, %557 : vector<8x32xf32>
    %560 = arith.divf %558, %559 : vector<8x32xf32>
    %cst_240 = arith.constant dense<0.000000e+00> : vector<8x32xf32>
    %561 = tpu.matmul %550, %3, %cst_240 {dimension_numbers = #tpu.dot_dimension_numbers<[1], [0], [0], [1], [0, 0, 1, 1], [], []>} : vector<8x4xf32>, vector<4x32xf32>, vector<8x32xf32> -> vector<8x32xf32>
    %cst_241 = arith.constant dense<0.000000e+00> : vector<8x32xf32>
    %562 = tpu.matmul %535, %9, %cst_241 {dimension_numbers = #tpu.dot_dimension_numbers<[1], [0], [0], [1], [0, 0, 1, 1], [], []>} : vector<8x32xf32>, vector<32x32xf32>, vector<8x32xf32> -> vector<8x32xf32>
    %563 = arith.addf %561, %562 : vector<8x32xf32>
    %564 = vector.broadcast %15 : vector<1x32xf32> to vector<8x32xf32>
    %565 = arith.addf %563, %564 : vector<8x32xf32>
    %566 = arith.negf %565 : vector<8x32xf32>
    %567 = math.exp %566 : vector<8x32xf32>
    %cst_242 = arith.constant 1.000000e+00 : f32
    %568 = vector.broadcast %cst_242 : f32 to vector<8x32xf32>
    %569 = arith.addf %568, %567 : vector<8x32xf32>
    %570 = arith.divf %568, %569 : vector<8x32xf32>
    %cst_243 = arith.constant dense<0.000000e+00> : vector<8x32xf32>
    %571 = tpu.matmul %550, %5, %cst_243 {dimension_numbers = #tpu.dot_dimension_numbers<[1], [0], [0], [1], [0, 0, 1, 1], [], []>} : vector<8x4xf32>, vector<4x32xf32>, vector<8x32xf32> -> vector<8x32xf32>
    %572 = vector.broadcast %17 : vector<1x32xf32> to vector<8x32xf32>
    %573 = arith.addf %571, %572 : vector<8x32xf32>
    %cst_244 = arith.constant dense<0.000000e+00> : vector<8x32xf32>
    %574 = tpu.matmul %535, %11, %cst_244 {dimension_numbers = #tpu.dot_dimension_numbers<[1], [0], [0], [1], [0, 0, 1, 1], [], []>} : vector<8x32xf32>, vector<32x32xf32>, vector<8x32xf32> -> vector<8x32xf32>
    %575 = vector.broadcast %18 : vector<1x32xf32> to vector<8x32xf32>
    %576 = arith.addf %574, %575 : vector<8x32xf32>
    %577 = arith.mulf %560, %576 : vector<8x32xf32>
    %578 = arith.addf %573, %577 : vector<8x32xf32>
    %579 = math.tanh %578 : vector<8x32xf32>
    %cst_245 = arith.constant 1.000000e+00 : f32
    %580 = vector.broadcast %cst_245 : f32 to vector<8x32xf32>
    %581 = arith.subf %580, %570 : vector<8x32xf32>
    %582 = arith.mulf %581, %579 : vector<8x32xf32>
    %583 = arith.mulf %570, %535 : vector<8x32xf32>
    %584 = arith.addf %582, %583 : vector<8x32xf32>
    %cst_246 = arith.constant dense<0.000000e+00> : vector<8x32xf32>
    %585 = tpu.matmul %584, %20, %cst_246 {dimension_numbers = #tpu.dot_dimension_numbers<[1], [0], [0], [1], [0, 0, 1, 1], [], []>} : vector<8x32xf32>, vector<32x32xf32>, vector<8x32xf32> -> vector<8x32xf32>
    %cst_247 = arith.constant dense<0.000000e+00> : vector<8x32xf32>
    %586 = tpu.matmul %584, %26, %cst_247 {dimension_numbers = #tpu.dot_dimension_numbers<[1], [0], [0], [1], [0, 0, 1, 1], [], []>} : vector<8x32xf32>, vector<32x32xf32>, vector<8x32xf32> -> vector<8x32xf32>
    %587 = arith.addf %585, %586 : vector<8x32xf32>
    %588 = vector.broadcast %32 : vector<1x32xf32> to vector<8x32xf32>
    %589 = arith.addf %587, %588 : vector<8x32xf32>
    %590 = arith.negf %589 : vector<8x32xf32>
    %591 = math.exp %590 : vector<8x32xf32>
    %cst_248 = arith.constant 1.000000e+00 : f32
    %592 = vector.broadcast %cst_248 : f32 to vector<8x32xf32>
    %593 = arith.addf %592, %591 : vector<8x32xf32>
    %594 = arith.divf %592, %593 : vector<8x32xf32>
    %cst_249 = arith.constant dense<0.000000e+00> : vector<8x32xf32>
    %595 = tpu.matmul %584, %22, %cst_249 {dimension_numbers = #tpu.dot_dimension_numbers<[1], [0], [0], [1], [0, 0, 1, 1], [], []>} : vector<8x32xf32>, vector<32x32xf32>, vector<8x32xf32> -> vector<8x32xf32>
    %cst_250 = arith.constant dense<0.000000e+00> : vector<8x32xf32>
    %596 = tpu.matmul %584, %28, %cst_250 {dimension_numbers = #tpu.dot_dimension_numbers<[1], [0], [0], [1], [0, 0, 1, 1], [], []>} : vector<8x32xf32>, vector<32x32xf32>, vector<8x32xf32> -> vector<8x32xf32>
    %597 = arith.addf %595, %596 : vector<8x32xf32>
    %598 = vector.broadcast %34 : vector<1x32xf32> to vector<8x32xf32>
    %599 = arith.addf %597, %598 : vector<8x32xf32>
    %600 = arith.negf %599 : vector<8x32xf32>
    %601 = math.exp %600 : vector<8x32xf32>
    %cst_251 = arith.constant 1.000000e+00 : f32
    %602 = vector.broadcast %cst_251 : f32 to vector<8x32xf32>
    %603 = arith.addf %602, %601 : vector<8x32xf32>
    %604 = arith.divf %602, %603 : vector<8x32xf32>
    %cst_252 = arith.constant dense<0.000000e+00> : vector<8x32xf32>
    %605 = tpu.matmul %584, %24, %cst_252 {dimension_numbers = #tpu.dot_dimension_numbers<[1], [0], [0], [1], [0, 0, 1, 1], [], []>} : vector<8x32xf32>, vector<32x32xf32>, vector<8x32xf32> -> vector<8x32xf32>
    %606 = vector.broadcast %36 : vector<1x32xf32> to vector<8x32xf32>
    %607 = arith.addf %605, %606 : vector<8x32xf32>
    %cst_253 = arith.constant dense<0.000000e+00> : vector<8x32xf32>
    %608 = tpu.matmul %584, %30, %cst_253 {dimension_numbers = #tpu.dot_dimension_numbers<[1], [0], [0], [1], [0, 0, 1, 1], [], []>} : vector<8x32xf32>, vector<32x32xf32>, vector<8x32xf32> -> vector<8x32xf32>
    %609 = vector.broadcast %37 : vector<1x32xf32> to vector<8x32xf32>
    %610 = arith.addf %608, %609 : vector<8x32xf32>
    %611 = arith.mulf %594, %610 : vector<8x32xf32>
    %612 = arith.addf %607, %611 : vector<8x32xf32>
    %613 = math.tanh %612 : vector<8x32xf32>
    %cst_254 = arith.constant 1.000000e+00 : f32
    %614 = vector.broadcast %cst_254 : f32 to vector<8x32xf32>
    %615 = arith.subf %614, %604 : vector<8x32xf32>
    %616 = arith.mulf %615, %613 : vector<8x32xf32>
    %617 = arith.mulf %604, %584 : vector<8x32xf32>
    %618 = arith.addf %616, %617 : vector<8x32xf32>
    %c6_255 = arith.constant 6 : index
    %c0_256 = arith.constant 0 : index
    %c0_257 = arith.constant 0 : index
    %619 = vector.load %arg13[%c6_255, %c0_256, %c0_257] : memref<8x8x32xf32, #tpu.memory_space<vmem>>, vector<1x8x32xf32>
    %620 = vector.shape_cast %619 : vector<1x8x32xf32> to vector<8x32xf32>
    %621 = vector.shape_cast %618 : vector<8x32xf32> to vector<1x8x32xf32>
    tpu.vector_store %arg13[%c6_255, %c0_256, %c0_257], %621 {strides = array<i32>} : memref<8x8x32xf32, #tpu.memory_space<vmem>>, vector<1x8x32xf32>,
    %cst_258 = arith.constant dense<0.000000e+00> : vector<8x4xf32>
    %622 = tpu.matmul %618, %38, %cst_258 {dimension_numbers = #tpu.dot_dimension_numbers<[1], [0], [0], [1], [0, 0, 1, 1], [], []>} : vector<8x32xf32>, vector<32x4xf32>, vector<8x4xf32> -> vector<8x4xf32>
    %623 = vector.broadcast %39 : vector<1x4xf32> to vector<8x4xf32>
    %624 = arith.addf %622, %623 : vector<8x4xf32>
    %c7 = arith.constant 7 : index
    %c0_259 = arith.constant 0 : index
    %c0_260 = arith.constant 0 : index
    %625 = vector.load %arg2[%c7, %c0_259, %c0_260] : memref<8x8x4xf32, #tpu.memory_space<vmem>>, vector<1x8x4xf32>
    %626 = vector.shape_cast %625 : vector<1x8x4xf32> to vector<8x4xf32>
    %c7_261 = arith.constant 7 : index
    %c0_262 = arith.constant 0 : index
    %c0_263 = arith.constant 0 : index
    %627 = vector.load %arg1[%c7_261, %c0_262, %c0_263] : memref<8x8x4xf32, #tpu.memory_space<vmem>>, vector<1x8x4xf32>
    %628 = vector.shape_cast %627 : vector<1x8x4xf32> to vector<8x4xf32>
    %629 = arith.mulf %626, %628 : vector<8x4xf32>
    %cst_264 = arith.constant 1.000000e+00 : f32
    %630 = vector.broadcast %cst_264 : f32 to vector<8x4xf32>
    %631 = arith.subf %630, %626 : vector<8x4xf32>
    %632 = arith.mulf %631, %624 : vector<8x4xf32>
    %633 = arith.addf %629, %632 : vector<8x4xf32>
    %cst_265 = arith.constant dense<0.000000e+00> : vector<8x32xf32>
    %634 = tpu.matmul %633, %1, %cst_265 {dimension_numbers = #tpu.dot_dimension_numbers<[1], [0], [0], [1], [0, 0, 1, 1], [], []>} : vector<8x4xf32>, vector<4x32xf32>, vector<8x32xf32> -> vector<8x32xf32>
    %cst_266 = arith.constant dense<0.000000e+00> : vector<8x32xf32>
    %635 = tpu.matmul %618, %7, %cst_266 {dimension_numbers = #tpu.dot_dimension_numbers<[1], [0], [0], [1], [0, 0, 1, 1], [], []>} : vector<8x32xf32>, vector<32x32xf32>, vector<8x32xf32> -> vector<8x32xf32>
    %636 = arith.addf %634, %635 : vector<8x32xf32>
    %637 = vector.broadcast %13 : vector<1x32xf32> to vector<8x32xf32>
    %638 = arith.addf %636, %637 : vector<8x32xf32>
    %639 = arith.negf %638 : vector<8x32xf32>
    %640 = math.exp %639 : vector<8x32xf32>
    %cst_267 = arith.constant 1.000000e+00 : f32
    %641 = vector.broadcast %cst_267 : f32 to vector<8x32xf32>
    %642 = arith.addf %641, %640 : vector<8x32xf32>
    %643 = arith.divf %641, %642 : vector<8x32xf32>
    %cst_268 = arith.constant dense<0.000000e+00> : vector<8x32xf32>
    %644 = tpu.matmul %633, %3, %cst_268 {dimension_numbers = #tpu.dot_dimension_numbers<[1], [0], [0], [1], [0, 0, 1, 1], [], []>} : vector<8x4xf32>, vector<4x32xf32>, vector<8x32xf32> -> vector<8x32xf32>
    %cst_269 = arith.constant dense<0.000000e+00> : vector<8x32xf32>
    %645 = tpu.matmul %618, %9, %cst_269 {dimension_numbers = #tpu.dot_dimension_numbers<[1], [0], [0], [1], [0, 0, 1, 1], [], []>} : vector<8x32xf32>, vector<32x32xf32>, vector<8x32xf32> -> vector<8x32xf32>
    %646 = arith.addf %644, %645 : vector<8x32xf32>
    %647 = vector.broadcast %15 : vector<1x32xf32> to vector<8x32xf32>
    %648 = arith.addf %646, %647 : vector<8x32xf32>
    %649 = arith.negf %648 : vector<8x32xf32>
    %650 = math.exp %649 : vector<8x32xf32>
    %cst_270 = arith.constant 1.000000e+00 : f32
    %651 = vector.broadcast %cst_270 : f32 to vector<8x32xf32>
    %652 = arith.addf %651, %650 : vector<8x32xf32>
    %653 = arith.divf %651, %652 : vector<8x32xf32>
    %cst_271 = arith.constant dense<0.000000e+00> : vector<8x32xf32>
    %654 = tpu.matmul %633, %5, %cst_271 {dimension_numbers = #tpu.dot_dimension_numbers<[1], [0], [0], [1], [0, 0, 1, 1], [], []>} : vector<8x4xf32>, vector<4x32xf32>, vector<8x32xf32> -> vector<8x32xf32>
    %655 = vector.broadcast %17 : vector<1x32xf32> to vector<8x32xf32>
    %656 = arith.addf %654, %655 : vector<8x32xf32>
    %cst_272 = arith.constant dense<0.000000e+00> : vector<8x32xf32>
    %657 = tpu.matmul %618, %11, %cst_272 {dimension_numbers = #tpu.dot_dimension_numbers<[1], [0], [0], [1], [0, 0, 1, 1], [], []>} : vector<8x32xf32>, vector<32x32xf32>, vector<8x32xf32> -> vector<8x32xf32>
    %658 = vector.broadcast %18 : vector<1x32xf32> to vector<8x32xf32>
    %659 = arith.addf %657, %658 : vector<8x32xf32>
    %660 = arith.mulf %643, %659 : vector<8x32xf32>
    %661 = arith.addf %656, %660 : vector<8x32xf32>
    %662 = math.tanh %661 : vector<8x32xf32>
    %cst_273 = arith.constant 1.000000e+00 : f32
    %663 = vector.broadcast %cst_273 : f32 to vector<8x32xf32>
    %664 = arith.subf %663, %653 : vector<8x32xf32>
    %665 = arith.mulf %664, %662 : vector<8x32xf32>
    %666 = arith.mulf %653, %618 : vector<8x32xf32>
    %667 = arith.addf %665, %666 : vector<8x32xf32>
    %cst_274 = arith.constant dense<0.000000e+00> : vector<8x32xf32>
    %668 = tpu.matmul %667, %20, %cst_274 {dimension_numbers = #tpu.dot_dimension_numbers<[1], [0], [0], [1], [0, 0, 1, 1], [], []>} : vector<8x32xf32>, vector<32x32xf32>, vector<8x32xf32> -> vector<8x32xf32>
    %cst_275 = arith.constant dense<0.000000e+00> : vector<8x32xf32>
    %669 = tpu.matmul %667, %26, %cst_275 {dimension_numbers = #tpu.dot_dimension_numbers<[1], [0], [0], [1], [0, 0, 1, 1], [], []>} : vector<8x32xf32>, vector<32x32xf32>, vector<8x32xf32> -> vector<8x32xf32>
    %670 = arith.addf %668, %669 : vector<8x32xf32>
    %671 = vector.broadcast %32 : vector<1x32xf32> to vector<8x32xf32>
    %672 = arith.addf %670, %671 : vector<8x32xf32>
    %673 = arith.negf %672 : vector<8x32xf32>
    %674 = math.exp %673 : vector<8x32xf32>
    %cst_276 = arith.constant 1.000000e+00 : f32
    %675 = vector.broadcast %cst_276 : f32 to vector<8x32xf32>
    %676 = arith.addf %675, %674 : vector<8x32xf32>
    %677 = arith.divf %675, %676 : vector<8x32xf32>
    %cst_277 = arith.constant dense<0.000000e+00> : vector<8x32xf32>
    %678 = tpu.matmul %667, %22, %cst_277 {dimension_numbers = #tpu.dot_dimension_numbers<[1], [0], [0], [1], [0, 0, 1, 1], [], []>} : vector<8x32xf32>, vector<32x32xf32>, vector<8x32xf32> -> vector<8x32xf32>
    %cst_278 = arith.constant dense<0.000000e+00> : vector<8x32xf32>
    %679 = tpu.matmul %667, %28, %cst_278 {dimension_numbers = #tpu.dot_dimension_numbers<[1], [0], [0], [1], [0, 0, 1, 1], [], []>} : vector<8x32xf32>, vector<32x32xf32>, vector<8x32xf32> -> vector<8x32xf32>
    %680 = arith.addf %678, %679 : vector<8x32xf32>
    %681 = vector.broadcast %34 : vector<1x32xf32> to vector<8x32xf32>
    %682 = arith.addf %680, %681 : vector<8x32xf32>
    %683 = arith.negf %682 : vector<8x32xf32>
    %684 = math.exp %683 : vector<8x32xf32>
    %cst_279 = arith.constant 1.000000e+00 : f32
    %685 = vector.broadcast %cst_279 : f32 to vector<8x32xf32>
    %686 = arith.addf %685, %684 : vector<8x32xf32>
    %687 = arith.divf %685, %686 : vector<8x32xf32>
    %cst_280 = arith.constant dense<0.000000e+00> : vector<8x32xf32>
    %688 = tpu.matmul %667, %24, %cst_280 {dimension_numbers = #tpu.dot_dimension_numbers<[1], [0], [0], [1], [0, 0, 1, 1], [], []>} : vector<8x32xf32>, vector<32x32xf32>, vector<8x32xf32> -> vector<8x32xf32>
    %689 = vector.broadcast %36 : vector<1x32xf32> to vector<8x32xf32>
    %690 = arith.addf %688, %689 : vector<8x32xf32>
    %cst_281 = arith.constant dense<0.000000e+00> : vector<8x32xf32>
    %691 = tpu.matmul %667, %30, %cst_281 {dimension_numbers = #tpu.dot_dimension_numbers<[1], [0], [0], [1], [0, 0, 1, 1], [], []>} : vector<8x32xf32>, vector<32x32xf32>, vector<8x32xf32> -> vector<8x32xf32>
    %692 = vector.broadcast %37 : vector<1x32xf32> to vector<8x32xf32>
    %693 = arith.addf %691, %692 : vector<8x32xf32>
    %694 = arith.mulf %677, %693 : vector<8x32xf32>
    %695 = arith.addf %690, %694 : vector<8x32xf32>
    %696 = math.tanh %695 : vector<8x32xf32>
    %cst_282 = arith.constant 1.000000e+00 : f32
    %697 = vector.broadcast %cst_282 : f32 to vector<8x32xf32>
    %698 = arith.subf %697, %687 : vector<8x32xf32>
    %699 = arith.mulf %698, %696 : vector<8x32xf32>
    %700 = arith.mulf %687, %667 : vector<8x32xf32>
    %701 = arith.addf %699, %700 : vector<8x32xf32>
    %c7_283 = arith.constant 7 : index
    %c0_284 = arith.constant 0 : index
    %c0_285 = arith.constant 0 : index
    %702 = vector.load %arg13[%c7_283, %c0_284, %c0_285] : memref<8x8x32xf32, #tpu.memory_space<vmem>>, vector<1x8x32xf32>
    %703 = vector.shape_cast %702 : vector<1x8x32xf32> to vector<8x32xf32>
    %704 = vector.shape_cast %701 : vector<8x32xf32> to vector<1x8x32xf32>
    tpu.vector_store %arg13[%c7_283, %c0_284, %c0_285], %704 {strides = array<i32>} : memref<8x8x32xf32, #tpu.memory_space<vmem>>, vector<1x8x32xf32>,
    return
  }
  func.func @transform_0(%arg0: i32) -> (i32, i32, i32) {
    %c0_i32 = arith.constant 0 : i32
    %c0_i32_0 = arith.constant 0 : i32
    %c0_i32_1 = arith.constant 0 : i32
    %c0_i32_2 = arith.constant 0 : i32
    return %c0_i32, %c0_i32_0, %c0_i32_1 : i32, i32, i32
  }
  func.func @transform_1(%arg0: i32) -> (i32, i32, i32) {
    %c0_i32 = arith.constant 0 : i32
    %c0_i32_0 = arith.constant 0 : i32
    %c0_i32_1 = arith.constant 0 : i32
    %c0_i32_2 = arith.constant 0 : i32
    return %c0_i32, %c0_i32_0, %c0_i32_1 : i32, i32, i32
  }
  func.func @transform_2(%arg0: i32) -> (i32, i32, i32) {
    %c0_i32 = arith.constant 0 : i32
    %c0_i32_0 = arith.constant 0 : i32
    %c0_i32_1 = arith.constant 0 : i32
    %c0_i32_2 = arith.constant 0 : i32
    return %c0_i32, %c0_i32_0, %c0_i32_1 : i32, i32, i32
  }
  func.func @transform_3(%arg0: i32) -> (i32, i32, i32) {
    %c0_i32 = arith.constant 0 : i32
    %c0_i32_0 = arith.constant 0 : i32
    %c0_i32_1 = arith.constant 0 : i32
    %c0_i32_2 = arith.constant 0 : i32
    return %c0_i32, %c0_i32_0, %c0_i32_1 : i32, i32, i32
  }
  func.func @transform_4(%arg0: i32) -> (i32, i32, i32) {
    %c0_i32 = arith.constant 0 : i32
    %c0_i32_0 = arith.constant 0 : i32
    %c0_i32_1 = arith.constant 0 : i32
    %c0_i32_2 = arith.constant 0 : i32
    return %c0_i32, %c0_i32_0, %c0_i32_1 : i32, i32, i32
  }
  func.func @transform_5(%arg0: i32) -> (i32, i32) {
    %c0_i32 = arith.constant 0 : i32
    %c0_i32_0 = arith.constant 0 : i32
    %c0_i32_1 = arith.constant 0 : i32
    return %c0_i32, %c0_i32_0 : i32, i32
  }
  func.func @transform_6(%arg0: i32) -> (i32, i32, i32) {
    %c0_i32 = arith.constant 0 : i32
    %c0_i32_0 = arith.constant 0 : i32
    %c0_i32_1 = arith.constant 0 : i32
    %c0_i32_2 = arith.constant 0 : i32
    return %c0_i32, %c0_i32_0, %c0_i32_1 : i32, i32, i32
  }
  func.func @transform_7(%arg0: i32) -> (i32, i32, i32) {
    %c0_i32 = arith.constant 0 : i32
    %c0_i32_0 = arith.constant 0 : i32
    %c0_i32_1 = arith.constant 0 : i32
    %c0_i32_2 = arith.constant 0 : i32
    return %c0_i32, %c0_i32_0, %c0_i32_1 : i32, i32, i32
  }
  func.func @transform_8(%arg0: i32) -> (i32, i32, i32) {
    %c0_i32 = arith.constant 0 : i32
    %c0_i32_0 = arith.constant 0 : i32
    %c0_i32_1 = arith.constant 0 : i32
    %c0_i32_2 = arith.constant 0 : i32
    return %c0_i32, %c0_i32_0, %c0_i32_1 : i32, i32, i32
  }
  func.func @transform_9(%arg0: i32) -> (i32, i32) {
    %c0_i32 = arith.constant 0 : i32
    %c0_i32_0 = arith.constant 0 : i32
    %c0_i32_1 = arith.constant 0 : i32
    return %c0_i32, %c0_i32_0 : i32, i32
  }
  func.func @transform_10(%arg0: i32) -> (i32, i32) {
    %c0_i32 = arith.constant 0 : i32
    %c0_i32_0 = arith.constant 0 : i32
    %c0_i32_1 = arith.constant 0 : i32
    return %c0_i32, %c0_i32_0 : i32, i32
  }
  func.func @transform_11(%arg0: i32) -> (i32, i32) {
    %c0_i32 = arith.constant 0 : i32
    %c0_i32_0 = arith.constant 0 : i32
    %c0_i32_1 = arith.constant 0 : i32
    return %c0_i32, %c0_i32_0 : i32, i32
  }
  func.func @transform_12(%arg0: i32) -> (i32, i32, i32) {
    %c0_i32 = arith.constant 0 : i32
    %c0_i32_0 = arith.constant 0 : i32
    %c0_i32_1 = arith.constant 0 : i32
    %c0_i32_2 = arith.constant 0 : i32
    return %c0_i32, %c0_i32_0, %c0_i32_1 : i32, i32, i32
  }
}

</mosaic_0001>

<bundles_post_ra>
// kernel: tpu_custom_call.1
= control target key start
LH: loop header
LB: loop body
LE: loop exit
PB: predicated region body
PF: predicated region fallthrough
CT: control target
= control target key end

     0   :  { %17 = vsyncpa [#allocation3], 0  ;;  %s11664_s0 = inlined_call_operand.vmem [shape: f32[8,8,4], index: 0, kind: input, shape index: {}]   ;;  %s11665_s1 = inlined_call_operand.vmem [shape: f32[8,8,4], index: 1, kind: input, shape index: {}]   ;;  %s11666_s2 = inlined_call_operand.hbm [shape: f32[3,4,32], index: 2, kind: input, shape index: {}]   ;;  %s11667_s3 = inlined_call_operand.vmem [shape: f32[3,32,32], index: 3, kind: input, shape index: {}]   ;;  %s11668_s4 = inlined_call_operand.vmem [shape: f32[3,1,32], index: 4, kind: input, shape index: {}]   ;;  %s11669_s5 = inlined_call_operand.vmem [shape: f32[1,32], index: 5, kind: input, shape index: {}]   ;;  %s11670_s6 = inlined_call_operand.vmem [shape: f32[3,32,32], index: 6, kind: input, shape index: {}]   ;;  %s11671_s7 = inlined_call_operand.hbm [shape: f32[3,32,32], index: 7, kind: input, shape index: {}]   ;;  %s11672_s8 = inlined_call_operand.vmem [shape: f32[3,1,32], index: 8, kind: input, shape index: {}]   ;;  %s11673_s9 = inlined_call_operand.vmem [shape: f32[1,32], index: 9, kind: input, shape index: {}]   ;;  %s11674_s10 = inlined_call_operand.vmem [shape: f32[32,4], index: 10, kind: input, shape index: {}]   ;;  %s11675_s11 = inlined_call_operand.vmem [shape: f32[1,4], index: 11, kind: input, shape index: {}]   ;;  %s11676_s12 = inlined_call_operand.hbm [shape: f32[8,8,32], index: 12, kind: output, shape index: {}]  }
   0x1   :  { %18 = vsyncpa [#allocation6], 0 }
   0x2   :  { %19 = vsyncpa [#allocation4], 0  ;;  %s10369_s21 = smov [#allocation2]   ;;  %s10297_s25 = scalar_lea.hbm %s11666_s2, 192 }
   0x3   :  { %s29_s22 = sshll.u32 %s10369_s21, 4  ;;  %p10298_p0 = scmp.ne.s32.totalorder %s11666_s2, %s10297_s25  ;;  %s30_s22 = int_to_ptr.vmem [resolvable:$true] %s29_s22 }
   0x4   :  { %p10301_p1 = scmp.lt.u32.totalorder %s10297_s25, %s11666_s2 }
   0x6   :  { %p10303_p2 = pnand %p10301_p1, %p10298_p0 }
   0x8   :  { %10306 = shalt.err (!%p10303_p2)
}
   0x9   :  { %s10307_s30 = scalar_lea.vmem %s30_s22, 192  ;;  %p10312_p4 = scmp.lt.s32.totalorder %s30_s22, %s30_s22 }
   0xa   :  { %p10308_p3 = scmp.ne.s32.totalorder %s30_s22, %s10307_s30  ;;  %p10313_p5 = scmp.lt.s32.totalorder %s10307_s30, %s10307_s30 }
   0xc   :  { %p10314_p6 = por %p10313_p5, %p10312_p4 }
   0xe   :  { %p10315_p7 = pnand %p10314_p6, %p10308_p3 }
  0x10   :  { %10318 = shalt.err (!%p10315_p7)
}
  0x11   :  { %s10370_s13 = smov 64   ;;  %s10371_s14 = smov 4  }
  0x12   :  { %35 = dma.hbm_to_vmem [thread:$0]  %s11666_s2, 192, %s30_s22, [#allocation3], %s10370_s13, %s10370_s13, %s10371_s14  }
  0x13   :  { %s10372_s17 = smov [#allocation5]   ;;  %s10319_s21 = scalar_lea.hbm %s11671_s7, 1536 }
  0x14   :  { %s49_s18 = sshll.u32 %s10372_s17, 4  ;;  %p10320_p8 = scmp.ne.s32.totalorder %s11671_s7, %s10319_s21  ;;  %s50_s18 = int_to_ptr.vmem [resolvable:$true] %s49_s18 }
  0x15   :  { %p10323_p9 = scmp.lt.u32.totalorder %s10319_s21, %s11671_s7 }
  0x17   :  { %p10325_p10 = pnand %p10323_p9, %p10320_p8 }
  0x19   :  { %10328 = shalt.err (!%p10325_p10)
}
  0x1a   :  { %s10329_s27 = scalar_lea.vmem %s50_s18, 1536  ;;  %p10334_p12 = scmp.lt.s32.totalorder %s50_s18, %s50_s18 }
  0x1b   :  { %p10330_p11 = scmp.ne.s32.totalorder %s50_s18, %s10329_s27  ;;  %p10335_p13 = scmp.lt.s32.totalorder %s10329_s27, %s10329_s27 }
  0x1d   :  { %p10336_p0 = por %p10335_p13, %p10334_p12 }
  0x1f   :  { %p10337_p1 = pnand %p10336_p0, %p10330_p11 }
  0x21   :  { %10340 = shalt.err (!%p10337_p1)
}
  0x22   :  { %s10373_s2 = smov 128   ;;  %s10374_s22 = smov 8  }
  0x23   :  { %55 = dma.hbm_to_vmem [thread:$0]  %s11671_s7, 1536, %s50_s18, [#allocation6], %s10373_s2, %s10373_s2, %s10374_s22  }
  0x24   :  { %10363 = dma.done.wait [#allocation3], 192  }
  0x25   :  { %10364 = vsyncadd [#allocation3], 4294967104 }
  0x26   :  { %10365 = dma.done.wait [#allocation6], 1536  }
  0x27   :  { %10366 = vsyncadd [#allocation6], 4294965760  ;;  %v10375_v0 = vmov 0.0|0.0   ;;  %vm10376_vm0 = vmmov 0   ;;  %v10377_v1 = vmov 0.0   ;;  %v129_v2 = vld [vmem:[%s11674_s10] sm:$0xff] }
  0x28   :  { %9630 = vmatprep.subr.bf16.mxu0 %v10375_v0  ;;  %8638 = vmatprep.mubr.msk.f32.mxu0 %vm10376_vm0, %v10377_v1  ;;  %v130_v3 = vld [vmem:[%s11674_s10 + $0x8] sm:$0xff]  ;;  %v131_v4 = vld [vmem:[%s11674_s10 + $0x10] sm:$0xff]  ;;  %v132_v6 = vld [vmem:[%s11674_s10 + $0x18] sm:$0xff]  ;;  %vm294_vm1 = vcmask 1043456   ;;  %vm290_vm2 = vcmask 31744   ;;  %vm140_vm3 = vcmask 261120  }
  0x29   :  { %9636 = vmatprep.subr.bf16.mxu1 %v10375_v0  ;;  %8649 = vmatprep.mubr.msk.f32.mxu1 %vm10376_vm0, %v10377_v1  ;;  %v10486_v5 = vpack.c.bf16 %v130_v3, %v129_v2  ;;  %v75_v7 = vld [vmem:[%s11667_s3] sm:$0xff]  ;;  %v76_v8 = vld [vmem:[%s11667_s3 + $0x8] sm:$0xff]  ;;  %v77_v10 = vld [vmem:[%s11667_s3 + $0x10] sm:$0xff]  ;;  %v10506_v12 = vpack.c.bf16 %v132_v6, %v131_v4 }
  0x2a   :  { %v10497_v9 = vpack.c.bf16 %v76_v8, %v75_v7  ;;  %v78_v11 = vld [vmem:[%s11667_s3 + $0x18] sm:$0xff]  ;;  %v10523_v14 = vld [vmem:[#allocation2] sm:$0xf]  ;;  %v10527_v15 = vld [vmem:[#allocation2 + $0x4] sm:$0xf] }
  0x2b   :  { %9632 = vmatpush3.bf16.msra.mxu0 %v10486_v5  ;;  %v10510_v13 = vpack.c.bf16 %v78_v11, %v77_v10  ;;  %v214_v16 = vld [vmem:[%s11665_s1] sm:$0xff]  ;;  %v7984_v25 = vld [vmem:[%s11667_s3 + $0x28] sm:$0xff]  ;;  %v7985_v32 = vld [vmem:[%s11667_s3 + $0x30] sm:$0xff] }
  0x2c   :  { %9633 = vmatprep.subr.bf16.mxu0 %v10375_v0  ;;  %9638 = vmatpush3.bf16.msra.mxu1 %v10497_v9  ;;  %v10539_v17 = vld [vmem:[%s11675_s11] ss:$0 sm:$0xff]  ;;  %v217_v19 = vsub.f32 1.0, %v214_v16  ;;  %v10553_v31 = vld [vmem:[#allocation2 + $0x8] sm:$0xf]  ;;  %v7986_v33 = vld [vmem:[%s11667_s3 + $0x38] sm:$0xff] }
  0x2d   :  { %9639 = vmatprep.subr.bf16.mxu1 %v10375_v0  ;;  %v215_v18 = vld [vmem:[%s11664_s0] sm:$0xff]  ;;  %v10566_v34 = vpack.c.bf16 %v7986_v33, %v7985_v32  ;;  %v7988_v36 = vld [vmem:[%s11667_s3 + $0x48] sm:$0xff]  ;;  %v7989_v38 = vld [vmem:[%s11667_s3 + $0x50] sm:$0xff] }
  0x2e   :  { %v216_v22 = vmul.f32 %v215_v18, %v214_v16  ;;  %v7983_v24 = vld [vmem:[%s11667_s3 + $0x20] sm:$0xff]  ;;  %v7990_v39 = vld [vmem:[%s11667_s3 + $0x58] sm:$0xff]  ;;  %v109_v41 = vld [vmem:[#allocation5] sm:$0xff] }
  0x2f   :  { %9635 = vmatpush3.bf16.msra.mxu0 %v10506_v12  ;;  %v10551_v29 = vpack.c.bf16 %v7984_v25, %v7983_v24  ;;  %v7987_v35 = vld [vmem:[%s11667_s3 + $0x40] sm:$0xff]  ;;  %v10595_v40 = vpack.c.bf16 %v7990_v39, %v7989_v38  ;;  %v110_v42 = vld [vmem:[#allocation5 + $0x8] sm:$0xff]  ;;  %v96_v45 = vld [vmem:[%s11670_s6 + $0x8] sm:$0xff] }
  0x30   :  { %9641 = vmatpush3.bf16.msra.mxu1 %v10510_v13  ;;  %8668 = vmatprep.subr.mxu0 %v10377_v1  ;;  %v10582_v37 = vpack.c.bf16 %v7988_v36, %v7987_v35  ;;  %v95_v43 = vld [vmem:[%s11670_s6] sm:$0xff]  ;;  %v10608_v44 = vpack.c.bf16 %v110_v42, %v109_v41  ;;  %v97_v49 = vld [vmem:[%s11670_s6 + $0x10] sm:$0xff]  ;;  %v98_v51 = vld [vmem:[%s11670_s6 + $0x18] sm:$0xff] }
  0x31   :  { %8652 = vmatprep.subr.mxu1 %v10377_v1  ;;  %v10613_v46 = vpack.c.bf16 %v96_v45, %v95_v43  ;;  %v111_v47 = vld [vmem:[#allocation5 + $0x10] sm:$0xff]  ;;  %v112_v48 = vld [vmem:[#allocation5 + $0x18] sm:$0xff]  ;;  %v10627_v52 = vpack.c.bf16 %v98_v51, %v97_v49  ;;  %v115_v32 = vld [vmem:[#allocation5 + $0x28] sm:$0xff] }
  0x32   :  { %8639 = vmatmul.mubr.f32.vlgmr.msra.gmra.mrb[0].mxu0 %v10377_v1  ;;  %v10622_v50 = vpack.c.bf16 %v112_v48, %v111_v47  ;;  %v10636_v53 = vld [vmem:[%s11668_s4] ss:$0 sm:$0xff]  ;;  %v10642_v63 = vld [vmem:[%s11668_s4 + $0x1] ss:$0 sm:$0xff]  ;;  %v7994_v35 = vld [vmem:[%s11670_s6 + $0x28] sm:$0xff] }
  0x33   :  { %8650 = vmatmul.mubr.f32.vlgmr.msra.gmra.mrb[0].mxu1 %v10377_v1  ;;  %8670 = vmatprep.mubr.msk.f32.mxu0 %vm10376_vm0, %v10377_v1  ;;  %v10648_v18 = vld [vmem:[%s11669_s5] ss:$0 sm:$0xff]  ;;  %v117_v47 = vld [vmem:[#allocation5 + $0x38] sm:$0xff]  ;;  %v7995_v48 = vld [vmem:[%s11670_s6 + $0x30] sm:$0xff] }
  0x34   :  { %8654 = vmatprep.mubr.msk.f32.mxu1 %vm10376_vm0, %v10377_v1  ;;  %8653 = vmatpush3.msk.msra.mxu1 %vm294_vm1, %v10523_v14  ;;  %v7993_v33 = vld [vmem:[%s11670_s6 + $0x20] sm:$0xff]  ;;  %v7996_v49 = vld [vmem:[%s11670_s6 + $0x38] sm:$0xff] }
  0x35   :  { %9642 = vmatprep.subr.bf16.mxu1 %v10375_v0  ;;  %8669 = vmatpush3.msk.msra.mxu0 %vm294_vm1, %v10527_v15  ;;  %v10665_v42 = vpack.c.bf16 %v7994_v35, %v7993_v33  ;;  %v116_v43 = vld [vmem:[#allocation5 + $0x30] sm:$0xff] }
  0x36   :  { %8673 = vmatprep.subr.mxu0 %v10377_v1  ;;  %v10681_v51 = vpack.c.bf16 %v117_v47, %v116_v43 }
 0x105   :  { %v210_v20 = vpop.f32.mrb[0].mxu0 }
 0x106   :  { %v211_v21 = vadd.f32 %v10539_v17, %v210_v20  ;;  %v8640_v23 = vpop.f32.mrb[1].mxu0  ;;  %v286_v26 = vpop.f32.mrb[0].mxu1 }
 0x107   :  { %v8651_v27 = vpop.f32.mrb[1].mxu1 }
 0x108   :  { %v218_v28 = vmul.f32 %v217_v19, %v211_v21 }
 0x10a   :  { %v219_v30 = vadd.f32 %v218_v28, %v216_v22  ;;  %v10654_v22 = vld [vmem:[%s11668_s4 + $0x2] ss:$0 sm:$0xff]  ;;  %v114_v28 = vld [vmem:[#allocation5 + $0x20] sm:$0xff] }
 0x10b   :  { %v10663_v41 = vpack.c.bf16 %v115_v32, %v114_v28 }
 0x10c   :  { %8655 = vmatmul.mubr.msk.f32.vlgmr.msra.gmra.mrb[2].mxu1 %vm290_vm2, %v219_v30  ;;  %8671 = vmatmul.mubr.msk.f32.vlgmr.msra.gmra.mrb[2].mxu0 %vm290_vm2, %v219_v30 }
 0x10d   :  { %9644 = vmatpush3.bf16.msra.mxu1 %v10551_v29  ;;  %8674 = vmatpush3.msk.msra.mxu0 %vm294_vm1, %v10553_v31 }
 0x10e   :  { %9645 = vmatprep.subr.bf16.mxu1 %v10375_v0  ;;  %8675 = vmatprep.mubr.msk.f32.mxu0 %vm10376_vm0, %v10377_v1 }
 0x10f   :  { %8665 = vmatprep.mubr.msk.f32.mxu1 %vm10376_vm0, %v10377_v1  ;;  %9654 = vmatprep.subr.bf16.mxu0 %v10375_v0 }
 0x110   :  { %8676 = vmatmul.mubr.msk.f32.vlgmr.msra.gmra.mrb[4].mxu0 %vm290_vm2, %v219_v30 }
 0x111   :  { %9647 = vmatpush3.bf16.msra.mxu1 %v10566_v34  ;;  %8697 = vmatprep.mubr.msk.f32.mxu0 %vm10376_vm0, %v10377_v1 }
 0x112   :  { %9648 = vmatprep.subr.bf16.mxu1 %v10375_v0  ;;  %9656 = vmatpush3.bf16.msra.mxu0 %v10608_v44 }
 0x113   :  { %9657 = vmatprep.subr.bf16.mxu0 %v10375_v0 }
 0x114   :  { %8666 = vmatmul.mubr.f32.vlgmr.msra.gmra.mrb[4].mxu1 %v10377_v1 }
 0x115   :  { %9650 = vmatpush3.bf16.msra.mxu1 %v10582_v37  ;;  %8686 = vmatprep.mubr.msk.f32.mxu1 %vm10376_vm0, %v10377_v1 }
 0x116   :  { %9651 = vmatprep.subr.bf16.mxu1 %v10375_v0  ;;  %9659 = vmatpush3.bf16.msra.mxu0 %v10622_v50 }
 0x117   :  { %9666 = vmatprep.subr.bf16.mxu0 %v10375_v0 }
 0x119   :  { %9653 = vmatpush3.bf16.msra.mxu1 %v10595_v40 }
 0x11a   :  { %9660 = vmatprep.subr.bf16.mxu1 %v10375_v0 }
 0x11c   :  { %8687 = vmatmul.mubr.f32.vlgmr.msra.gmra.mrb[6].mxu1 %v10377_v1 }
 0x11d   :  { %8708 = vmatprep.mubr.msk.f32.mxu1 %vm10376_vm0, %v10377_v1  ;;  %9662 = vmatpush3.bf16.msra.mxu1 %v10613_v46 }
 0x11e   :  { %9663 = vmatprep.subr.bf16.mxu1 %v10375_v0 }
 0x121   :  { %9665 = vmatpush3.bf16.msra.mxu1 %v10627_v52 }
 0x122   :  { %9672 = vmatprep.subr.bf16.mxu1 %v10375_v0 }
 0x1df   :  { %v364_v54 = vpop.f32.mrb[2].mxu1  ;;  %v520_v55 = vpop.f32.mrb[2].mxu0 }
 0x1e0   :  { %v365_v56 = vadd.f32 %v364_v54, %v286_v26  ;;  %v8656_v57 = vpop.f32.mrb[3].mxu1  ;;  %v8672_v58 = vpop.f32.mrb[3].mxu0  ;;  %v10683_v54 = vpack.c.bf16 %v7996_v49, %v7995_v48  ;;  %v10762_v48 = vld [vmem:[%s11673_s9] ss:$0 sm:$0xff] }
 0x1e1   :  { %v119_v57 = vld [vmem:[#allocation5 + $0x40] sm:$0xff]  ;;  %v120_v58 = vld [vmem:[#allocation5 + $0x48] sm:$0xff] }
 0x1e2   :  { %v374_v59 = vadd.f32 %v10636_v53, %v365_v56  ;;  %v7998_v56 = vld [vmem:[%s11670_s6 + $0x48] sm:$0xff] }
 0x1e3   :  { %v612_v60 = vpop.f32.mrb[4].mxu0 }
 0x1e4   :  { %v8007_v61 = vmul.f32 -1.442695, %v374_v59  ;;  %v8677_v62 = vpop.f32.mrb[5].mxu0  ;;  %v613_v24 = vadd.f32 %v10654_v22, %v612_v60  ;;  %v10701_v60 = vpack.c.bf16 %v120_v58, %v119_v57 }
 0x1e5   :  { %v8000_v62 = vld [vmem:[%s11670_s6 + $0x58] sm:$0xff] }
 0x1e6   :  { %10120 = vpow2.f32 %v8007_v61  ;;  %v7999_v61 = vld [vmem:[%s11670_s6 + $0x50] sm:$0xff] }
 0x1e7   :  { %v447_v2 = vpop.f32.mrb[4].mxu1 }
 0x1e8   :  { %v521_v3 = vadd.f32 %v520_v55, %v447_v2  ;;  %v8667_v4 = vpop.f32.mrb[5].mxu1  ;;  %v7997_v55 = vld [vmem:[%s11670_s6 + $0x40] sm:$0xff] }
 0x1e9   :  { %v10699_v59 = vpack.c.bf16 %v7998_v56, %v7997_v55  ;;  %v121_v2 = vld [vmem:[#allocation5 + $0x50] sm:$0xff]  ;;  %v10717_v4 = vpack.c.bf16 %v8000_v62, %v7999_v61 }
 0x1ea   :  { %v530_v6 = vadd.f32 %v10642_v63, %v521_v3  ;;  %v122_v3 = vld [vmem:[#allocation5 + $0x58] sm:$0xff]  ;;  %v10767_v55 = vld [vmem:[%s11672_s8 + $0x2] ss:$0 sm:$0xff] }
 0x1ec   :  { %v8011_v7 = vmul.f32 -1.442695, %v530_v6  ;;  %v10719_v6 = vpack.c.bf16 %v122_v3, %v121_v2 }
 0x1ee   :  { %10122 = vpow2.f32 %v8011_v7 }
 0x1ef   :  { %v688_v8 = vpop.f32.mrb[6].mxu1 }
 0x1f0   :  { %v10121_v10 = vpop.eup %10120  ;;  %v8688_v11 = vpop.f32.mrb[7].mxu1  ;;  %v689_v21 = vadd.f32 %v10648_v18, %v688_v8  ;;  %v10750_v8 = vld [vmem:[%s11672_s8] ss:$0 sm:$0xff] }
 0x1f1   :  { %v378_v16 = vadd.f32 1.0, %v10121_v10 }
 0x1f3   :  { %10124 = vrcp.f32 %v378_v16 }
 0x1f8   :  { %v10123_v19 = vpop.eup %10122 }
 0x1f9   :  { %v534_v20 = vadd.f32 1.0, %v10123_v19 }
 0x1fb   :  { %10126 = vrcp.f32 %v534_v20 }
 0x1fd   :  { %v10125_v23 = vpop.eup %10124 }
 0x1fe   :  { %v692_v25 = vmul.f32 %v10125_v23, %v689_v21 }
 0x200   :  { %v693_v26 = vadd.f32 %v692_v25, %v613_v24  ;;  %v10756_v24 = vld [vmem:[%s11672_s8 + $0x1] ss:$0 sm:$0xff] }
 0x202   :  { %10128 = vtanh.f32 %v693_v26 }
 0x205   :  { %v10127_v27 = vpop.eup %10126 }
 0x206   :  { %v695_v30 = vsub.f32 1.0, %v10127_v27  ;;  %v697_v38 = vmul.f32 0.0, %v10127_v27 }
 0x20c   :  { %v10129_v36 = vpop.eup %10128 }
 0x20d   :  { %v696_v39 = vmul.f32 %v10129_v36, %v695_v30 }
 0x20f   :  { %v10667_v45 = vadd.f32 %v697_v38, %v696_v39 }
 0x211   :  { %8698 = vmatmul.mubr.msk.f32.vlgmr.msra.gmra.mrb[6].mxu0 %vm140_vm3, %v10667_v45  ;;  %8709 = vmatmul.mubr.msk.f32.vlgmr.msra.gmra.mrb[8].mxu1 %vm140_vm3, %v10667_v45 }
 0x212   :  { %9668 = vmatpush3.bf16.msra.mxu0 %v10663_v41  ;;  %9674 = vmatpush3.bf16.msra.mxu1 %v10665_v42 }
 0x213   :  { %9669 = vmatprep.subr.bf16.mxu0 %v10375_v0  ;;  %9675 = vmatprep.subr.bf16.mxu1 %v10375_v0 }
 0x214   :  { %8719 = vmatprep.mubr.msk.f32.mxu0 %vm10376_vm0, %v10377_v1  ;;  %8730 = vmatprep.mubr.msk.f32.mxu1 %vm10376_vm0, %v10377_v1 }
 0x216   :  { %9671 = vmatpush3.bf16.msra.mxu0 %v10681_v51  ;;  %9677 = vmatpush3.bf16.msra.mxu1 %v10683_v54 }
 0x217   :  { %9678 = vmatprep.subr.bf16.mxu0 %v10375_v0  ;;  %9684 = vmatprep.subr.bf16.mxu1 %v10375_v0 }
 0x219   :  { %8720 = vmatmul.mubr.msk.f32.vlgmr.msra.gmra.mrb[8].mxu0 %vm140_vm3, %v10667_v45  ;;  %8731 = vmatmul.mubr.msk.f32.vlgmr.msra.gmra.mrb[10].mxu1 %vm140_vm3, %v10667_v45 }
 0x21a   :  { %9680 = vmatpush3.bf16.msra.mxu0 %v10699_v59  ;;  %9686 = vmatpush3.bf16.msra.mxu1 %v10701_v60 }
 0x21b   :  { %9681 = vmatprep.subr.bf16.mxu0 %v10375_v0  ;;  %9687 = vmatprep.subr.bf16.mxu1 %v10375_v0 }
 0x21c   :  { %8741 = vmatprep.mubr.msk.f32.mxu0 %vm10376_vm0, %v10377_v1  ;;  %8752 = vmatprep.mubr.msk.f32.mxu1 %vm10376_vm0, %v10377_v1 }
 0x21e   :  { %9683 = vmatpush3.bf16.msra.mxu0 %v10717_v4  ;;  %9689 = vmatpush3.bf16.msra.mxu1 %v10719_v6 }
 0x21f   :  { %9690 = vmatprep.subr.bf16.mxu0 %v10375_v0  ;;  %9696 = vmatprep.subr.bf16.mxu1 %v10375_v0 }
 0x221   :  { %8742 = vmatmul.mubr.msk.f32.vlgmr.msra.gmra.mrb[10].mxu0 %vm140_vm3, %v10667_v45  ;;  %8753 = vmatmul.mubr.msk.f32.vlgmr.msra.gmra.mrb[12].mxu1 %vm140_vm3, %v10667_v45 }
 0x222   :  { %9692 = vmatpush3.bf16.msra.mxu0 %v10486_v5  ;;  %9698 = vmatpush3.bf16.msra.mxu1 %v10497_v9 }
 0x223   :  { %9693 = vmatprep.subr.bf16.mxu0 %v10375_v0  ;;  %9699 = vmatprep.subr.bf16.mxu1 %v10375_v0 }
 0x224   :  { %8763 = vmatprep.mubr.msk.f32.mxu0 %vm10376_vm0, %v10377_v1  ;;  %8774 = vmatprep.mubr.msk.f32.mxu1 %vm10376_vm0, %v10377_v1 }
 0x226   :  { %9695 = vmatpush3.bf16.msra.mxu0 %v10506_v12  ;;  %9701 = vmatpush3.bf16.msra.mxu1 %v10510_v13 }
 0x227   :  { %8777 = vmatprep.subr.mxu0 %v10377_v1  ;;  %8793 = vmatprep.subr.mxu1 %v10377_v1 }
 0x2e4   :  { %v768_v7 = vpop.f32.mrb[6].mxu0  ;;  %v838_v10 = vpop.f32.mrb[8].mxu1 }
 0x2e5   :  { %v839_v11 = vadd.f32 %v838_v10, %v768_v7  ;;  %v8699_v16 = vpop.f32.mrb[7].mxu0  ;;  %v8710_v19 = vpop.f32.mrb[9].mxu1 }
 0x2e6   :  { %v8030_v19 = vld [vmem:[%s11664_s0 + $0x8] sm:$0xff] }
 0x2e7   :  { %v848_v20 = vadd.f32 %v10750_v8, %v839_v11 }
 0x2e9   :  { %v8019_v21 = vmul.f32 -1.442695, %v848_v20 }
 0x2eb   :  { %10130 = vpow2.f32 %v8019_v21 }
 0x2ec   :  { %v921_v23 = vpop.f32.mrb[8].mxu0  ;;  %v991_v25 = vpop.f32.mrb[10].mxu1 }
 0x2ed   :  { %v992_v26 = vadd.f32 %v991_v25, %v921_v23  ;;  %v8721_v27 = vpop.f32.mrb[9].mxu0  ;;  %v8732_v28 = vpop.f32.mrb[11].mxu1 }
 0x2ef   :  { %v1001_v30 = vadd.f32 %v10756_v24, %v992_v26 }
 0x2f1   :  { %v8023_v32 = vmul.f32 -1.442695, %v1001_v30 }
 0x2f3   :  { %10132 = vpow2.f32 %v8023_v32 }
 0x2f4   :  { %v1080_v33 = vpop.f32.mrb[10].mxu0  ;;  %v1156_v35 = vpop.f32.mrb[12].mxu1 }
 0x2f5   :  { %v10131_v36 = vpop.eup %10130  ;;  %v8743_v38 = vpop.f32.mrb[11].mxu0  ;;  %v1157_v56 = vadd.f32 %v10762_v48, %v1156_v35  ;;  %v1081_v58 = vadd.f32 %v10767_v55, %v1080_v33 }
 0x2f6   :  { %v8754_v39 = vpop.f32.mrb[13].mxu1  ;;  %v852_v43 = vadd.f32 1.0, %v10131_v36 }
 0x2f8   :  { %10134 = vrcp.f32 %v852_v43 }
 0x2fd   :  { %v10133_v47 = vpop.eup %10132 }
 0x2fe   :  { %v1005_v49 = vadd.f32 1.0, %v10133_v47 }
 0x300   :  { %10136 = vrcp.f32 %v1005_v49 }
 0x302   :  { %v10135_v57 = vpop.eup %10134 }
 0x303   :  { %v1160_v61 = vmul.f32 %v10135_v57, %v1157_v56 }
 0x305   :  { %v1161_v62 = vadd.f32 %v1160_v61, %v1081_v58 }
 0x307   :  { %10138 = vtanh.f32 %v1161_v62 }
 0x30a   :  { %v10137_v2 = vpop.eup %10136 }
 0x30b   :  { %v1163_v3 = vsub.f32 1.0, %v10137_v2  ;;  %v1165_v10 = vmul.f32 %v10137_v2, %v10667_v45  ;;  %v8029_v45 = vld [vmem:[%s11665_s1 + $0x8] sm:$0xff] }
 0x30c   :  { %v1246_v20 = vsub.f32 1.0, %v8029_v45  ;;  %v1245_v26 = vmul.f32 %v8030_v19, %v8029_v45 }
 0x311   :  { %v10139_v7 = vpop.eup %10138 }
 0x312   :  { %v1164_v11 = vmul.f32 %v10139_v7, %v1163_v3 }
 0x314   :  { %v10772_v16 = vadd.f32 %v1165_v10, %v1164_v11 }
 0x316   :  { %8764 = vmatmul.mubr.msk.f32.vlgmr.msra.gmra.mrb[12].mxu0 %vm140_vm3, %v10772_v16  ;;  %1167 = vst.msk [vmem:[#allocation7] sm:$0xff] %vm140_vm3, %v10772_v16  ;;  %8775 = vmatmul.mubr.msk.f32.vlgmr.msra.gmra.mrb[14].mxu1 %vm140_vm3, %v10772_v16 }
 0x317   :  { %8778 = vmatpush3.msk.msra.mxu0 %vm294_vm1, %v10523_v14  ;;  %8779 = vmatprep.mubr.msk.f32.mxu0 %vm10376_vm0, %v10377_v1 }
 0x318   :  { %9702 = vmatprep.subr.bf16.mxu0 %v10375_v0  ;;  %8794 = vmatpush3.msk.msra.mxu1 %vm294_vm1, %v10527_v15 }
 0x319   :  { %8795 = vmatprep.mubr.msk.f32.mxu1 %vm10376_vm0, %v10377_v1  ;;  %8798 = vmatprep.subr.mxu1 %v10377_v1 }
 0x3e9   :  { %v1237_v21 = vpop.f32.mrb[12].mxu0  ;;  %v1315_v23 = vpop.f32.mrb[14].mxu1 }
 0x3ea   :  { %v1238_v25 = vadd.f32 %v10539_v17, %v1237_v21  ;;  %v8765_v27 = vpop.f32.mrb[13].mxu0  ;;  %v8776_v28 = vpop.f32.mrb[15].mxu1 }
 0x3ec   :  { %v1247_v30 = vmul.f32 %v1246_v20, %v1238_v25 }
 0x3ee   :  { %v1248_v32 = vadd.f32 %v1247_v30, %v1245_v26 }
 0x3f0   :  { %8780 = vmatmul.mubr.msk.f32.vlgmr.msra.gmra.mrb[14].mxu0 %vm290_vm2, %v1248_v32  ;;  %8796 = vmatmul.mubr.msk.f32.vlgmr.msra.gmra.mrb[16].mxu1 %vm290_vm2, %v1248_v32 }
 0x3f1   :  { %9704 = vmatpush3.bf16.msra.mxu0 %v10551_v29  ;;  %8799 = vmatpush3.msk.msra.mxu1 %vm294_vm1, %v10553_v31 }
 0x3f2   :  { %9705 = vmatprep.subr.bf16.mxu0 %v10375_v0  ;;  %8800 = vmatprep.mubr.msk.f32.mxu1 %vm10376_vm0, %v10377_v1 }
 0x3f3   :  { %8790 = vmatprep.mubr.msk.f32.mxu0 %vm10376_vm0, %v10377_v1  ;;  %9714 = vmatprep.subr.bf16.mxu1 %v10375_v0 }
 0x3f4   :  { %8801 = vmatmul.mubr.msk.f32.vlgmr.msra.gmra.mrb[18].mxu1 %vm290_vm2, %v1248_v32 }
 0x3f5   :  { %9707 = vmatpush3.bf16.msra.mxu0 %v10566_v34  ;;  %9716 = vmatpush3.bf16.msra.mxu1 %v10608_v44 }
 0x3f6   :  { %9708 = vmatprep.subr.bf16.mxu0 %v10375_v0  ;;  %9717 = vmatprep.subr.bf16.mxu1 %v10375_v0 }
 0x3f7   :  { %8822 = vmatprep.mubr.msk.f32.mxu1 %vm10376_vm0, %v10377_v1 }
 0x3f8   :  { %8791 = vmatmul.mubr.msk.f32.vlgmr.msra.gmra.mrb[16].mxu0 %vm140_vm3, %v10772_v16 }
 0x3f9   :  { %9710 = vmatpush3.bf16.msra.mxu0 %v10582_v37  ;;  %8811 = vmatprep.mubr.msk.f32.mxu0 %vm10376_vm0, %v10377_v1 }
 0x3fa   :  { %9711 = vmatprep.subr.bf16.mxu0 %v10375_v0  ;;  %9719 = vmatpush3.bf16.msra.mxu1 %v10622_v50 }
 0x3fb   :  { %9726 = vmatprep.subr.bf16.mxu1 %v10375_v0 }
 0x3fd   :  { %9713 = vmatpush3.bf16.msra.mxu0 %v10595_v40 }
 0x3fe   :  { %9720 = vmatprep.subr.bf16.mxu0 %v10375_v0 }
 0x400   :  { %8812 = vmatmul.mubr.msk.f32.vlgmr.msra.gmra.mrb[18].mxu0 %vm140_vm3, %v10772_v16 }
 0x401   :  { %9722 = vmatpush3.bf16.msra.mxu0 %v10613_v46  ;;  %8833 = vmatprep.mubr.msk.f32.mxu0 %vm10376_vm0, %v10377_v1 }
 0x402   :  { %9723 = vmatprep.subr.bf16.mxu0 %v10375_v0 }
 0x405   :  { %9725 = vmatpush3.bf16.msra.mxu0 %v10627_v52 }
 0x406   :  { %9732 = vmatprep.subr.bf16.mxu0 %v10375_v0 }
 0x4c3   :  { %v1388_v33 = vpop.f32.mrb[14].mxu0  ;;  %v1535_v35 = vpop.f32.mrb[16].mxu1 }
 0x4c4   :  { %v1389_v36 = vadd.f32 %v1388_v33, %v1315_v23  ;;  %v8781_v38 = vpop.f32.mrb[15].mxu0  ;;  %v8797_v39 = vpop.f32.mrb[17].mxu1 }
 0x4c6   :  { %v1392_v43 = vadd.f32 %v10636_v53, %v1389_v36 }
 0x4c7   :  { %v1612_v47 = vpop.f32.mrb[18].mxu1 }
 0x4c8   :  { %v8034_v49 = vmul.f32 -1.442695, %v1392_v43  ;;  %v8802_v56 = vpop.f32.mrb[19].mxu1  ;;  %v1613_v23 = vadd.f32 %v10654_v22, %v1612_v47 }
 0x4ca   :  { %10140 = vpow2.f32 %v8034_v49 }
 0x4cb   :  { %v1465_v57 = vpop.f32.mrb[16].mxu0 }
 0x4cc   :  { %v1536_v58 = vadd.f32 %v1535_v35, %v1465_v57  ;;  %v8792_v61 = vpop.f32.mrb[17].mxu0 }
 0x4ce   :  { %v1539_v62 = vadd.f32 %v10642_v63, %v1536_v58 }
 0x4d0   :  { %v8038_v2 = vmul.f32 -1.442695, %v1539_v62 }
 0x4d2   :  { %10142 = vpow2.f32 %v8038_v2 }
 0x4d3   :  { %v1682_v3 = vpop.f32.mrb[18].mxu0 }
 0x4d4   :  { %v10141_v7 = vpop.eup %10140  ;;  %v8813_v10 = vpop.f32.mrb[19].mxu0  ;;  %v1683_v20 = vadd.f32 %v10648_v18, %v1682_v3 }
 0x4d5   :  { %v1396_v11 = vadd.f32 1.0, %v10141_v7 }
 0x4d7   :  { %10144 = vrcp.f32 %v1396_v11 }
 0x4dc   :  { %v10143_v45 = vpop.eup %10142 }
 0x4dd   :  { %v1543_v19 = vadd.f32 1.0, %v10143_v45 }
 0x4df   :  { %10146 = vrcp.f32 %v1543_v19 }
 0x4e1   :  { %v10145_v21 = vpop.eup %10144 }
 0x4e2   :  { %v1686_v25 = vmul.f32 %v10145_v21, %v1683_v20 }
 0x4e4   :  { %v1687_v26 = vadd.f32 %v1686_v25, %v1613_v23 }
 0x4e6   :  { %10148 = vtanh.f32 %v1687_v26 }
 0x4e9   :  { %v10147_v27 = vpop.eup %10146 }
 0x4ea   :  { %v1689_v28 = vsub.f32 1.0, %v10147_v27  ;;  %v1691_v32 = vmul.f32 %v10147_v27, %v10772_v16 }
 0x4f0   :  { %v10149_v30 = vpop.eup %10148 }
 0x4f1   :  { %v1690_v33 = vmul.f32 %v10149_v30, %v1689_v28 }
 0x4f3   :  { %v10838_v35 = vadd.f32 %v1691_v32, %v1690_v33 }
 0x4f5   :  { %8823 = vmatmul.mubr.msk.f32.vlgmr.msra.gmra.mrb[20].mxu1 %vm140_vm3, %v10838_v35  ;;  %8834 = vmatmul.mubr.msk.f32.vlgmr.msra.gmra.mrb[20].mxu0 %vm140_vm3, %v10838_v35 }
 0x4f6   :  { %9728 = vmatpush3.bf16.msra.mxu1 %v10663_v41  ;;  %9734 = vmatpush3.bf16.msra.mxu0 %v10665_v42 }
 0x4f7   :  { %9729 = vmatprep.subr.bf16.mxu1 %v10375_v0  ;;  %9735 = vmatprep.subr.bf16.mxu0 %v10375_v0 }
 0x4f8   :  { %8844 = vmatprep.mubr.msk.f32.mxu1 %vm10376_vm0, %v10377_v1  ;;  %8855 = vmatprep.mubr.msk.f32.mxu0 %vm10376_vm0, %v10377_v1 }
 0x4fa   :  { %9731 = vmatpush3.bf16.msra.mxu1 %v10681_v51  ;;  %9737 = vmatpush3.bf16.msra.mxu0 %v10683_v54 }
 0x4fb   :  { %9738 = vmatprep.subr.bf16.mxu1 %v10375_v0  ;;  %9744 = vmatprep.subr.bf16.mxu0 %v10375_v0 }
 0x4fd   :  { %8845 = vmatmul.mubr.msk.f32.vlgmr.msra.gmra.mrb[22].mxu1 %vm140_vm3, %v10838_v35  ;;  %8856 = vmatmul.mubr.msk.f32.vlgmr.msra.gmra.mrb[22].mxu0 %vm140_vm3, %v10838_v35 }
 0x4fe   :  { %9740 = vmatpush3.bf16.msra.mxu1 %v10699_v59  ;;  %9746 = vmatpush3.bf16.msra.mxu0 %v10701_v60 }
 0x4ff   :  { %9741 = vmatprep.subr.bf16.mxu1 %v10375_v0  ;;  %9747 = vmatprep.subr.bf16.mxu0 %v10375_v0 }
 0x500   :  { %8866 = vmatprep.mubr.msk.f32.mxu1 %vm10376_vm0, %v10377_v1  ;;  %8877 = vmatprep.mubr.msk.f32.mxu0 %vm10376_vm0, %v10377_v1 }
 0x502   :  { %9743 = vmatpush3.bf16.msra.mxu1 %v10717_v4  ;;  %9749 = vmatpush3.bf16.msra.mxu0 %v10719_v6 }
 0x503   :  { %9750 = vmatprep.subr.bf16.mxu1 %v10375_v0  ;;  %9756 = vmatprep.subr.bf16.mxu0 %v10375_v0 }
 0x505   :  { %8867 = vmatmul.mubr.msk.f32.vlgmr.msra.gmra.mrb[24].mxu1 %vm140_vm3, %v10838_v35  ;;  %8878 = vmatmul.mubr.msk.f32.vlgmr.msra.gmra.mrb[24].mxu0 %vm140_vm3, %v10838_v35 }
 0x506   :  { %9752 = vmatpush3.bf16.msra.mxu1 %v10486_v5  ;;  %9758 = vmatpush3.bf16.msra.mxu0 %v10497_v9 }
 0x507   :  { %9753 = vmatprep.subr.bf16.mxu1 %v10375_v0  ;;  %9759 = vmatprep.subr.bf16.mxu0 %v10375_v0 }
 0x508   :  { %8888 = vmatprep.mubr.msk.f32.mxu1 %vm10376_vm0, %v10377_v1  ;;  %8899 = vmatprep.mubr.msk.f32.mxu0 %vm10376_vm0, %v10377_v1 }
 0x50a   :  { %9755 = vmatpush3.bf16.msra.mxu1 %v10506_v12  ;;  %9761 = vmatpush3.bf16.msra.mxu0 %v10510_v13 }
 0x50b   :  { %8902 = vmatprep.subr.mxu1 %v10377_v1  ;;  %8918 = vmatprep.subr.mxu0 %v10377_v1 }
 0x5c8   :  { %v1762_v16 = vpop.f32.mrb[20].mxu1  ;;  %v1832_v36 = vpop.f32.mrb[20].mxu0 }
 0x5c9   :  { %v1833_v38 = vadd.f32 %v1832_v36, %v1762_v16  ;;  %v8824_v39 = vpop.f32.mrb[21].mxu1  ;;  %v8835_v43 = vpop.f32.mrb[21].mxu0 }
 0x5cb   :  { %v1836_v47 = vadd.f32 %v10750_v8, %v1833_v38 }
 0x5cd   :  { %v8044_v49 = vmul.f32 -1.442695, %v1836_v47 }
 0x5cf   :  { %10150 = vpow2.f32 %v8044_v49 }
 0x5d0   :  { %v1909_v56 = vpop.f32.mrb[22].mxu1  ;;  %v1979_v57 = vpop.f32.mrb[22].mxu0 }
 0x5d1   :  { %v1980_v58 = vadd.f32 %v1979_v57, %v1909_v56  ;;  %v8846_v61 = vpop.f32.mrb[23].mxu1  ;;  %v8857_v62 = vpop.f32.mrb[23].mxu0 }
 0x5d3   :  { %v1983_v2 = vadd.f32 %v10756_v24, %v1980_v58 }
 0x5d5   :  { %v8047_v3 = vmul.f32 -1.442695, %v1983_v2 }
 0x5d7   :  { %10152 = vpow2.f32 %v8047_v3 }
 0x5d8   :  { %v2056_v7 = vpop.f32.mrb[24].mxu1  ;;  %v2126_v10 = vpop.f32.mrb[24].mxu0 }
 0x5d9   :  { %v10151_v11 = vpop.eup %10150  ;;  %v8868_v45 = vpop.f32.mrb[25].mxu1  ;;  %v2127_v25 = vadd.f32 %v10762_v48, %v2126_v10  ;;  %v2057_v27 = vadd.f32 %v10767_v55, %v2056_v7 }
 0x5da   :  { %v8879_v19 = vpop.f32.mrb[25].mxu0  ;;  %v1840_v20 = vadd.f32 1.0, %v10151_v11 }
 0x5dc   :  { %10154 = vrcp.f32 %v1840_v20 }
 0x5e1   :  { %v10153_v21 = vpop.eup %10152 }
 0x5e2   :  { %v1987_v23 = vadd.f32 1.0, %v10153_v21 }
 0x5e4   :  { %10156 = vrcp.f32 %v1987_v23 }
 0x5e6   :  { %v10155_v26 = vpop.eup %10154 }
 0x5e7   :  { %v2130_v28 = vmul.f32 %v10155_v26, %v2127_v25 }
 0x5e9   :  { %v2131_v30 = vadd.f32 %v2130_v28, %v2057_v27 }
 0x5eb   :  { %10158 = vtanh.f32 %v2131_v30 }
 0x5ee   :  { %v10157_v32 = vpop.eup %10156 }
 0x5ef   :  { %v2133_v33 = vsub.f32 1.0, %v10157_v32  ;;  %v2135_v36 = vmul.f32 %v10157_v32, %v10838_v35  ;;  %v8051_v35 = vld [vmem:[%s11665_s1 + $0x10] sm:$0xff] }
 0x5f0   :  { %v2217_v43 = vsub.f32 1.0, %v8051_v35 }
 0x5f5   :  { %v10159_v16 = vpop.eup %10158 }
 0x5f6   :  { %v2134_v38 = vmul.f32 %v10159_v16, %v2133_v33 }
 0x5f8   :  { %v10893_v39 = vadd.f32 %v2135_v36, %v2134_v38 }
 0x5fa   :  { %8889 = vmatmul.mubr.msk.f32.vlgmr.msra.gmra.mrb[26].mxu1 %vm140_vm3, %v10893_v39  ;;  %2138 = vst.msk [vmem:[#allocation7 + $0x8] sm:$0xff] %vm140_vm3, %v10893_v39  ;;  %8900 = vmatmul.mubr.msk.f32.vlgmr.msra.gmra.mrb[26].mxu0 %vm140_vm3, %v10893_v39 }
 0x5fb   :  { %8903 = vmatpush3.msk.msra.mxu1 %vm294_vm1, %v10523_v14  ;;  %8904 = vmatprep.mubr.msk.f32.mxu1 %vm10376_vm0, %v10377_v1  ;;  %v8052_v14 = vld [vmem:[%s11664_s0 + $0x10] sm:$0xff] }
 0x5fc   :  { %9762 = vmatprep.subr.bf16.mxu1 %v10375_v0  ;;  %8919 = vmatpush3.msk.msra.mxu0 %vm294_vm1, %v10527_v15  ;;  %v2216_v57 = vmul.f32 %v8052_v14, %v8051_v35 }
 0x5fd   :  { %8920 = vmatprep.mubr.msk.f32.mxu0 %vm10376_vm0, %v10377_v1  ;;  %8923 = vmatprep.subr.mxu0 %v10377_v1 }
 0x6cd   :  { %v2208_v47 = vpop.f32.mrb[26].mxu1  ;;  %v2286_v49 = vpop.f32.mrb[26].mxu0 }
 0x6ce   :  { %v2209_v56 = vadd.f32 %v10539_v17, %v2208_v47  ;;  %v8890_v15 = vpop.f32.mrb[27].mxu1  ;;  %v8901_v58 = vpop.f32.mrb[27].mxu0 }
 0x6d0   :  { %v2218_v61 = vmul.f32 %v2217_v43, %v2209_v56 }
 0x6d2   :  { %v2219_v62 = vadd.f32 %v2218_v61, %v2216_v57 }
 0x6d4   :  { %8905 = vmatmul.mubr.msk.f32.vlgmr.msra.gmra.mrb[28].mxu1 %vm290_vm2, %v2219_v62  ;;  %8921 = vmatmul.mubr.msk.f32.vlgmr.msra.gmra.mrb[28].mxu0 %vm290_vm2, %v2219_v62 }
 0x6d5   :  { %9764 = vmatpush3.bf16.msra.mxu1 %v10551_v29  ;;  %8924 = vmatpush3.msk.msra.mxu0 %vm294_vm1, %v10553_v31 }
 0x6d6   :  { %9765 = vmatprep.subr.bf16.mxu1 %v10375_v0  ;;  %8925 = vmatprep.mubr.msk.f32.mxu0 %vm10376_vm0, %v10377_v1 }
 0x6d7   :  { %8915 = vmatprep.mubr.msk.f32.mxu1 %vm10376_vm0, %v10377_v1  ;;  %9774 = vmatprep.subr.bf16.mxu0 %v10375_v0 }
 0x6d8   :  { %8926 = vmatmul.mubr.msk.f32.vlgmr.msra.gmra.mrb[30].mxu0 %vm290_vm2, %v2219_v62 }
 0x6d9   :  { %9767 = vmatpush3.bf16.msra.mxu1 %v10566_v34  ;;  %9776 = vmatpush3.bf16.msra.mxu0 %v10608_v44 }
 0x6da   :  { %9768 = vmatprep.subr.bf16.mxu1 %v10375_v0  ;;  %9777 = vmatprep.subr.bf16.mxu0 %v10375_v0 }
 0x6db   :  { %8947 = vmatprep.mubr.msk.f32.mxu0 %vm10376_vm0, %v10377_v1 }
 0x6dc   :  { %8916 = vmatmul.mubr.msk.f32.vlgmr.msra.gmra.mrb[30].mxu1 %vm140_vm3, %v10893_v39 }
 0x6dd   :  { %9770 = vmatpush3.bf16.msra.mxu1 %v10582_v37  ;;  %8936 = vmatprep.mubr.msk.f32.mxu1 %vm10376_vm0, %v10377_v1 }
 0x6de   :  { %9771 = vmatprep.subr.bf16.mxu1 %v10375_v0  ;;  %9779 = vmatpush3.bf16.msra.mxu0 %v10622_v50 }
 0x6df   :  { %9786 = vmatprep.subr.bf16.mxu0 %v10375_v0 }
 0x6e1   :  { %9773 = vmatpush3.bf16.msra.mxu1 %v10595_v40 }
 0x6e2   :  { %9780 = vmatprep.subr.bf16.mxu1 %v10375_v0 }
 0x6e4   :  { %8937 = vmatmul.mubr.msk.f32.vlgmr.msra.gmra.mrb[32].mxu1 %vm140_vm3, %v10893_v39 }
 0x6e5   :  { %9782 = vmatpush3.bf16.msra.mxu1 %v10613_v46  ;;  %8958 = vmatprep.mubr.msk.f32.mxu1 %vm10376_vm0, %v10377_v1 }
 0x6e6   :  { %9783 = vmatprep.subr.bf16.mxu1 %v10375_v0 }
 0x6e9   :  { %9785 = vmatpush3.bf16.msra.mxu1 %v10627_v52 }
 0x6ea   :  { %9792 = vmatprep.subr.bf16.mxu1 %v10375_v0 }
 0x7a7   :  { %v2359_v17 = vpop.f32.mrb[28].mxu1  ;;  %v2506_v31 = vpop.f32.mrb[28].mxu0 }
 0x7a8   :  { %v2360_v2 = vadd.f32 %v2359_v17, %v2286_v49  ;;  %v8906_v3 = vpop.f32.mrb[29].mxu1  ;;  %v8922_v7 = vpop.f32.mrb[29].mxu0 }
 0x7aa   :  { %v2363_v10 = vadd.f32 %v10636_v53, %v2360_v2 }
 0x7ab   :  { %v2583_v11 = vpop.f32.mrb[30].mxu0 }
 0x7ac   :  { %v8056_v45 = vmul.f32 -1.442695, %v2363_v10  ;;  %v8927_v19 = vpop.f32.mrb[31].mxu0  ;;  %v2584_v38 = vadd.f32 %v10654_v22, %v2583_v11 }
 0x7ae   :  { %10160 = vpow2.f32 %v8056_v45 }
 0x7af   :  { %v2436_v20 = vpop.f32.mrb[30].mxu1 }
 0x7b0   :  { %v2507_v21 = vadd.f32 %v2506_v31, %v2436_v20  ;;  %v8917_v23 = vpop.f32.mrb[31].mxu1 }
 0x7b2   :  { %v2510_v25 = vadd.f32 %v10642_v63, %v2507_v21 }
 0x7b4   :  { %v8060_v26 = vmul.f32 -1.442695, %v2510_v25 }
 0x7b6   :  { %10162 = vpow2.f32 %v8060_v26 }
 0x7b7   :  { %v2653_v27 = vpop.f32.mrb[32].mxu1 }
 0x7b8   :  { %v10161_v28 = vpop.eup %10160  ;;  %v8938_v30 = vpop.f32.mrb[33].mxu1  ;;  %v2654_v53 = vadd.f32 %v10648_v18, %v2653_v27 }
 0x7b9   :  { %v2367_v32 = vadd.f32 1.0, %v10161_v28 }
 0x7bb   :  { %10164 = vrcp.f32 %v2367_v32 }
 0x7c0   :  { %v10163_v33 = vpop.eup %10162 }
 0x7c1   :  { %v2514_v16 = vadd.f32 1.0, %v10163_v33 }
 0x7c3   :  { %10166 = vrcp.f32 %v2514_v16 }
 0x7c5   :  { %v10165_v36 = vpop.eup %10164 }
 0x7c6   :  { %v2657_v35 = vmul.f32 %v10165_v36, %v2654_v53 }
 0x7c8   :  { %v2658_v14 = vadd.f32 %v2657_v35, %v2584_v38 }
 0x7ca   :  { %10168 = vtanh.f32 %v2658_v14 }
 0x7cd   :  { %v10167_v43 = vpop.eup %10166 }
 0x7ce   :  { %v2660_v47 = vsub.f32 1.0, %v10167_v43  ;;  %v2662_v56 = vmul.f32 %v10167_v43, %v10893_v39 }
 0x7d4   :  { %v10169_v49 = vpop.eup %10168 }
 0x7d5   :  { %v2661_v57 = vmul.f32 %v10169_v49, %v2660_v47 }
 0x7d7   :  { %v10959_v15 = vadd.f32 %v2662_v56, %v2661_v57  ;;  %v11022_v57 = vld [vmem:[#allocation2] sm:$0xf] }
 0x7d9   :  { %8948 = vmatmul.mubr.msk.f32.vlgmr.msra.gmra.mrb[32].mxu0 %vm140_vm3, %v10959_v15  ;;  %8959 = vmatmul.mubr.msk.f32.vlgmr.msra.gmra.mrb[34].mxu1 %vm140_vm3, %v10959_v15 }
 0x7da   :  { %9788 = vmatpush3.bf16.msra.mxu0 %v10663_v41  ;;  %9794 = vmatpush3.bf16.msra.mxu1 %v10665_v42 }
 0x7db   :  { %9789 = vmatprep.subr.bf16.mxu0 %v10375_v0  ;;  %9795 = vmatprep.subr.bf16.mxu1 %v10375_v0 }
 0x7dc   :  { %8969 = vmatprep.mubr.msk.f32.mxu0 %vm10376_vm0, %v10377_v1  ;;  %8980 = vmatprep.mubr.msk.f32.mxu1 %vm10376_vm0, %v10377_v1 }
 0x7de   :  { %9791 = vmatpush3.bf16.msra.mxu0 %v10681_v51  ;;  %9797 = vmatpush3.bf16.msra.mxu1 %v10683_v54 }
 0x7df   :  { %9798 = vmatprep.subr.bf16.mxu0 %v10375_v0  ;;  %9804 = vmatprep.subr.bf16.mxu1 %v10375_v0 }
 0x7e1   :  { %8970 = vmatmul.mubr.msk.f32.vlgmr.msra.gmra.mrb[34].mxu0 %vm140_vm3, %v10959_v15  ;;  %8981 = vmatmul.mubr.msk.f32.vlgmr.msra.gmra.mrb[36].mxu1 %vm140_vm3, %v10959_v15 }
 0x7e2   :  { %9800 = vmatpush3.bf16.msra.mxu0 %v10699_v59  ;;  %9806 = vmatpush3.bf16.msra.mxu1 %v10701_v60 }
 0x7e3   :  { %9801 = vmatprep.subr.bf16.mxu0 %v10375_v0  ;;  %9807 = vmatprep.subr.bf16.mxu1 %v10375_v0 }
 0x7e4   :  { %8991 = vmatprep.mubr.msk.f32.mxu0 %vm10376_vm0, %v10377_v1  ;;  %9002 = vmatprep.mubr.msk.f32.mxu1 %vm10376_vm0, %v10377_v1 }
 0x7e6   :  { %9803 = vmatpush3.bf16.msra.mxu0 %v10717_v4  ;;  %9809 = vmatpush3.bf16.msra.mxu1 %v10719_v6 }
 0x7e7   :  { %9810 = vmatprep.subr.bf16.mxu0 %v10375_v0  ;;  %9816 = vmatprep.subr.bf16.mxu1 %v10375_v0 }
 0x7e9   :  { %8992 = vmatmul.mubr.msk.f32.vlgmr.msra.gmra.mrb[36].mxu0 %vm140_vm3, %v10959_v15  ;;  %9003 = vmatmul.mubr.msk.f32.vlgmr.msra.gmra.mrb[38].mxu1 %vm140_vm3, %v10959_v15 }
 0x7ea   :  { %9812 = vmatpush3.bf16.msra.mxu0 %v10486_v5  ;;  %9818 = vmatpush3.bf16.msra.mxu1 %v10497_v9 }
 0x7eb   :  { %9813 = vmatprep.subr.bf16.mxu0 %v10375_v0  ;;  %9819 = vmatprep.subr.bf16.mxu1 %v10375_v0 }
 0x7ec   :  { %9013 = vmatprep.mubr.msk.f32.mxu0 %vm10376_vm0, %v10377_v1  ;;  %9024 = vmatprep.mubr.msk.f32.mxu1 %vm10376_vm0, %v10377_v1 }
 0x7ee   :  { %9815 = vmatpush3.bf16.msra.mxu0 %v10506_v12  ;;  %9821 = vmatpush3.bf16.msra.mxu1 %v10510_v13 }
 0x7ef   :  { %9027 = vmatprep.subr.mxu0 %v10377_v1  ;;  %9043 = vmatprep.subr.mxu1 %v10377_v1 }
 0x8ac   :  { %v2733_v39 = vpop.f32.mrb[32].mxu0  ;;  %v2803_v58 = vpop.f32.mrb[34].mxu1 }
 0x8ad   :  { %v2804_v61 = vadd.f32 %v2803_v58, %v2733_v39  ;;  %v8949_v62 = vpop.f32.mrb[33].mxu0  ;;  %v8960_v17 = vpop.f32.mrb[35].mxu1  ;;  %v8073_v39 = vld [vmem:[%s11665_s1 + $0x18] sm:$0xff] }
 0x8ae   :  { %v8074_v58 = vld [vmem:[%s11664_s0 + $0x18] sm:$0xff] }
 0x8af   :  { %v2807_v31 = vadd.f32 %v10750_v8, %v2804_v61  ;;  %v3188_v61 = vsub.f32 1.0, %v8073_v39 }
 0x8b1   :  { %v8066_v2 = vmul.f32 -1.442695, %v2807_v31  ;;  %v11045_v31 = vld [vmem:[%s11675_s11] ss:$0 sm:$0xff] }
 0x8b3   :  { %10170 = vpow2.f32 %v8066_v2 }
 0x8b4   :  { %v2880_v3 = vpop.f32.mrb[34].mxu0  ;;  %v2950_v7 = vpop.f32.mrb[36].mxu1 }
 0x8b5   :  { %v2951_v10 = vadd.f32 %v2950_v7, %v2880_v3  ;;  %v8971_v11 = vpop.f32.mrb[35].mxu0  ;;  %v8982_v45 = vpop.f32.mrb[37].mxu1  ;;  %v3187_v3 = vmul.f32 %v8074_v58, %v8073_v39 }
 0x8b7   :  { %v2954_v19 = vadd.f32 %v10756_v24, %v2951_v10 }
 0x8b9   :  { %v8069_v20 = vmul.f32 -1.442695, %v2954_v19  ;;  %v11051_v19 = vld [vmem:[#allocation2 + $0x8] sm:$0xf] }
 0x8bb   :  { %10172 = vpow2.f32 %v8069_v20 }
 0x8bc   :  { %v3027_v21 = vpop.f32.mrb[36].mxu0  ;;  %v3097_v23 = vpop.f32.mrb[38].mxu1 }
 0x8bd   :  { %v10171_v25 = vpop.eup %10170  ;;  %v8993_v26 = vpop.f32.mrb[37].mxu0  ;;  %v3098_v33 = vadd.f32 %v10762_v48, %v3097_v23  ;;  %v3028_v53 = vadd.f32 %v10767_v55, %v3027_v21 }
 0x8be   :  { %v9004_v27 = vpop.f32.mrb[39].mxu1  ;;  %v2811_v28 = vadd.f32 1.0, %v10171_v25 }
 0x8bf   :  { %v11089_v27 = vld [vmem:[%s11668_s4] ss:$0 sm:$0xff] }
 0x8c0   :  { %10174 = vrcp.f32 %v2811_v28 }
 0x8c5   :  { %v10173_v30 = vpop.eup %10172 }
 0x8c6   :  { %v2958_v32 = vadd.f32 1.0, %v10173_v30 }
 0x8c8   :  { %10176 = vrcp.f32 %v2958_v32 }
 0x8ca   :  { %v10175_v16 = vpop.eup %10174 }
 0x8cb   :  { %v3101_v36 = vmul.f32 %v10175_v16, %v3098_v33 }
 0x8cd   :  { %v3102_v38 = vadd.f32 %v3101_v36, %v3028_v53 }
 0x8cf   :  { %10178 = vtanh.f32 %v3102_v38 }
 0x8d2   :  { %v10177_v35 = vpop.eup %10176 }
 0x8d3   :  { %v3104_v14 = vsub.f32 1.0, %v10177_v35  ;;  %v3106_v47 = vmul.f32 %v10177_v35, %v10959_v15  ;;  %v11029_v15 = vld [vmem:[#allocation2 + $0x4] sm:$0xf] }
 0x8d9   :  { %v10179_v43 = vpop.eup %10178 }
 0x8da   :  { %v3105_v49 = vmul.f32 %v10179_v43, %v3104_v14 }
 0x8dc   :  { %v11014_v56 = vadd.f32 %v3106_v47, %v3105_v49 }
 0x8de   :  { %9014 = vmatmul.mubr.msk.f32.vlgmr.msra.gmra.mrb[38].mxu0 %vm140_vm3, %v11014_v56  ;;  %3109 = vst.msk [vmem:[#allocation7 + $0x10] sm:$0xff] %vm140_vm3, %v11014_v56  ;;  %9025 = vmatmul.mubr.msk.f32.vlgmr.msra.gmra.mrb[40].mxu1 %vm140_vm3, %v11014_v56 }
 0x8df   :  { %9028 = vmatpush3.msk.msra.mxu0 %vm294_vm1, %v11022_v57  ;;  %9029 = vmatprep.mubr.msk.f32.mxu0 %vm10376_vm0, %v10377_v1 }
 0x8e0   :  { %9822 = vmatprep.subr.bf16.mxu0 %v10375_v0  ;;  %9044 = vmatpush3.msk.msra.mxu1 %vm294_vm1, %v11029_v15 }
 0x8e1   :  { %9045 = vmatprep.mubr.msk.f32.mxu1 %vm10376_vm0, %v10377_v1  ;;  %9048 = vmatprep.subr.mxu1 %v10377_v1 }
 0x9b1   :  { %v3179_v62 = vpop.f32.mrb[38].mxu0  ;;  %v3257_v17 = vpop.f32.mrb[40].mxu1 }
 0x9b2   :  { %v3180_v2 = vadd.f32 %v11045_v31, %v3179_v62  ;;  %v9015_v7 = vpop.f32.mrb[39].mxu0  ;;  %v9026_v10 = vpop.f32.mrb[41].mxu1 }
 0x9b4   :  { %v3189_v11 = vmul.f32 %v3188_v61, %v3180_v2 }
 0x9b6   :  { %v3190_v45 = vadd.f32 %v3189_v11, %v3187_v3 }
 0x9b8   :  { %9030 = vmatmul.mubr.msk.f32.vlgmr.msra.gmra.mrb[40].mxu0 %vm290_vm2, %v3190_v45  ;;  %9046 = vmatmul.mubr.msk.f32.vlgmr.msra.gmra.mrb[42].mxu1 %vm290_vm2, %v3190_v45 }
 0x9b9   :  { %9824 = vmatpush3.bf16.msra.mxu0 %v10551_v29  ;;  %9049 = vmatpush3.msk.msra.mxu1 %vm294_vm1, %v11051_v19 }
 0x9ba   :  { %9825 = vmatprep.subr.bf16.mxu0 %v10375_v0  ;;  %9050 = vmatprep.mubr.msk.f32.mxu1 %vm10376_vm0, %v10377_v1 }
 0x9bb   :  { %9040 = vmatprep.mubr.msk.f32.mxu0 %vm10376_vm0, %v10377_v1  ;;  %9834 = vmatprep.subr.bf16.mxu1 %v10375_v0 }
 0x9bc   :  { %9051 = vmatmul.mubr.msk.f32.vlgmr.msra.gmra.mrb[44].mxu1 %vm290_vm2, %v3190_v45 }
 0x9bd   :  { %9827 = vmatpush3.bf16.msra.mxu0 %v10566_v34  ;;  %9836 = vmatpush3.bf16.msra.mxu1 %v10608_v44 }
 0x9be   :  { %9828 = vmatprep.subr.bf16.mxu0 %v10375_v0  ;;  %9837 = vmatprep.subr.bf16.mxu1 %v10375_v0 }
 0x9bf   :  { %9072 = vmatprep.mubr.msk.f32.mxu1 %vm10376_vm0, %v10377_v1 }
 0x9c0   :  { %9041 = vmatmul.mubr.msk.f32.vlgmr.msra.gmra.mrb[42].mxu0 %vm140_vm3, %v11014_v56 }
 0x9c1   :  { %9830 = vmatpush3.bf16.msra.mxu0 %v10582_v37  ;;  %9061 = vmatprep.mubr.msk.f32.mxu0 %vm10376_vm0, %v10377_v1 }
 0x9c2   :  { %9831 = vmatprep.subr.bf16.mxu0 %v10375_v0  ;;  %9839 = vmatpush3.bf16.msra.mxu1 %v10622_v50 }
 0x9c3   :  { %9846 = vmatprep.subr.bf16.mxu1 %v10375_v0 }
 0x9c5   :  { %9833 = vmatpush3.bf16.msra.mxu0 %v10595_v40 }
 0x9c6   :  { %9840 = vmatprep.subr.bf16.mxu0 %v10375_v0 }
 0x9c8   :  { %9062 = vmatmul.mubr.msk.f32.vlgmr.msra.gmra.mrb[44].mxu0 %vm140_vm3, %v11014_v56 }
 0x9c9   :  { %9842 = vmatpush3.bf16.msra.mxu0 %v10613_v46  ;;  %9083 = vmatprep.mubr.msk.f32.mxu0 %vm10376_vm0, %v10377_v1 }
 0x9ca   :  { %9843 = vmatprep.subr.bf16.mxu0 %v10375_v0 }
 0x9cd   :  { %9845 = vmatpush3.bf16.msra.mxu0 %v10627_v52 }
 0x9ce   :  { %9852 = vmatprep.subr.bf16.mxu0 %v10375_v0 }
 0xa8b   :  { %v3330_v20 = vpop.f32.mrb[40].mxu0  ;;  %v3477_v21 = vpop.f32.mrb[42].mxu1 }
 0xa8c   :  { %v3331_v23 = vadd.f32 %v3330_v20, %v3257_v17  ;;  %v9031_v25 = vpop.f32.mrb[41].mxu0  ;;  %v9047_v26 = vpop.f32.mrb[43].mxu1 }
 0xa8e   :  { %v3334_v28 = vadd.f32 %v11089_v27, %v3331_v23 }
 0xa8f   :  { %v3554_v30 = vpop.f32.mrb[44].mxu1 }
 0xa90   :  { %v8078_v32 = vmul.f32 -1.442695, %v3334_v28  ;;  %v9052_v33 = vpop.f32.mrb[45].mxu1  ;;  %v3555_v17 = vadd.f32 %v10654_v22, %v3554_v30 }
 0xa92   :  { %10180 = vpow2.f32 %v8078_v32 }
 0xa93   :  { %v3407_v16 = vpop.f32.mrb[42].mxu0 }
 0xa94   :  { %v3478_v53 = vadd.f32 %v3477_v21, %v3407_v16  ;;  %v9042_v36 = vpop.f32.mrb[43].mxu0 }
 0xa96   :  { %v3481_v38 = vadd.f32 %v10642_v63, %v3478_v53 }
 0xa98   :  { %v8082_v35 = vmul.f32 -1.442695, %v3481_v38 }
 0xa9a   :  { %10182 = vpow2.f32 %v8082_v35 }
 0xa9b   :  { %v3624_v14 = vpop.f32.mrb[44].mxu0 }
 0xa9c   :  { %v10181_v43 = vpop.eup %10180  ;;  %v9063_v47 = vpop.f32.mrb[45].mxu0  ;;  %v3625_v61 = vadd.f32 %v10648_v18, %v3624_v14 }
 0xa9d   :  { %v3338_v49 = vadd.f32 1.0, %v10181_v43 }
 0xa9f   :  { %10184 = vrcp.f32 %v3338_v49 }
 0xaa4   :  { %v10183_v39 = vpop.eup %10182 }
 0xaa5   :  { %v3485_v58 = vadd.f32 1.0, %v10183_v39 }
 0xaa7   :  { %10186 = vrcp.f32 %v3485_v58 }
 0xaa9   :  { %v10185_v62 = vpop.eup %10184 }
 0xaaa   :  { %v3628_v2 = vmul.f32 %v10185_v62, %v3625_v61 }
 0xaac   :  { %v3629_v3 = vadd.f32 %v3628_v2, %v3555_v17 }
 0xaae   :  { %10188 = vtanh.f32 %v3629_v3 }
 0xab1   :  { %v10187_v7 = vpop.eup %10186 }
 0xab2   :  { %v3631_v63 = vsub.f32 1.0, %v10187_v7  ;;  %v3633_v11 = vmul.f32 %v10187_v7, %v11014_v56 }
 0xab8   :  { %v10189_v10 = vpop.eup %10188 }
 0xab9   :  { %v3632_v45 = vmul.f32 %v10189_v10, %v3631_v63 }
 0xabb   :  { %v11096_v20 = vadd.f32 %v3633_v11, %v3632_v45 }
 0xabd   :  { %9073 = vmatmul.mubr.msk.f32.vlgmr.msra.gmra.mrb[46].mxu1 %vm140_vm3, %v11096_v20  ;;  %9084 = vmatmul.mubr.msk.f32.vlgmr.msra.gmra.mrb[46].mxu0 %vm140_vm3, %v11096_v20 }
 0xabe   :  { %9848 = vmatpush3.bf16.msra.mxu1 %v10663_v41  ;;  %9854 = vmatpush3.bf16.msra.mxu0 %v10665_v42 }
 0xabf   :  { %9849 = vmatprep.subr.bf16.mxu1 %v10375_v0  ;;  %9855 = vmatprep.subr.bf16.mxu0 %v10375_v0 }
 0xac0   :  { %9094 = vmatprep.mubr.msk.f32.mxu1 %vm10376_vm0, %v10377_v1  ;;  %9105 = vmatprep.mubr.msk.f32.mxu0 %vm10376_vm0, %v10377_v1 }
 0xac2   :  { %9851 = vmatpush3.bf16.msra.mxu1 %v10681_v51  ;;  %9857 = vmatpush3.bf16.msra.mxu0 %v10683_v54 }
 0xac3   :  { %9858 = vmatprep.subr.bf16.mxu1 %v10375_v0  ;;  %9864 = vmatprep.subr.bf16.mxu0 %v10375_v0 }
 0xac5   :  { %9095 = vmatmul.mubr.msk.f32.vlgmr.msra.gmra.mrb[48].mxu1 %vm140_vm3, %v11096_v20  ;;  %9106 = vmatmul.mubr.msk.f32.vlgmr.msra.gmra.mrb[48].mxu0 %vm140_vm3, %v11096_v20 }
 0xac6   :  { %9860 = vmatpush3.bf16.msra.mxu1 %v10699_v59  ;;  %9866 = vmatpush3.bf16.msra.mxu0 %v10701_v60 }
 0xac7   :  { %9861 = vmatprep.subr.bf16.mxu1 %v10375_v0  ;;  %9867 = vmatprep.subr.bf16.mxu0 %v10375_v0 }
 0xac8   :  { %9116 = vmatprep.mubr.msk.f32.mxu1 %vm10376_vm0, %v10377_v1  ;;  %9127 = vmatprep.mubr.msk.f32.mxu0 %vm10376_vm0, %v10377_v1 }
 0xaca   :  { %9863 = vmatpush3.bf16.msra.mxu1 %v10717_v4  ;;  %9869 = vmatpush3.bf16.msra.mxu0 %v10719_v6 }
 0xacb   :  { %9870 = vmatprep.subr.bf16.mxu1 %v10375_v0  ;;  %9876 = vmatprep.subr.bf16.mxu0 %v10375_v0 }
 0xacd   :  { %9117 = vmatmul.mubr.msk.f32.vlgmr.msra.gmra.mrb[50].mxu1 %vm140_vm3, %v11096_v20  ;;  %9128 = vmatmul.mubr.msk.f32.vlgmr.msra.gmra.mrb[50].mxu0 %vm140_vm3, %v11096_v20 }
 0xace   :  { %9872 = vmatpush3.bf16.msra.mxu1 %v10486_v5  ;;  %9878 = vmatpush3.bf16.msra.mxu0 %v10497_v9 }
 0xacf   :  { %9873 = vmatprep.subr.bf16.mxu1 %v10375_v0  ;;  %9879 = vmatprep.subr.bf16.mxu0 %v10375_v0 }
 0xad0   :  { %9138 = vmatprep.mubr.msk.f32.mxu1 %vm10376_vm0, %v10377_v1  ;;  %9149 = vmatprep.mubr.msk.f32.mxu0 %vm10376_vm0, %v10377_v1 }
 0xad2   :  { %9875 = vmatpush3.bf16.msra.mxu1 %v10506_v12  ;;  %9881 = vmatpush3.bf16.msra.mxu0 %v10510_v13 }
 0xad3   :  { %9152 = vmatprep.subr.mxu1 %v10377_v1  ;;  %9168 = vmatprep.subr.mxu0 %v10377_v1 }
 0xb90   :  { %v3704_v18 = vpop.f32.mrb[46].mxu1  ;;  %v3774_v22 = vpop.f32.mrb[46].mxu0 }
 0xb91   :  { %v3775_v56 = vadd.f32 %v3774_v22, %v3704_v18  ;;  %v9074_v21 = vpop.f32.mrb[47].mxu1  ;;  %v9085_v23 = vpop.f32.mrb[47].mxu0 }
 0xb93   :  { %v3778_v25 = vadd.f32 %v10750_v8, %v3775_v56 }
 0xb95   :  { %v8088_v26 = vmul.f32 -1.442695, %v3778_v25 }
 0xb97   :  { %10190 = vpow2.f32 %v8088_v26 }
 0xb98   :  { %v3851_v28 = vpop.f32.mrb[48].mxu1  ;;  %v3921_v30 = vpop.f32.mrb[48].mxu0 }
 0xb99   :  { %v3922_v32 = vadd.f32 %v3921_v30, %v3851_v28  ;;  %v9096_v33 = vpop.f32.mrb[49].mxu1  ;;  %v9107_v16 = vpop.f32.mrb[49].mxu0 }
 0xb9b   :  { %v3925_v53 = vadd.f32 %v10756_v24, %v3922_v32 }
 0xb9d   :  { %v8091_v36 = vmul.f32 -1.442695, %v3925_v53 }
 0xb9f   :  { %10192 = vpow2.f32 %v8091_v36 }
 0xba0   :  { %v3998_v38 = vpop.f32.mrb[50].mxu1  ;;  %v4068_v35 = vpop.f32.mrb[50].mxu0 }
 0xba1   :  { %v10191_v14 = vpop.eup %10190  ;;  %v9118_v43 = vpop.f32.mrb[51].mxu1  ;;  %v4069_v58 = vadd.f32 %v10762_v48, %v4068_v35  ;;  %v3999_v62 = vadd.f32 %v10767_v55, %v3998_v38  ;;  %v8095_v48 = vld [vmem:[%s11665_s1 + $0x20] sm:$0xff] }
 0xba2   :  { %v9129_v47 = vpop.f32.mrb[51].mxu0  ;;  %v3782_v49 = vadd.f32 1.0, %v10191_v14  ;;  %v8096_v55 = vld [vmem:[%s11664_s0 + $0x20] sm:$0xff]  ;;  %v4159_v45 = vsub.f32 1.0, %v8095_v48 }
 0xba3   :  { %v4158_v56 = vmul.f32 %v8096_v55, %v8095_v48 }
 0xba4   :  { %10194 = vrcp.f32 %v3782_v49  ;;  %v11216_v49 = vld [vmem:[%s11668_s4 + $0x1] ss:$0 sm:$0xff] }
 0xba9   :  { %v10193_v39 = vpop.eup %10192 }
 0xbaa   :  { %v3929_v8 = vadd.f32 1.0, %v10193_v39 }
 0xbac   :  { %10196 = vrcp.f32 %v3929_v8 }
 0xbae   :  { %v10195_v61 = vpop.eup %10194 }
 0xbaf   :  { %v4072_v17 = vmul.f32 %v10195_v61, %v4069_v58 }
 0xbb1   :  { %v4073_v2 = vadd.f32 %v4072_v17, %v3999_v62 }
 0xbb3   :  { %10198 = vtanh.f32 %v4073_v2 }
 0xbb6   :  { %v10197_v24 = vpop.eup %10196 }
 0xbb7   :  { %v4075_v3 = vsub.f32 1.0, %v10197_v24  ;;  %v4077_v63 = vmul.f32 %v10197_v24, %v11096_v20 }
 0xbbd   :  { %v10199_v7 = vpop.eup %10198 }
 0xbbe   :  { %v4076_v10 = vmul.f32 %v10199_v7, %v4075_v3  ;;  %v11222_v3 = vld [vmem:[%s11669_s5] ss:$0 sm:$0xff] }
 0xbc0   :  { %v11151_v11 = vadd.f32 %v4077_v63, %v4076_v10  ;;  %v11228_v10 = vld [vmem:[%s11668_s4 + $0x2] ss:$0 sm:$0xff] }
 0xbc2   :  { %9139 = vmatmul.mubr.msk.f32.vlgmr.msra.gmra.mrb[52].mxu1 %vm140_vm3, %v11151_v11  ;;  %4080 = vst.msk [vmem:[#allocation7 + $0x18] sm:$0xff] %vm140_vm3, %v11151_v11  ;;  %9150 = vmatmul.mubr.msk.f32.vlgmr.msra.gmra.mrb[52].mxu0 %vm140_vm3, %v11151_v11 }
 0xbc3   :  { %9153 = vmatpush3.msk.msra.mxu1 %vm294_vm1, %v11022_v57  ;;  %9154 = vmatprep.mubr.msk.f32.mxu1 %vm10376_vm0, %v10377_v1 }
 0xbc4   :  { %9882 = vmatprep.subr.bf16.mxu1 %v10375_v0  ;;  %9169 = vmatpush3.msk.msra.mxu0 %vm294_vm1, %v11029_v15 }
 0xbc5   :  { %9170 = vmatprep.mubr.msk.f32.mxu0 %vm10376_vm0, %v10377_v1  ;;  %9173 = vmatprep.subr.mxu0 %v10377_v1 }
 0xc95   :  { %v4150_v20 = vpop.f32.mrb[52].mxu1  ;;  %v4228_v18 = vpop.f32.mrb[52].mxu0 }
 0xc96   :  { %v4151_v22 = vadd.f32 %v11045_v31, %v4150_v20  ;;  %v9140_v21 = vpop.f32.mrb[53].mxu1  ;;  %v9151_v23 = vpop.f32.mrb[53].mxu0 }
 0xc98   :  { %v4160_v25 = vmul.f32 %v4159_v45, %v4151_v22 }
 0xc9a   :  { %v4161_v26 = vadd.f32 %v4160_v25, %v4158_v56 }
 0xc9c   :  { %9155 = vmatmul.mubr.msk.f32.vlgmr.msra.gmra.mrb[54].mxu1 %vm290_vm2, %v4161_v26  ;;  %9171 = vmatmul.mubr.msk.f32.vlgmr.msra.gmra.mrb[54].mxu0 %vm290_vm2, %v4161_v26 }
 0xc9d   :  { %9884 = vmatpush3.bf16.msra.mxu1 %v10551_v29  ;;  %9174 = vmatpush3.msk.msra.mxu0 %vm294_vm1, %v11051_v19 }
 0xc9e   :  { %9885 = vmatprep.subr.bf16.mxu1 %v10375_v0  ;;  %9175 = vmatprep.mubr.msk.f32.mxu0 %vm10376_vm0, %v10377_v1 }
 0xc9f   :  { %9165 = vmatprep.mubr.msk.f32.mxu1 %vm10376_vm0, %v10377_v1  ;;  %9894 = vmatprep.subr.bf16.mxu0 %v10375_v0 }
 0xca0   :  { %9176 = vmatmul.mubr.msk.f32.vlgmr.msra.gmra.mrb[56].mxu0 %vm290_vm2, %v4161_v26 }
 0xca1   :  { %9887 = vmatpush3.bf16.msra.mxu1 %v10566_v34  ;;  %9896 = vmatpush3.bf16.msra.mxu0 %v10608_v44 }
 0xca2   :  { %9888 = vmatprep.subr.bf16.mxu1 %v10375_v0  ;;  %9897 = vmatprep.subr.bf16.mxu0 %v10375_v0 }
 0xca3   :  { %9197 = vmatprep.mubr.msk.f32.mxu0 %vm10376_vm0, %v10377_v1 }
 0xca4   :  { %9166 = vmatmul.mubr.msk.f32.vlgmr.msra.gmra.mrb[56].mxu1 %vm140_vm3, %v11151_v11 }
 0xca5   :  { %9890 = vmatpush3.bf16.msra.mxu1 %v10582_v37  ;;  %9186 = vmatprep.mubr.msk.f32.mxu1 %vm10376_vm0, %v10377_v1 }
 0xca6   :  { %9891 = vmatprep.subr.bf16.mxu1 %v10375_v0  ;;  %9899 = vmatpush3.bf16.msra.mxu0 %v10622_v50 }
 0xca7   :  { %9906 = vmatprep.subr.bf16.mxu0 %v10375_v0 }
 0xca9   :  { %9893 = vmatpush3.bf16.msra.mxu1 %v10595_v40 }
 0xcaa   :  { %9900 = vmatprep.subr.bf16.mxu1 %v10375_v0 }
 0xcac   :  { %9187 = vmatmul.mubr.msk.f32.vlgmr.msra.gmra.mrb[58].mxu1 %vm140_vm3, %v11151_v11 }
 0xcad   :  { %9902 = vmatpush3.bf16.msra.mxu1 %v10613_v46  ;;  %9208 = vmatprep.mubr.msk.f32.mxu1 %vm10376_vm0, %v10377_v1 }
 0xcae   :  { %9903 = vmatprep.subr.bf16.mxu1 %v10375_v0 }
 0xcb1   :  { %9905 = vmatpush3.bf16.msra.mxu1 %v10627_v52 }
 0xcb2   :  { %9912 = vmatprep.subr.bf16.mxu1 %v10375_v0 }
 0xd6f   :  { %v4301_v28 = vpop.f32.mrb[54].mxu1  ;;  %v4448_v30 = vpop.f32.mrb[54].mxu0 }
 0xd70   :  { %v4302_v32 = vadd.f32 %v4301_v28, %v4228_v18  ;;  %v9156_v33 = vpop.f32.mrb[55].mxu1  ;;  %v9172_v16 = vpop.f32.mrb[55].mxu0 }
 0xd72   :  { %v4305_v53 = vadd.f32 %v11089_v27, %v4302_v32  ;;  %v11285_v32 = vld [vmem:[%s11672_s8] ss:$0 sm:$0xff] }
 0xd73   :  { %v4525_v36 = vpop.f32.mrb[56].mxu0 }
 0xd74   :  { %v8100_v38 = vmul.f32 -1.442695, %v4305_v53  ;;  %v9177_v35 = vpop.f32.mrb[57].mxu0  ;;  %v4526_v48 = vadd.f32 %v11228_v10, %v4525_v36 }
 0xd76   :  { %10200 = vpow2.f32 %v8100_v38 }
 0xd77   :  { %v4378_v14 = vpop.f32.mrb[56].mxu1 }
 0xd78   :  { %v4449_v43 = vadd.f32 %v4448_v30, %v4378_v14  ;;  %v9167_v47 = vpop.f32.mrb[57].mxu1 }
 0xd7a   :  { %v4452_v39 = vadd.f32 %v11216_v49, %v4449_v43  ;;  %v11291_v43 = vld [vmem:[%s11672_s8 + $0x1] ss:$0 sm:$0xff] }
 0xd7c   :  { %v8104_v8 = vmul.f32 -1.442695, %v4452_v39 }
 0xd7e   :  { %10202 = vpow2.f32 %v8104_v8 }
 0xd7f   :  { %v4595_v58 = vpop.f32.mrb[58].mxu1 }
 0xd80   :  { %v10201_v61 = vpop.eup %10200  ;;  %v9188_v62 = vpop.f32.mrb[59].mxu1  ;;  %v4596_v7 = vadd.f32 %v11222_v3, %v4595_v58 }
 0xd81   :  { %v4309_v17 = vadd.f32 1.0, %v10201_v61 }
 0xd83   :  { %10204 = vrcp.f32 %v4309_v17 }
 0xd88   :  { %v10203_v2 = vpop.eup %10202 }
 0xd89   :  { %v4456_v24 = vadd.f32 1.0, %v10203_v2 }
 0xd8b   :  { %10206 = vrcp.f32 %v4456_v24 }
 0xd8d   :  { %v10205_v63 = vpop.eup %10204 }
 0xd8e   :  { %v4599_v55 = vmul.f32 %v10205_v63, %v4596_v7  ;;  %v11297_v63 = vld [vmem:[%s11673_s9] ss:$0 sm:$0xff] }
 0xd90   :  { %v4600_v45 = vadd.f32 %v4599_v55, %v4526_v48 }
 0xd92   :  { %10208 = vtanh.f32 %v4600_v45  ;;  %v11303_v45 = vld [vmem:[%s11672_s8 + $0x2] ss:$0 sm:$0xff] }
 0xd95   :  { %v10207_v20 = vpop.eup %10206 }
 0xd96   :  { %v4602_v18 = vsub.f32 1.0, %v10207_v20  ;;  %v4604_v56 = vmul.f32 %v10207_v20, %v11151_v11 }
 0xd9c   :  { %v10209_v22 = vpop.eup %10208 }
 0xd9d   :  { %v4603_v21 = vmul.f32 %v10209_v22, %v4602_v18 }
 0xd9f   :  { %v11232_v23 = vadd.f32 %v4604_v56, %v4603_v21 }
 0xda1   :  { %9198 = vmatmul.mubr.msk.f32.vlgmr.msra.gmra.mrb[58].mxu0 %vm140_vm3, %v11232_v23  ;;  %9209 = vmatmul.mubr.msk.f32.vlgmr.msra.gmra.mrb[60].mxu1 %vm140_vm3, %v11232_v23 }
 0xda2   :  { %9908 = vmatpush3.bf16.msra.mxu0 %v10663_v41  ;;  %9914 = vmatpush3.bf16.msra.mxu1 %v10665_v42 }
 0xda3   :  { %9909 = vmatprep.subr.bf16.mxu0 %v10375_v0  ;;  %9915 = vmatprep.subr.bf16.mxu1 %v10375_v0 }
 0xda4   :  { %9219 = vmatprep.mubr.msk.f32.mxu0 %vm10376_vm0, %v10377_v1  ;;  %9230 = vmatprep.mubr.msk.f32.mxu1 %vm10376_vm0, %v10377_v1 }
 0xda6   :  { %9911 = vmatpush3.bf16.msra.mxu0 %v10681_v51  ;;  %9917 = vmatpush3.bf16.msra.mxu1 %v10683_v54 }
 0xda7   :  { %9918 = vmatprep.subr.bf16.mxu0 %v10375_v0  ;;  %9924 = vmatprep.subr.bf16.mxu1 %v10375_v0 }
 0xda9   :  { %9220 = vmatmul.mubr.msk.f32.vlgmr.msra.gmra.mrb[60].mxu0 %vm140_vm3, %v11232_v23  ;;  %9231 = vmatmul.mubr.msk.f32.vlgmr.msra.gmra.mrb[62].mxu1 %vm140_vm3, %v11232_v23 }
 0xdaa   :  { %9920 = vmatpush3.bf16.msra.mxu0 %v10699_v59  ;;  %9926 = vmatpush3.bf16.msra.mxu1 %v10701_v60 }
 0xdab   :  { %9921 = vmatprep.subr.bf16.mxu0 %v10375_v0  ;;  %9927 = vmatprep.subr.bf16.mxu1 %v10375_v0 }
 0xdac   :  { %9241 = vmatprep.mubr.msk.f32.mxu0 %vm10376_vm0, %v10377_v1  ;;  %9252 = vmatprep.mubr.msk.f32.mxu1 %vm10376_vm0, %v10377_v1 }
 0xdae   :  { %9923 = vmatpush3.bf16.msra.mxu0 %v10717_v4  ;;  %9929 = vmatpush3.bf16.msra.mxu1 %v10719_v6 }
 0xdaf   :  { %9930 = vmatprep.subr.bf16.mxu0 %v10375_v0  ;;  %9936 = vmatprep.subr.bf16.mxu1 %v10375_v0 }
 0xdb1   :  { %9242 = vmatmul.mubr.msk.f32.vlgmr.msra.gmra.mrb[62].mxu0 %vm140_vm3, %v11232_v23  ;;  %9253 = vmatmul.mubr.msk.f32.vlgmr.msra.gmra.mrb[64].mxu1 %vm140_vm3, %v11232_v23 }
 0xdb2   :  { %9932 = vmatpush3.bf16.msra.mxu0 %v10486_v5  ;;  %9938 = vmatpush3.bf16.msra.mxu1 %v10497_v9 }
 0xdb3   :  { %9933 = vmatprep.subr.bf16.mxu0 %v10375_v0  ;;  %9939 = vmatprep.subr.bf16.mxu1 %v10375_v0 }
 0xdb4   :  { %9263 = vmatprep.mubr.msk.f32.mxu0 %vm10376_vm0, %v10377_v1  ;;  %9274 = vmatprep.mubr.msk.f32.mxu1 %vm10376_vm0, %v10377_v1 }
 0xdb6   :  { %9935 = vmatpush3.bf16.msra.mxu0 %v10506_v12  ;;  %9941 = vmatpush3.bf16.msra.mxu1 %v10510_v13 }
 0xdb7   :  { %9277 = vmatprep.subr.mxu0 %v10377_v1  ;;  %9293 = vmatprep.subr.mxu1 %v10377_v1 }
 0xe74   :  { %v4675_v11 = vpop.f32.mrb[58].mxu0  ;;  %v4745_v25 = vpop.f32.mrb[60].mxu1 }
 0xe75   :  { %v4746_v26 = vadd.f32 %v4745_v25, %v4675_v11  ;;  %v9199_v28 = vpop.f32.mrb[59].mxu0  ;;  %v9210_v30 = vpop.f32.mrb[61].mxu1 }
 0xe76   :  { %v8118_v30 = vld [vmem:[%s11664_s0 + $0x28] sm:$0xff] }
 0xe77   :  { %v4749_v33 = vadd.f32 %v11285_v32, %v4746_v26 }
 0xe79   :  { %v8110_v16 = vmul.f32 -1.442695, %v4749_v33 }
 0xe7b   :  { %10210 = vpow2.f32 %v8110_v16 }
 0xe7c   :  { %v4822_v53 = vpop.f32.mrb[60].mxu0  ;;  %v4892_v36 = vpop.f32.mrb[62].mxu1 }
 0xe7d   :  { %v4893_v38 = vadd.f32 %v4892_v36, %v4822_v53  ;;  %v9221_v35 = vpop.f32.mrb[61].mxu0  ;;  %v9232_v14 = vpop.f32.mrb[63].mxu1 }
 0xe7f   :  { %v4896_v47 = vadd.f32 %v11291_v43, %v4893_v38 }
 0xe81   :  { %v8113_v39 = vmul.f32 -1.442695, %v4896_v47 }
 0xe83   :  { %10212 = vpow2.f32 %v8113_v39 }
 0xe84   :  { %v4969_v8 = vpop.f32.mrb[62].mxu0  ;;  %v5039_v58 = vpop.f32.mrb[64].mxu1 }
 0xe85   :  { %v10211_v61 = vpop.eup %10210  ;;  %v9243_v62 = vpop.f32.mrb[63].mxu0  ;;  %v5040_v48 = vadd.f32 %v11297_v63, %v5039_v58  ;;  %v4970_v20 = vadd.f32 %v11303_v45, %v4969_v8 }
 0xe86   :  { %v9254_v17 = vpop.f32.mrb[65].mxu1  ;;  %v4753_v2 = vadd.f32 1.0, %v10211_v61 }
 0xe88   :  { %10214 = vrcp.f32 %v4753_v2 }
 0xe8d   :  { %v10213_v24 = vpop.eup %10212 }
 0xe8e   :  { %v4900_v7 = vadd.f32 1.0, %v10213_v24 }
 0xe90   :  { %10216 = vrcp.f32 %v4900_v7 }
 0xe92   :  { %v10215_v55 = vpop.eup %10214 }
 0xe93   :  { %v5043_v18 = vmul.f32 %v10215_v55, %v5040_v48 }
 0xe95   :  { %v5044_v22 = vadd.f32 %v5043_v18, %v4970_v20 }
 0xe97   :  { %10218 = vtanh.f32 %v5044_v22 }
 0xe9a   :  { %v10217_v56 = vpop.eup %10216 }
 0xe9b   :  { %v5046_v21 = vsub.f32 1.0, %v10217_v56  ;;  %v5048_v25 = vmul.f32 %v10217_v56, %v11232_v23  ;;  %v8117_v23 = vld [vmem:[%s11665_s1 + $0x28] sm:$0xff] }
 0xe9c   :  { %v5130_v33 = vsub.f32 1.0, %v8117_v23  ;;  %v5129_v38 = vmul.f32 %v8118_v30, %v8117_v23 }
 0xea1   :  { %v10219_v11 = vpop.eup %10218 }
 0xea2   :  { %v5047_v26 = vmul.f32 %v10219_v11, %v5046_v21 }
 0xea4   :  { %v11307_v28 = vadd.f32 %v5048_v25, %v5047_v26 }
 0xea6   :  { %9264 = vmatmul.mubr.msk.f32.vlgmr.msra.gmra.mrb[64].mxu0 %vm140_vm3, %v11307_v28  ;;  %5051 = vst.msk [vmem:[#allocation7 + $0x20] sm:$0xff] %vm140_vm3, %v11307_v28  ;;  %9275 = vmatmul.mubr.msk.f32.vlgmr.msra.gmra.mrb[66].mxu1 %vm140_vm3, %v11307_v28 }
 0xea7   :  { %9278 = vmatpush3.msk.msra.mxu0 %vm294_vm1, %v11022_v57  ;;  %9279 = vmatprep.mubr.msk.f32.mxu0 %vm10376_vm0, %v10377_v1 }
 0xea8   :  { %9942 = vmatprep.subr.bf16.mxu0 %v10375_v0  ;;  %9294 = vmatpush3.msk.msra.mxu1 %vm294_vm1, %v11029_v15 }
 0xea9   :  { %9295 = vmatprep.mubr.msk.f32.mxu1 %vm10376_vm0, %v10377_v1  ;;  %9298 = vmatprep.subr.mxu1 %v10377_v1 }
 0xf79   :  { %v5121_v16 = vpop.f32.mrb[64].mxu0  ;;  %v5199_v53 = vpop.f32.mrb[66].mxu1 }
 0xf7a   :  { %v5122_v36 = vadd.f32 %v11045_v31, %v5121_v16  ;;  %v9265_v35 = vpop.f32.mrb[65].mxu0  ;;  %v9276_v14 = vpop.f32.mrb[67].mxu1 }
 0xf7c   :  { %v5131_v47 = vmul.f32 %v5130_v33, %v5122_v36 }
 0xf7e   :  { %v5132_v39 = vadd.f32 %v5131_v47, %v5129_v38 }
 0xf80   :  { %9280 = vmatmul.mubr.msk.f32.vlgmr.msra.gmra.mrb[66].mxu0 %vm290_vm2, %v5132_v39  ;;  %9296 = vmatmul.mubr.msk.f32.vlgmr.msra.gmra.mrb[68].mxu1 %vm290_vm2, %v5132_v39 }
 0xf81   :  { %9944 = vmatpush3.bf16.msra.mxu0 %v10551_v29  ;;  %9299 = vmatpush3.msk.msra.mxu1 %vm294_vm1, %v11051_v19 }
 0xf82   :  { %9945 = vmatprep.subr.bf16.mxu0 %v10375_v0  ;;  %9300 = vmatprep.mubr.msk.f32.mxu1 %vm10376_vm0, %v10377_v1 }
 0xf83   :  { %9290 = vmatprep.mubr.msk.f32.mxu0 %vm10376_vm0, %v10377_v1  ;;  %9954 = vmatprep.subr.bf16.mxu1 %v10375_v0 }
 0xf84   :  { %9301 = vmatmul.mubr.msk.f32.vlgmr.msra.gmra.mrb[70].mxu1 %vm290_vm2, %v5132_v39 }
 0xf85   :  { %9947 = vmatpush3.bf16.msra.mxu0 %v10566_v34  ;;  %9956 = vmatpush3.bf16.msra.mxu1 %v10608_v44 }
 0xf86   :  { %9948 = vmatprep.subr.bf16.mxu0 %v10375_v0  ;;  %9957 = vmatprep.subr.bf16.mxu1 %v10375_v0 }
 0xf87   :  { %9322 = vmatprep.mubr.msk.f32.mxu1 %vm10376_vm0, %v10377_v1 }
 0xf88   :  { %9291 = vmatmul.mubr.msk.f32.vlgmr.msra.gmra.mrb[68].mxu0 %vm140_vm3, %v11307_v28 }
 0xf89   :  { %9950 = vmatpush3.bf16.msra.mxu0 %v10582_v37  ;;  %9311 = vmatprep.mubr.msk.f32.mxu0 %vm10376_vm0, %v10377_v1 }
 0xf8a   :  { %9951 = vmatprep.subr.bf16.mxu0 %v10375_v0  ;;  %9959 = vmatpush3.bf16.msra.mxu1 %v10622_v50 }
 0xf8b   :  { %9966 = vmatprep.subr.bf16.mxu1 %v10375_v0 }
 0xf8d   :  { %9953 = vmatpush3.bf16.msra.mxu0 %v10595_v40 }
 0xf8e   :  { %9960 = vmatprep.subr.bf16.mxu0 %v10375_v0 }
 0xf90   :  { %9312 = vmatmul.mubr.msk.f32.vlgmr.msra.gmra.mrb[70].mxu0 %vm140_vm3, %v11307_v28 }
 0xf91   :  { %9962 = vmatpush3.bf16.msra.mxu0 %v10613_v46  ;;  %9333 = vmatprep.mubr.msk.f32.mxu0 %vm10376_vm0, %v10377_v1 }
 0xf92   :  { %9963 = vmatprep.subr.bf16.mxu0 %v10375_v0 }
 0xf95   :  { %9965 = vmatpush3.bf16.msra.mxu0 %v10627_v52 }
 0xf96   :  { %9972 = vmatprep.subr.bf16.mxu0 %v10375_v0 }
0x1053   :  { %v5272_v8 = vpop.f32.mrb[66].mxu0  ;;  %v5419_v58 = vpop.f32.mrb[68].mxu1 }
0x1054   :  { %v5273_v61 = vadd.f32 %v5272_v8, %v5199_v53  ;;  %v9281_v62 = vpop.f32.mrb[67].mxu0  ;;  %v9297_v17 = vpop.f32.mrb[69].mxu1 }
0x1056   :  { %v5276_v2 = vadd.f32 %v11089_v27, %v5273_v61 }
0x1057   :  { %v5496_v24 = vpop.f32.mrb[70].mxu1 }
0x1058   :  { %v8122_v7 = vmul.f32 -1.442695, %v5276_v2  ;;  %v9302_v48 = vpop.f32.mrb[71].mxu1  ;;  %v5497_v53 = vadd.f32 %v11228_v10, %v5496_v24 }
0x105a   :  { %10220 = vpow2.f32 %v8122_v7 }
0x105b   :  { %v5349_v55 = vpop.f32.mrb[68].mxu0 }
0x105c   :  { %v5420_v20 = vadd.f32 %v5419_v58, %v5349_v55  ;;  %v9292_v18 = vpop.f32.mrb[69].mxu0 }
0x105e   :  { %v5423_v22 = vadd.f32 %v11216_v49, %v5420_v20 }
0x1060   :  { %v8126_v56 = vmul.f32 -1.442695, %v5423_v22 }
0x1062   :  { %10222 = vpow2.f32 %v8126_v56 }
0x1063   :  { %v5566_v21 = vpop.f32.mrb[70].mxu0 }
0x1064   :  { %v10221_v11 = vpop.eup %10220  ;;  %v9313_v25 = vpop.f32.mrb[71].mxu0  ;;  %v5567_v33 = vadd.f32 %v11222_v3, %v5566_v21 }
0x1065   :  { %v5280_v26 = vadd.f32 1.0, %v10221_v11 }
0x1067   :  { %10224 = vrcp.f32 %v5280_v26 }
0x106c   :  { %v10223_v23 = vpop.eup %10222 }
0x106d   :  { %v5427_v30 = vadd.f32 1.0, %v10223_v23 }
0x106f   :  { %10226 = vrcp.f32 %v5427_v30 }
0x1071   :  { %v10225_v16 = vpop.eup %10224 }
0x1072   :  { %v5570_v36 = vmul.f32 %v10225_v16, %v5567_v33 }
0x1074   :  { %v5571_v38 = vadd.f32 %v5570_v36, %v5497_v53 }
0x1076   :  { %10228 = vtanh.f32 %v5571_v38 }
0x1079   :  { %v10227_v35 = vpop.eup %10226 }
0x107a   :  { %v5573_v14 = vsub.f32 1.0, %v10227_v35  ;;  %v5575_v39 = vmul.f32 %v10227_v35, %v11307_v28 }
0x1080   :  { %v10229_v47 = vpop.eup %10228 }
0x1081   :  { %v5574_v8 = vmul.f32 %v10229_v47, %v5573_v14 }
0x1083   :  { %v11373_v58 = vadd.f32 %v5575_v39, %v5574_v8 }
0x1085   :  { %9323 = vmatmul.mubr.msk.f32.vlgmr.msra.gmra.mrb[72].mxu1 %vm140_vm3, %v11373_v58  ;;  %9334 = vmatmul.mubr.msk.f32.vlgmr.msra.gmra.mrb[72].mxu0 %vm140_vm3, %v11373_v58 }
0x1086   :  { %9968 = vmatpush3.bf16.msra.mxu1 %v10663_v41  ;;  %9974 = vmatpush3.bf16.msra.mxu0 %v10665_v42 }
0x1087   :  { %9969 = vmatprep.subr.bf16.mxu1 %v10375_v0  ;;  %9975 = vmatprep.subr.bf16.mxu0 %v10375_v0 }
0x1088   :  { %9344 = vmatprep.mubr.msk.f32.mxu1 %vm10376_vm0, %v10377_v1  ;;  %9355 = vmatprep.mubr.msk.f32.mxu0 %vm10376_vm0, %v10377_v1 }
0x108a   :  { %9971 = vmatpush3.bf16.msra.mxu1 %v10681_v51  ;;  %9977 = vmatpush3.bf16.msra.mxu0 %v10683_v54 }
0x108b   :  { %9978 = vmatprep.subr.bf16.mxu1 %v10375_v0  ;;  %9984 = vmatprep.subr.bf16.mxu0 %v10375_v0 }
0x108d   :  { %9345 = vmatmul.mubr.msk.f32.vlgmr.msra.gmra.mrb[74].mxu1 %vm140_vm3, %v11373_v58  ;;  %9356 = vmatmul.mubr.msk.f32.vlgmr.msra.gmra.mrb[74].mxu0 %vm140_vm3, %v11373_v58 }
0x108e   :  { %9980 = vmatpush3.bf16.msra.mxu1 %v10699_v59  ;;  %9986 = vmatpush3.bf16.msra.mxu0 %v10701_v60 }
0x108f   :  { %9981 = vmatprep.subr.bf16.mxu1 %v10375_v0  ;;  %9987 = vmatprep.subr.bf16.mxu0 %v10375_v0 }
0x1090   :  { %9366 = vmatprep.mubr.msk.f32.mxu1 %vm10376_vm0, %v10377_v1  ;;  %9377 = vmatprep.mubr.msk.f32.mxu0 %vm10376_vm0, %v10377_v1 }
0x1092   :  { %9983 = vmatpush3.bf16.msra.mxu1 %v10717_v4  ;;  %9989 = vmatpush3.bf16.msra.mxu0 %v10719_v6 }
0x1093   :  { %9990 = vmatprep.subr.bf16.mxu1 %v10375_v0  ;;  %9996 = vmatprep.subr.bf16.mxu0 %v10375_v0 }
0x1095   :  { %9367 = vmatmul.mubr.msk.f32.vlgmr.msra.gmra.mrb[76].mxu1 %vm140_vm3, %v11373_v58  ;;  %9378 = vmatmul.mubr.msk.f32.vlgmr.msra.gmra.mrb[76].mxu0 %vm140_vm3, %v11373_v58 }
0x1096   :  { %9992 = vmatpush3.bf16.msra.mxu1 %v10486_v5  ;;  %9998 = vmatpush3.bf16.msra.mxu0 %v10497_v9 }
0x1097   :  { %9993 = vmatprep.subr.bf16.mxu1 %v10375_v0  ;;  %9999 = vmatprep.subr.bf16.mxu0 %v10375_v0 }
0x1098   :  { %9388 = vmatprep.mubr.msk.f32.mxu1 %vm10376_vm0, %v10377_v1  ;;  %9399 = vmatprep.mubr.msk.f32.mxu0 %vm10376_vm0, %v10377_v1 }
0x109a   :  { %9995 = vmatpush3.bf16.msra.mxu1 %v10506_v12  ;;  %10001 = vmatpush3.bf16.msra.mxu0 %v10510_v13 }
0x109b   :  { %9402 = vmatprep.subr.mxu1 %v10377_v1  ;;  %9418 = vmatprep.subr.mxu0 %v10377_v1 }
0x1158   :  { %v5646_v28 = vpop.f32.mrb[72].mxu1  ;;  %v5716_v61 = vpop.f32.mrb[72].mxu0 }
0x1159   :  { %v5717_v62 = vadd.f32 %v5716_v61, %v5646_v28  ;;  %v9324_v17 = vpop.f32.mrb[73].mxu1  ;;  %v9335_v2 = vpop.f32.mrb[73].mxu0 }
0x115b   :  { %v5720_v24 = vadd.f32 %v11285_v32, %v5717_v62 }
0x115d   :  { %v8132_v7 = vmul.f32 -1.442695, %v5720_v24 }
0x115f   :  { %10230 = vpow2.f32 %v8132_v7 }
0x1160   :  { %v5793_v48 = vpop.f32.mrb[74].mxu1  ;;  %v5863_v55 = vpop.f32.mrb[74].mxu0 }
0x1161   :  { %v5864_v20 = vadd.f32 %v5863_v55, %v5793_v48  ;;  %v9346_v18 = vpop.f32.mrb[75].mxu1  ;;  %v9357_v22 = vpop.f32.mrb[75].mxu0 }
0x1163   :  { %v5867_v56 = vadd.f32 %v11291_v43, %v5864_v20 }
0x1165   :  { %v8135_v21 = vmul.f32 -1.442695, %v5867_v56 }
0x1167   :  { %10232 = vpow2.f32 %v8135_v21 }
0x1168   :  { %v5940_v11 = vpop.f32.mrb[76].mxu1  ;;  %v6010_v25 = vpop.f32.mrb[76].mxu0 }
0x1169   :  { %v10231_v26 = vpop.eup %10230  ;;  %v9368_v23 = vpop.f32.mrb[77].mxu1  ;;  %v6011_v36 = vadd.f32 %v11297_v63, %v6010_v25  ;;  %v5941_v35 = vadd.f32 %v11303_v45, %v5940_v11 }
0x116a   :  { %v9379_v30 = vpop.f32.mrb[77].mxu0  ;;  %v5724_v33 = vadd.f32 1.0, %v10231_v26 }
0x116c   :  { %10234 = vrcp.f32 %v5724_v33 }
0x1171   :  { %v10233_v16 = vpop.eup %10232 }
0x1172   :  { %v5871_v53 = vadd.f32 1.0, %v10233_v16 }
0x1174   :  { %10236 = vrcp.f32 %v5871_v53 }
0x1176   :  { %v10235_v38 = vpop.eup %10234 }
0x1177   :  { %v6014_v14 = vmul.f32 %v10235_v38, %v6011_v36 }
0x1179   :  { %v6015_v47 = vadd.f32 %v6014_v14, %v5941_v35 }
0x117b   :  { %10238 = vtanh.f32 %v6015_v47 }
0x117e   :  { %v10237_v39 = vpop.eup %10236 }
0x117f   :  { %v6017_v8 = vsub.f32 1.0, %v10237_v39  ;;  %v6019_v61 = vmul.f32 %v10237_v39, %v11373_v58  ;;  %v8139_v58 = vld [vmem:[%s11665_s1 + $0x30] sm:$0xff] }
0x1180   :  { %v6101_v2 = vsub.f32 1.0, %v8139_v58 }
0x1185   :  { %v10239_v28 = vpop.eup %10238 }
0x1186   :  { %v6018_v62 = vmul.f32 %v10239_v28, %v6017_v8 }
0x1188   :  { %v11428_v17 = vadd.f32 %v6019_v61, %v6018_v62 }
0x118a   :  { %9389 = vmatmul.mubr.msk.f32.vlgmr.msra.gmra.mrb[78].mxu1 %vm140_vm3, %v11428_v17  ;;  %6022 = vst.msk [vmem:[#allocation7 + $0x28] sm:$0xff] %vm140_vm3, %v11428_v17  ;;  %9400 = vmatmul.mubr.msk.f32.vlgmr.msra.gmra.mrb[78].mxu0 %vm140_vm3, %v11428_v17 }
0x118b   :  { %9403 = vmatpush3.msk.msra.mxu1 %vm294_vm1, %v11022_v57  ;;  %9404 = vmatprep.mubr.msk.f32.mxu1 %vm10376_vm0, %v10377_v1  ;;  %v8140_v57 = vld [vmem:[%s11664_s0 + $0x30] sm:$0xff] }
0x118c   :  { %10002 = vmatprep.subr.bf16.mxu1 %v10375_v0  ;;  %9419 = vmatpush3.msk.msra.mxu0 %vm294_vm1, %v11029_v15  ;;  %v6100_v55 = vmul.f32 %v8140_v57, %v8139_v58 }
0x118d   :  { %9420 = vmatprep.mubr.msk.f32.mxu0 %vm10376_vm0, %v10377_v1  ;;  %9423 = vmatprep.subr.mxu0 %v10377_v1 }
0x125d   :  { %v6092_v24 = vpop.f32.mrb[78].mxu1  ;;  %v6170_v7 = vpop.f32.mrb[78].mxu0 }
0x125e   :  { %v6093_v48 = vadd.f32 %v11045_v31, %v6092_v24  ;;  %v9390_v15 = vpop.f32.mrb[79].mxu1  ;;  %v9401_v20 = vpop.f32.mrb[79].mxu0 }
0x1260   :  { %v6102_v18 = vmul.f32 %v6101_v2, %v6093_v48 }
0x1262   :  { %v6103_v22 = vadd.f32 %v6102_v18, %v6100_v55 }
0x1264   :  { %9405 = vmatmul.mubr.msk.f32.vlgmr.msra.gmra.mrb[80].mxu1 %vm290_vm2, %v6103_v22  ;;  %9421 = vmatmul.mubr.msk.f32.vlgmr.msra.gmra.mrb[80].mxu0 %vm290_vm2, %v6103_v22 }
0x1265   :  { %10004 = vmatpush3.bf16.msra.mxu1 %v10551_v29  ;;  %9424 = vmatpush3.msk.msra.mxu0 %vm294_vm1, %v11051_v19 }
0x1266   :  { %10005 = vmatprep.subr.bf16.mxu1 %v10375_v0  ;;  %9425 = vmatprep.mubr.msk.f32.mxu0 %vm10376_vm0, %v10377_v1 }
0x1267   :  { %9415 = vmatprep.mubr.msk.f32.mxu1 %vm10376_vm0, %v10377_v1  ;;  %10014 = vmatprep.subr.bf16.mxu0 %v10375_v0 }
0x1268   :  { %9426 = vmatmul.mubr.msk.f32.vlgmr.msra.gmra.mrb[82].mxu0 %vm290_vm2, %v6103_v22 }
0x1269   :  { %10007 = vmatpush3.bf16.msra.mxu1 %v10566_v34  ;;  %10016 = vmatpush3.bf16.msra.mxu0 %v10608_v44 }
0x126a   :  { %10008 = vmatprep.subr.bf16.mxu1 %v10375_v0  ;;  %10017 = vmatprep.subr.bf16.mxu0 %v10375_v0 }
0x126b   :  { %9447 = vmatprep.mubr.msk.f32.mxu0 %vm10376_vm0, %v10377_v1 }
0x126c   :  { %9416 = vmatmul.mubr.msk.f32.vlgmr.msra.gmra.mrb[82].mxu1 %vm140_vm3, %v11428_v17 }
0x126d   :  { %10010 = vmatpush3.bf16.msra.mxu1 %v10582_v37  ;;  %9436 = vmatprep.mubr.msk.f32.mxu1 %vm10376_vm0, %v10377_v1 }
0x126e   :  { %10011 = vmatprep.subr.bf16.mxu1 %v10375_v0  ;;  %10019 = vmatpush3.bf16.msra.mxu0 %v10622_v50 }
0x126f   :  { %10026 = vmatprep.subr.bf16.mxu0 %v10375_v0 }
0x1271   :  { %10013 = vmatpush3.bf16.msra.mxu1 %v10595_v40 }
0x1272   :  { %10020 = vmatprep.subr.bf16.mxu1 %v10375_v0 }
0x1274   :  { %9437 = vmatmul.mubr.msk.f32.vlgmr.msra.gmra.mrb[84].mxu1 %vm140_vm3, %v11428_v17 }
0x1275   :  { %10022 = vmatpush3.bf16.msra.mxu1 %v10613_v46  ;;  %9458 = vmatprep.mubr.msk.f32.mxu1 %vm10376_vm0, %v10377_v1 }
0x1276   :  { %10023 = vmatprep.subr.bf16.mxu1 %v10375_v0 }
0x1279   :  { %10025 = vmatpush3.bf16.msra.mxu1 %v10627_v52 }
0x127a   :  { %10032 = vmatprep.subr.bf16.mxu1 %v10375_v0 }
0x1337   :  { %v6243_v31 = vpop.f32.mrb[80].mxu1  ;;  %v6390_v19 = vpop.f32.mrb[80].mxu0 }
0x1338   :  { %v6244_v56 = vadd.f32 %v6243_v31, %v6170_v7  ;;  %v9406_v21 = vpop.f32.mrb[81].mxu1  ;;  %v9422_v11 = vpop.f32.mrb[81].mxu0 }
0x133a   :  { %v6247_v25 = vadd.f32 %v11089_v27, %v6244_v56 }
0x133b   :  { %v6467_v26 = vpop.f32.mrb[82].mxu0 }
0x133c   :  { %v8144_v23 = vmul.f32 -1.442695, %v6247_v25  ;;  %v9427_v30 = vpop.f32.mrb[83].mxu0  ;;  %v6468_v62 = vadd.f32 %v11228_v10, %v6467_v26 }
0x133e   :  { %10240 = vpow2.f32 %v8144_v23 }
0x133f   :  { %v6320_v33 = vpop.f32.mrb[82].mxu1 }
0x1340   :  { %v6391_v16 = vadd.f32 %v6390_v19, %v6320_v33  ;;  %v9417_v53 = vpop.f32.mrb[83].mxu1 }
0x1342   :  { %v6394_v36 = vadd.f32 %v11216_v49, %v6391_v16 }
0x1344   :  { %v8148_v38 = vmul.f32 -1.442695, %v6394_v36 }
0x1346   :  { %10242 = vpow2.f32 %v8148_v38 }
0x1347   :  { %v6537_v35 = vpop.f32.mrb[84].mxu1 }
0x1348   :  { %v10241_v14 = vpop.eup %10240  ;;  %v9438_v47 = vpop.f32.mrb[85].mxu1  ;;  %v6538_v27 = vadd.f32 %v11222_v3, %v6537_v35 }
0x1349   :  { %v6251_v39 = vadd.f32 1.0, %v10241_v14 }
0x134b   :  { %10244 = vrcp.f32 %v6251_v39 }
0x1350   :  { %v10243_v8 = vpop.eup %10242 }
0x1351   :  { %v6398_v28 = vadd.f32 1.0, %v10243_v8 }
0x1353   :  { %10246 = vrcp.f32 %v6398_v28 }
0x1355   :  { %v10245_v61 = vpop.eup %10244 }
0x1356   :  { %v6541_v58 = vmul.f32 %v10245_v61, %v6538_v27 }
0x1358   :  { %v6542_v57 = vadd.f32 %v6541_v58, %v6468_v62 }
0x135a   :  { %10248 = vtanh.f32 %v6542_v57 }
0x135d   :  { %v10247_v2 = vpop.eup %10246 }
0x135e   :  { %v6544_v24 = vsub.f32 1.0, %v10247_v2  ;;  %v6546_v48 = vmul.f32 %v10247_v2, %v11428_v17  ;;  %v10292_v2 = vld [vmem:[#allocation2] sm:$0xf] }
0x1364   :  { %v10249_v7 = vpop.eup %10248 }
0x1365   :  { %v6545_v55 = vmul.f32 %v10249_v7, %v6544_v24  ;;  %v10293_v24 = vld [vmem:[#allocation2 + $0x4] sm:$0xf]  ;;  %v8161_v7 = vld [vmem:[%s11665_s1 + $0x38] sm:$0xff] }
0x1367   :  { %v11494_v15 = vadd.f32 %v6546_v48, %v6545_v55  ;;  %v8162_v48 = vld [vmem:[%s11664_s0 + $0x38] sm:$0xff]  ;;  %v7072_v55 = vsub.f32 1.0, %v8161_v7 }
0x1369   :  { %9448 = vmatmul.mubr.msk.f32.vlgmr.msra.gmra.mrb[84].mxu0 %vm140_vm3, %v11494_v15  ;;  %9459 = vmatmul.mubr.msk.f32.vlgmr.msra.gmra.mrb[86].mxu1 %vm140_vm3, %v11494_v15 }
0x136a   :  { %10028 = vmatpush3.bf16.msra.mxu0 %v10663_v41  ;;  %10034 = vmatpush3.bf16.msra.mxu1 %v10665_v42 }
0x136b   :  { %10029 = vmatprep.subr.bf16.mxu0 %v10375_v0  ;;  %10035 = vmatprep.subr.bf16.mxu1 %v10375_v0 }
0x136c   :  { %9469 = vmatprep.mubr.msk.f32.mxu0 %vm10376_vm0, %v10377_v1  ;;  %9480 = vmatprep.mubr.msk.f32.mxu1 %vm10376_vm0, %v10377_v1 }
0x136e   :  { %10031 = vmatpush3.bf16.msra.mxu0 %v10681_v51  ;;  %10037 = vmatpush3.bf16.msra.mxu1 %v10683_v54 }
0x136f   :  { %10038 = vmatprep.subr.bf16.mxu0 %v10375_v0  ;;  %10044 = vmatprep.subr.bf16.mxu1 %v10375_v0 }
0x1371   :  { %9470 = vmatmul.mubr.msk.f32.vlgmr.msra.gmra.mrb[86].mxu0 %vm140_vm3, %v11494_v15  ;;  %9481 = vmatmul.mubr.msk.f32.vlgmr.msra.gmra.mrb[88].mxu1 %vm140_vm3, %v11494_v15 }
0x1372   :  { %10040 = vmatpush3.bf16.msra.mxu0 %v10699_v59  ;;  %10046 = vmatpush3.bf16.msra.mxu1 %v10701_v60 }
0x1373   :  { %10041 = vmatprep.subr.bf16.mxu0 %v10375_v0  ;;  %10047 = vmatprep.subr.bf16.mxu1 %v10375_v0 }
0x1374   :  { %9491 = vmatprep.mubr.msk.f32.mxu0 %vm10376_vm0, %v10377_v1  ;;  %9502 = vmatprep.mubr.msk.f32.mxu1 %vm10376_vm0, %v10377_v1 }
0x1376   :  { %10043 = vmatpush3.bf16.msra.mxu0 %v10717_v4  ;;  %10049 = vmatpush3.bf16.msra.mxu1 %v10719_v6 }
0x1377   :  { %10050 = vmatprep.subr.bf16.mxu0 %v10375_v0  ;;  %10056 = vmatprep.subr.bf16.mxu1 %v10375_v0 }
0x1379   :  { %9492 = vmatmul.mubr.msk.f32.vlgmr.msra.gmra.mrb[88].mxu0 %vm140_vm3, %v11494_v15  ;;  %9503 = vmatmul.mubr.msk.f32.vlgmr.msra.gmra.mrb[90].mxu1 %vm140_vm3, %v11494_v15 }
0x137a   :  { %10052 = vmatpush3.bf16.msra.mxu0 %v10486_v5  ;;  %10058 = vmatpush3.bf16.msra.mxu1 %v10497_v9 }
0x137b   :  { %10053 = vmatprep.subr.bf16.mxu0 %v10375_v0  ;;  %10059 = vmatprep.subr.bf16.mxu1 %v10375_v0 }
0x137c   :  { %9513 = vmatprep.mubr.msk.f32.mxu0 %vm10376_vm0, %v10377_v1  ;;  %9524 = vmatprep.mubr.msk.f32.mxu1 %vm10376_vm0, %v10377_v1 }
0x137e   :  { %10055 = vmatpush3.bf16.msra.mxu0 %v10506_v12  ;;  %10061 = vmatpush3.bf16.msra.mxu1 %v10510_v13 }
0x137f   :  { %9527 = vmatprep.subr.mxu0 %v10377_v1  ;;  %9543 = vmatprep.subr.mxu1 %v10377_v1 }
0x143c   :  { %v6617_v5 = vpop.f32.mrb[84].mxu0  ;;  %v6687_v9 = vpop.f32.mrb[86].mxu1 }
0x143d   :  { %v6688_v17 = vadd.f32 %v6687_v9, %v6617_v5  ;;  %v9449_v20 = vpop.f32.mrb[85].mxu0  ;;  %v9460_v18 = vpop.f32.mrb[87].mxu1  ;;  %v10294_v9 = vld [vmem:[%s11675_s11] ss:$0 sm:$0xff] }
0x143e   :  { %v7071_v20 = vmul.f32 %v8162_v48, %v8161_v7 }
0x143f   :  { %v6691_v22 = vadd.f32 %v11285_v32, %v6688_v17 }
0x1441   :  { %v8154_v31 = vmul.f32 -1.442695, %v6691_v22 }
0x1443   :  { %10250 = vpow2.f32 %v8154_v31 }
0x1444   :  { %v6764_v19 = vpop.f32.mrb[86].mxu0  ;;  %v6834_v56 = vpop.f32.mrb[88].mxu1 }
0x1445   :  { %v6835_v21 = vadd.f32 %v6834_v56, %v6764_v19  ;;  %v9471_v11 = vpop.f32.mrb[87].mxu0  ;;  %v9482_v12 = vpop.f32.mrb[89].mxu1  ;;  %v10295_v56 = vld [vmem:[#allocation2 + $0x8] sm:$0xf] }
0x1447   :  { %v6838_v13 = vadd.f32 %v11291_v43, %v6835_v21 }
0x1449   :  { %v8157_v25 = vmul.f32 -1.442695, %v6838_v13 }
0x144b   :  { %10252 = vpow2.f32 %v8157_v25 }
0x144c   :  { %v6911_v26 = vpop.f32.mrb[88].mxu0  ;;  %v6981_v23 = vpop.f32.mrb[90].mxu1 }
0x144d   :  { %v10251_v30 = vpop.eup %10250  ;;  %v9493_v33 = vpop.f32.mrb[89].mxu0  ;;  %v6982_v35 = vadd.f32 %v11297_v63, %v6981_v23  ;;  %v6912_v47 = vadd.f32 %v11303_v45, %v6911_v26 }
0x144e   :  { %v9504_v16 = vpop.f32.mrb[91].mxu1  ;;  %v6695_v53 = vadd.f32 1.0, %v10251_v30 }
0x1450   :  { %10254 = vrcp.f32 %v6695_v53 }
0x1455   :  { %v10253_v36 = vpop.eup %10252 }
0x1456   :  { %v6842_v38 = vadd.f32 1.0, %v10253_v36 }
0x1458   :  { %10256 = vrcp.f32 %v6842_v38 }
0x145a   :  { %v10255_v14 = vpop.eup %10254 }
0x145b   :  { %v6985_v39 = vmul.f32 %v10255_v14, %v6982_v35 }
0x145d   :  { %v6986_v8 = vadd.f32 %v6985_v39, %v6912_v47 }
0x145f   :  { %10258 = vtanh.f32 %v6986_v8 }
0x1462   :  { %v10257_v28 = vpop.eup %10256 }
0x1463   :  { %v6988_v27 = vsub.f32 1.0, %v10257_v28  ;;  %v6990_v62 = vmul.f32 %v10257_v28, %v11494_v15 }
0x1469   :  { %v10259_v61 = vpop.eup %10258 }
0x146a   :  { %v6989_v58 = vmul.f32 %v10259_v61, %v6988_v27 }
0x146c   :  { %v11549_v57 = vadd.f32 %v6990_v62, %v6989_v58 }
0x146e   :  { %9514 = vmatmul.mubr.msk.f32.vlgmr.msra.gmra.mrb[90].mxu0 %vm140_vm3, %v11549_v57  ;;  %6993 = vst.msk [vmem:[#allocation7 + $0x30] sm:$0xff] %vm140_vm3, %v11549_v57  ;;  %9525 = vmatmul.mubr.msk.f32.vlgmr.msra.gmra.mrb[92].mxu1 %vm140_vm3, %v11549_v57 }
0x146f   :  { %9528 = vmatpush3.msk.msra.mxu0 %vm294_vm1, %v10292_v2  ;;  %9529 = vmatprep.mubr.msk.f32.mxu0 %vm10376_vm0, %v10377_v1 }
0x1470   :  { %10062 = vmatprep.subr.bf16.mxu0 %v10375_v0  ;;  %9544 = vmatpush3.msk.msra.mxu1 %vm294_vm1, %v10293_v24 }
0x1471   :  { %9545 = vmatprep.mubr.msk.f32.mxu1 %vm10376_vm0, %v10377_v1  ;;  %9548 = vmatprep.subr.mxu1 %v10377_v1 }
0x1541   :  { %v7063_v15 = vpop.f32.mrb[90].mxu0  ;;  %v7141_v5 = vpop.f32.mrb[92].mxu1 }
0x1542   :  { %v7064_v17 = vadd.f32 %v10294_v9, %v7063_v15  ;;  %v9515_v18 = vpop.f32.mrb[91].mxu0  ;;  %v9526_v22 = vpop.f32.mrb[93].mxu1 }
0x1544   :  { %v7073_v31 = vmul.f32 %v7072_v55, %v7064_v17 }
0x1546   :  { %v7074_v19 = vadd.f32 %v7073_v31, %v7071_v20 }
0x1548   :  { %9530 = vmatmul.mubr.msk.f32.vlgmr.msra.gmra.mrb[92].mxu0 %vm290_vm2, %v7074_v19  ;;  %9546 = vmatmul.mubr.msk.f32.vlgmr.msra.gmra.mrb[94].mxu1 %vm290_vm2, %v7074_v19 }
0x1549   :  { %10064 = vmatpush3.bf16.msra.mxu0 %v10551_v29  ;;  %9549 = vmatpush3.msk.msra.mxu1 %vm294_vm1, %v10295_v56 }
0x154a   :  { %10065 = vmatprep.subr.bf16.mxu0 %v10375_v0  ;;  %9550 = vmatprep.mubr.msk.f32.mxu1 %vm10376_vm0, %v10377_v1 }
0x154b   :  { %9540 = vmatprep.mubr.msk.f32.mxu0 %vm10376_vm0, %v10377_v1  ;;  %10074 = vmatprep.subr.bf16.mxu1 %v10375_v0 }
0x154c   :  { %9551 = vmatmul.mubr.msk.f32.vlgmr.msra.gmra.mrb[96].mxu1 %vm290_vm2, %v7074_v19 }
0x154d   :  { %10067 = vmatpush3.bf16.msra.mxu0 %v10566_v34  ;;  %10076 = vmatpush3.bf16.msra.mxu1 %v10608_v44 }
0x154e   :  { %10068 = vmatprep.subr.bf16.mxu0 %v10375_v0  ;;  %10077 = vmatprep.subr.bf16.mxu1 %v10375_v0 }
0x154f   :  { %9572 = vmatprep.mubr.msk.f32.mxu1 %vm10376_vm0, %v10377_v1 }
0x1550   :  { %9541 = vmatmul.mubr.msk.f32.vlgmr.msra.gmra.mrb[94].mxu0 %vm140_vm3, %v11549_v57 }
0x1551   :  { %10070 = vmatpush3.bf16.msra.mxu0 %v10582_v37  ;;  %9561 = vmatprep.mubr.msk.f32.mxu0 %vm10376_vm0, %v10377_v1 }
0x1552   :  { %10071 = vmatprep.subr.bf16.mxu0 %v10375_v0  ;;  %10079 = vmatpush3.bf16.msra.mxu1 %v10622_v50  ;;  %v10296_v50 = vld [vmem:[%s11668_s4] ss:$0 sm:$0xff]  ;;  %s10378_s4 = smov [#allocation7]  }
0x1553   :  { %10086 = vmatprep.subr.bf16.mxu1 %v10375_v0  ;;  %s7970_s11 = sshll.u32 %s10378_s4, 4  ;;  %s7971_s11 = int_to_ptr.vmem [resolvable:$true] %s7970_s11 }
0x1554   :  { %s10341_s13 = scalar_lea.vmem %s7971_s11, 1024  ;;  %p10346_p3 = scmp.lt.s32.totalorder %s7971_s11, %s7971_s11 }
0x1555   :  { %10073 = vmatpush3.bf16.msra.mxu0 %v10595_v40  ;;  %p10342_p2 = scmp.ne.s32.totalorder %s7971_s11, %s10341_s13  ;;  %p10347_p4 = scmp.lt.s32.totalorder %s10341_s13, %s10341_s13 }
0x1556   :  { %10080 = vmatprep.subr.bf16.mxu0 %v10375_v0 }
0x1557   :  { %p10348_p5 = por %p10347_p4, %p10346_p3 }
0x1558   :  { %9562 = vmatmul.mubr.msk.f32.vlgmr.msra.gmra.mrb[96].mxu0 %vm140_vm3, %v11549_v57 }
0x1559   :  { %10082 = vmatpush3.bf16.msra.mxu0 %v10613_v46  ;;  %9583 = vmatprep.mubr.msk.f32.mxu0 %vm10376_vm0, %v10377_v1  ;;  %p10349_p6 = pnand %p10348_p5, %p10342_p2 }
0x155a   :  { %10083 = vmatprep.subr.bf16.mxu0 %v10375_v0 }
0x155d   :  { %10085 = vmatpush3.bf16.msra.mxu0 %v10627_v52 }
0x155e   :  { %10092 = vmatprep.subr.bf16.mxu0 %v10375_v0 }
0x161b   :  { %v7214_v29 = vpop.f32.mrb[92].mxu0  ;;  %v7361_v34 = vpop.f32.mrb[94].mxu1 }
0x161c   :  { %v7215_v37 = vadd.f32 %v7214_v29, %v7141_v5  ;;  %v9531_v40 = vpop.f32.mrb[93].mxu0  ;;  %v9547_v44 = vpop.f32.mrb[95].mxu1 }
0x161e   :  { %v7218_v21 = vadd.f32 %v10296_v50, %v7215_v37 }
0x161f   :  { %v7438_v46 = vpop.f32.mrb[96].mxu1 }
0x1620   :  { %v8166_v11 = vmul.f32 -1.442695, %v7218_v21  ;;  %v9552_v12 = vpop.f32.mrb[97].mxu1  ;;  %v7439_v47 = vadd.f32 %v11228_v10, %v7438_v46 }
0x1622   :  { %10260 = vpow2.f32 %v8166_v11 }
0x1623   :  { %v7291_v13 = vpop.f32.mrb[94].mxu0 }
0x1624   :  { %v7362_v25 = vadd.f32 %v7361_v34, %v7291_v13  ;;  %v9542_v26 = vpop.f32.mrb[95].mxu0 }
0x1626   :  { %v7365_v52 = vadd.f32 %v11216_v49, %v7362_v25 }
0x1628   :  { %v8170_v23 = vmul.f32 -1.442695, %v7365_v52 }
0x162a   :  { %10262 = vpow2.f32 %v8170_v23 }
0x162b   :  { %v7508_v30 = vpop.f32.mrb[96].mxu0 }
0x162c   :  { %v10261_v33 = vpop.eup %10260  ;;  %v9563_v16 = vpop.f32.mrb[97].mxu0  ;;  %v7509_v35 = vadd.f32 %v11222_v3, %v7508_v30 }
0x162d   :  { %v7222_v53 = vadd.f32 1.0, %v10261_v33 }
0x162f   :  { %10264 = vrcp.f32 %v7222_v53 }
0x1634   :  { %v10263_v36 = vpop.eup %10262 }
0x1635   :  { %v7369_v38 = vadd.f32 1.0, %v10263_v36 }
0x1637   :  { %10266 = vrcp.f32 %v7369_v38 }
0x1639   :  { %v10265_v14 = vpop.eup %10264 }
0x163a   :  { %v7512_v39 = vmul.f32 %v10265_v14, %v7509_v35 }
0x163c   :  { %v7513_v8 = vadd.f32 %v7512_v39, %v7439_v47 }
0x163e   :  { %10268 = vtanh.f32 %v7513_v8 }
0x1641   :  { %v10267_v28 = vpop.eup %10266 }
0x1642   :  { %v7515_v49 = vsub.f32 1.0, %v10267_v28  ;;  %v7517_v61 = vmul.f32 %v10267_v28, %v11549_v57 }
0x1648   :  { %v10269_v27 = vpop.eup %10268 }
0x1649   :  { %v7516_v62 = vmul.f32 %v10269_v27, %v7515_v49 }
0x164b   :  { %v7518_v58 = vadd.f32 %v7517_v61, %v7516_v62 }
0x164d   :  { %9573 = vmatmul.mubr.msk.f32.vlgmr.msra.gmra.mrb[98].mxu1 %vm140_vm3, %v7518_v58  ;;  %9584 = vmatmul.mubr.msk.f32.vlgmr.msra.gmra.mrb[98].mxu0 %vm140_vm3, %v7518_v58 }
0x164e   :  { %10088 = vmatpush3.bf16.msra.mxu1 %v10663_v41  ;;  %10094 = vmatpush3.bf16.msra.mxu0 %v10665_v42 }
0x164f   :  { %10089 = vmatprep.subr.bf16.mxu1 %v10375_v0  ;;  %10095 = vmatprep.subr.bf16.mxu0 %v10375_v0 }
0x1650   :  { %9594 = vmatprep.mubr.msk.f32.mxu1 %vm10376_vm0, %v10377_v1  ;;  %9605 = vmatprep.mubr.msk.f32.mxu0 %vm10376_vm0, %v10377_v1 }
0x1652   :  { %10091 = vmatpush3.bf16.msra.mxu1 %v10681_v51  ;;  %10097 = vmatpush3.bf16.msra.mxu0 %v10683_v54 }
0x1653   :  { %10098 = vmatprep.subr.bf16.mxu1 %v10375_v0  ;;  %10104 = vmatprep.subr.bf16.mxu0 %v10375_v0 }
0x1655   :  { %9595 = vmatmul.mubr.msk.f32.vlgmr.msra.gmra.mrb[100].mxu1 %vm140_vm3, %v7518_v58  ;;  %9606 = vmatmul.mubr.msk.f32.vlgmr.msra.gmra.mrb[100].mxu0 %vm140_vm3, %v7518_v58 }
0x1656   :  { %10100 = vmatpush3.bf16.msra.mxu1 %v10699_v59  ;;  %10106 = vmatpush3.bf16.msra.mxu0 %v10701_v60 }
0x1657   :  { %10101 = vmatprep.subr.bf16.mxu1 %v10375_v0  ;;  %10107 = vmatprep.subr.bf16.mxu0 %v10375_v0 }
0x1658   :  { %9616 = vmatprep.mubr.msk.f32.mxu1 %vm10376_vm0, %v10377_v1  ;;  %9627 = vmatprep.mubr.msk.f32.mxu0 %vm10376_vm0, %v10377_v1 }
0x165a   :  { %10103 = vmatpush3.bf16.msra.mxu1 %v10717_v4  ;;  %10109 = vmatpush3.bf16.msra.mxu0 %v10719_v6 }
0x165d   :  { %9617 = vmatmul.mubr.msk.f32.vlgmr.msra.gmra.mrb[102].mxu1 %vm140_vm3, %v7518_v58  ;;  %9628 = vmatmul.mubr.msk.f32.vlgmr.msra.gmra.mrb[102].mxu0 %vm140_vm3, %v7518_v58 }
0x1720   :  { %v7588_v41 = vpop.f32.mrb[98].mxu1  ;;  %v7658_v42 = vpop.f32.mrb[98].mxu0 }
0x1721   :  { %v7659_v51 = vadd.f32 %v7658_v42, %v7588_v41  ;;  %v9574_v54 = vpop.f32.mrb[99].mxu1  ;;  %v9585_v59 = vpop.f32.mrb[99].mxu0 }
0x1723   :  { %v7662_v0 = vadd.f32 %v11285_v32, %v7659_v51 }
0x1725   :  { %v8176_v60 = vmul.f32 -1.442695, %v7662_v0 }
0x1727   :  { %10270 = vpow2.f32 %v8176_v60 }
0x1728   :  { %v7735_v3 = vpop.f32.mrb[100].mxu1  ;;  %v7805_v10 = vpop.f32.mrb[100].mxu0 }
0x1729   :  { %v7806_v1 = vadd.f32 %v7805_v10, %v7735_v3  ;;  %v9596_v57 = vpop.f32.mrb[101].mxu1  ;;  %v9607_v4 = vpop.f32.mrb[101].mxu0 }
0x172b   :  { %v7809_v6 = vadd.f32 %v11291_v43, %v7806_v1 }
0x172d   :  { %v8179_v2 = vmul.f32 -1.442695, %v7809_v6 }
0x172f   :  { %10272 = vpow2.f32 %v8179_v2 }
0x1730   :  { %v7882_v24 = vpop.f32.mrb[102].mxu1  ;;  %v7952_v7 = vpop.f32.mrb[102].mxu0 }
0x1731   :  { %v10271_v48 = vpop.eup %10270  ;;  %v9618_v55 = vpop.f32.mrb[103].mxu1  ;;  %v7953_v17 = vadd.f32 %v11297_v63, %v7952_v7  ;;  %v7883_v18 = vadd.f32 %v11303_v45, %v7882_v24 }
0x1732   :  { %v9629_v15 = vpop.f32.mrb[103].mxu0  ;;  %v7666_v5 = vadd.f32 1.0, %v10271_v48 }
0x1734   :  { %10274 = vrcp.f32 %v7666_v5 }
0x1739   :  { %v10273_v9 = vpop.eup %10272 }
0x173a   :  { %v7813_v32 = vadd.f32 1.0, %v10273_v9 }
0x173c   :  { %10276 = vrcp.f32 %v7813_v32 }
0x173e   :  { %v10275_v20 = vpop.eup %10274 }
0x173f   :  { %v7956_v22 = vmul.f32 %v10275_v20, %v7953_v17 }
0x1741   :  { %v7957_v31 = vadd.f32 %v7956_v22, %v7883_v18 }
0x1743   :  { %10278 = vtanh.f32 %v7957_v31 }
0x1746   :  { %v10277_v43 = vpop.eup %10276 }
0x1747   :  { %v7959_v19 = vsub.f32 1.0, %v10277_v43  ;;  %v7961_v29 = vmul.f32 %v10277_v43, %v7518_v58 }
0x174d   :  { %v10279_v56 = vpop.eup %10278 }
0x174e   :  { %v7960_v34 = vmul.f32 %v10279_v56, %v7959_v19 }
0x1750   :  { %v7962_v37 = vadd.f32 %v7961_v29, %v7960_v34 }
0x1752   :  { %7964 = vst.msk [vmem:[#allocation7 + $0x38] sm:$0xff] %vm140_vm3, %v7962_v37 }
0x1753   :  { %10352 = shalt.err (!%p10349_p6)
}
0x1754   :  { %s10353_s14 = scalar_lea.hbm %s11676_s12, 1024 }
0x1755   :  { %p10354_p7 = scmp.ne.s32.totalorder %s11676_s12, %s10353_s14  ;;  %p10357_p8 = scmp.lt.u32.totalorder %s10353_s14, %s11676_s12 }
0x1757   :  { %p10359_p9 = pnand %p10357_p8, %p10354_p7 }
0x1759   :  { %10362 = shalt.err (!%p10359_p9)
}
0x175a   :  { %7976 = dma.vmem_to_hbm [thread:$0]  %s7971_s11, 1024, %s11676_s12, [#allocation4], %s10373_s2, %s10373_s2, %s10374_s22  }
0x175b   :  { %10367 = dma.done.wait [#allocation4], 1024  }
0x175c   :  { %10368 = vsyncadd [#allocation4], 4294966272 }
0x175d   :  { %7980 = vsyncpa [#allocation3], 1 }
0x175e   :  { %7981 = vsyncpa [#allocation6], 1 }
0x175f   :  { %7982 = vsyncpa [#allocation4], 1 }

</bundles_post_ra>
